<compile_context>
chip_gen: v7x
topology: tpu7x:2x2x1
jax: 0.10.0
libtpu: 0.0.40
codegen_flags: <defaults>
</compile_context>

<pallas_src>
import jax
import jax.numpy as jnp
from jax.experimental import pallas as pl
from jax.experimental.pallas import tpu as pltpu

BN_EPS = 1e-3          # nn.BatchNorm2d(eps=0.001)
LANES = 128            # lane width / output-channel tile when Cout >= 128


# ----------------------------------------------------------------------------
# Pallas kernels
# ----------------------------------------------------------------------------
def _make_conv_stats_kernel(TH, W, Cin, TC):
    """Pass 1: 3x3 SAME conv of the relu'd input as a single im2col MXU dot
    (K = 9*Cin), plus per-(n, channel-tile) BN sum / sum-of-squares partials
    accumulated over the inner H-tile grid axis."""

    def kernel(xr_ref, w_ref, y_ref, stats_ref):
        # xr_ref:    (1, Hp, Wp, Cin) bf16  whole padded image of batch n
        #                                   (block index changes only with n)
        # w_ref:     (9*Cin, TC)      bf16  g-folded, im2col-reshaped weights
        # y_ref:     (1, TH, W, TC)   bf16  conv-output tile
        # stats_ref: (1, 2, TC)       f32   [sum, sum_sq] accumulated over h
        h = pl.program_id(2)
        row0 = pl.multiple_of(h * TH, TH)

        # Build the (TH*W, 9*Cin) im2col LHS from 3 row-band loads; the 3 dx
        # shifts per band are value slices of already-loaded data (no extra
        # ref loads per tap).
        cols = []
        for dy in range(3):
            band = xr_ref[0, pl.ds(row0 + dy, TH), :, :]        # (TH, Wp, Cin)
            for dx in range(3):
                cols.append(band[:, dx:dx + W, :].reshape(TH * W, Cin))
        lhs = jnp.concatenate(cols, axis=-1)                    # (TH*W, 9*Cin)

        # Single MXU dot, f32 accumulation internal to the MXU.
        acc = jnp.dot(lhs, w_ref[...], preferred_element_type=jnp.float32)

        y_ref[...] = acc.reshape(1, TH, W, TC).astype(y_ref.dtype)

        # BN partials in f32 (computed before the bf16 store of y).
        # TODO(synk): single-pass E[x^2]-E[x]^2 partials can cancel badly if
        # |mean| >> std; a per-tile Welford (count, mean, M2) merge would be
        # the numerically robust alternative.
        ps = jnp.sum(acc, axis=0, keepdims=True)                # (1, TC)
        pq = jnp.sum(acc * acc, axis=0, keepdims=True)          # (1, TC)
        part = jnp.concatenate([ps, pq], axis=0).reshape(1, 2, TC)

        @pl.when(h == 0)
        def _():
            stats_ref[...] = jnp.zeros_like(stats_ref)

        stats_ref[...] += part

    return kernel


def _bn_residual_kernel(y_ref, x_ref, scale_ref, shift_ref, o_ref):
    """Pass 2: out = x + y * scale + shift (folded BatchNorm affine + residual)."""
    o_ref[...] = (x_ref[...]
                  + y_ref[...].astype(jnp.float32) * scale_ref[...]
                  + shift_ref[...])


# ----------------------------------------------------------------------------
# Tile sizing / VMEM budgeting
# ----------------------------------------------------------------------------
def _vmem_limits():
    """Generation-aware scoped-VMEM limit, tile budget and preferred tile rows."""
    try:
        phys = int(pltpu.get_tpu_info().vmem_capacity_bytes)
    except Exception:
        phys = 0
    if phys <= 0:
        phys = 64 * 1024 * 1024          # conservative (v7x per-core size)
    limit = min(int(phys * 0.70), 100 * 1024 * 1024)
    budget = int(limit * 0.75)
    target_rows = 2048 if limit >= 48 * 1024 * 1024 else 512
    return limit, budget, target_rows


def _pick_tile_rows(H, W, Cin, Hp, Wp, TC, budget, target_rows):
    """Largest TH dividing H with TH*W <= target_rows and blocks within budget."""
    best = 1
    for th in range(1, H + 1):
        if H % th:
            continue
        rows = th * W
        if rows > max(target_rows, W):
            continue
        need = (
            2 * (Hp * Wp * Cin * 2)      # resident padded image block (bf16, x2 buf)
            + 2 * (9 * Cin * TC * 2)     # weight block (bf16)
            + 2 * (rows * TC * 2)        # y output tile (bf16)
            + 2 * (2 * TC * 4)           # stats accumulator block (f32)
            + rows * 9 * Cin * 2         # im2col LHS temporary (bf16)
            + rows * TC * 4              # f32 dot result temporary
        )
        if need <= budget:
            best = th
    return best


# ----------------------------------------------------------------------------
# Wrapper
# ----------------------------------------------------------------------------
def residual_block_forward(params, x_nchw):
    """ResidualBlock.forward: x + BN(WeightNormConv3x3(relu(x))). NCHW in / out."""
    x = jnp.transpose(x_nchw, (0, 2, 3, 1)).astype(jnp.float32)     # NHWC
    N, H, W, Cin = x.shape
    V, g = params["V"], params["g"]
    gamma, beta = params["bn_gamma"], params["bn_beta"]
    Cout = V.shape[0]
    assert Cout == Cin, "ResidualBlock uses out_channels == in_channels"

    # Channel tiling: no lane padding when Cout < 128 (unpadded, mem-bound win);
    # 128-lane tiles (with padding to a multiple) only when Cout >= 128.
    if Cout <= LANES:
        TC, Coutp = Cout, Cout
    else:
        TC = LANES
        Coutp = ((Cout + LANES - 1) // LANES) * LANES
    CT = Coutp // TC

    # WeightNormConv2d: per-output-channel L2-normalize V, fold g into the
    # columns, reshape to the im2col layout (9*Cin, Cout).  The conv bias b is
    # dropped: it is cancelled exactly by the batch-statistics BatchNorm that
    # follows (pure per-channel mean shift).  NOTE: only exact for training-
    # mode BN (use_batch_statistics=True), as in this module.
    norm = jnp.sqrt(jnp.sum(V.reshape(Cout, -1) ** 2, axis=1))
    Vn = (V / jnp.maximum(norm, 1e-12)[:, None, None, None]) * g[:, None, None, None]
    Wk = jnp.transpose(Vn, (2, 3, 1, 0))                            # (3,3,Cin,Cout) HWIO
    if Coutp != Cout:
        Wk = jnp.pad(Wk, ((0, 0), (0, 0), (0, 0), (0, Coutp - Cout)))
    Wk = Wk.reshape(9 * Cin, Coutp).astype(jnp.bfloat16)            # im2col weights

    # relu + SAME-pad + bf16 cast of the input, once (fused by XLA).  This is
    # the only extra HBM copy -- no 9x im2col materialization in HBM.
    xr = jnp.pad(jax.nn.relu(x), ((0, 0), (1, 1), (1, 1), (0, 0))).astype(jnp.bfloat16)
    Hp, Wp = H + 2, W + 2

    vmem_limit, vmem_budget, target_rows = _vmem_limits()
    TH = _pick_tile_rows(H, W, Cin, Hp, Wp, TC, vmem_budget, target_rows)
    HT = H // TH
    # TODO(synk): for very large H*W*Cin the whole padded image per batch element
    # no longer fits the per-step VMEM budget; switch the x input to a manual
    # (TH+2)-row halo async copy (memory_space=pl.ANY) instead of a resident block.

    # ---- pass 1: conv(relu(x)) tiles (bf16) + BN partial sums -----------------
    conv_kernel = _make_conv_stats_kernel(TH, W, Cin, TC)
    y, stats = pl.pallas_call(
        conv_kernel,
        out_shape=(jax.ShapeDtypeStruct((N, H, W, Coutp), jnp.bfloat16),
                   jax.ShapeDtypeStruct((N, 2, Coutp), jnp.float32)),
        grid=(N, CT, HT),                       # H-tiles innermost: weight block
        in_specs=[                              # re-fetched only when j changes.
            pl.BlockSpec((1, Hp, Wp, Cin), lambda n, j, h: (n, 0, 0, 0)),
            pl.BlockSpec((9 * Cin, TC), lambda n, j, h: (0, j)),
        ],
        out_specs=[
            pl.BlockSpec((1, TH, W, TC), lambda n, j, h: (n, h, 0, j)),
            pl.BlockSpec((1, 2, TC), lambda n, j, h: (n, 0, j)),
        ],
        compiler_params=pltpu.CompilerParams(
            dimension_semantics=("parallel", "parallel", "arbitrary"),
            vmem_limit_bytes=vmem_limit),
    )(xr, Wk)

    # ---- reduce BN partials; fold BN + (gamma, beta) into one affine ----------
    M = N * H * W
    ssum = jnp.sum(stats[:, 0, :], axis=0)                          # (Coutp,)
    ssq = jnp.sum(stats[:, 1, :], axis=0)
    mean = ssum / M
    var = jnp.maximum(ssq / M - mean * mean, 0.0)                   # biased (training BN)
    if Coutp != Cout:
        gamma = jnp.pad(gamma, (0, Coutp - Cout))
        beta = jnp.pad(beta, (0, Coutp - Cout))
    scale = gamma * jax.lax.rsqrt(var + BN_EPS)
    shift = beta - mean * scale
    # TODO(synk): BatchNorm2d running-mean/var buffer updates (momentum=0.01) are
    # training-state mutation and not part of this pure forward pass.

    # ---- pass 2: normalize + residual add (fully unpadded) --------------------
    if Coutp == Cout:
        scale4 = scale.reshape(1, 1, 1, Cout)
        shift4 = shift.reshape(1, 1, 1, Cout)
        tile_spec = pl.BlockSpec((1, TH, W, TC), lambda n, j, h: (n, h, 0, j))
        chan_spec = pl.BlockSpec((1, 1, 1, TC), lambda n, j, h: (0, 0, 0, j))
        out = pl.pallas_call(
            _bn_residual_kernel,
            out_shape=jax.ShapeDtypeStruct((N, H, W, Cout), jnp.float32),
            grid=(N, CT, HT),
            in_specs=[tile_spec, tile_spec, chan_spec, chan_spec],
            out_specs=tile_spec,
            compiler_params=pltpu.CompilerParams(
                dimension_semantics=("parallel", "parallel", "parallel"),
                vmem_limit_bytes=vmem_limit),
        )(y, x, scale4, shift4)
    else:
        # Rare path (Cout > 128 and not lane-aligned): let XLA fuse the channel
        # slice + affine + residual add + final transpose.
        out = x + y[..., :Cout].astype(jnp.float32) * scale[:Cout] + shift[:Cout]

    return jnp.transpose(out, (0, 3, 1, 2))                         # back to NCHW


# ----------------------------------------------------------------------------
# Parameters + pure-XLA reference
# ----------------------------------------------------------------------------
def init_residual_block_params(key, channels):
    """Matches WeightNormConv2d + BatchNorm2d initialization in the module."""
    return {
        "V": 0.05 * jax.random.normal(key, (channels, channels, 3, 3), jnp.float32),
        "g": jnp.ones((channels,), jnp.float32),
        "b": jnp.zeros((channels,), jnp.float32),    # cancels under training-mode BN
        "bn_gamma": jnp.ones((channels,), jnp.float32),
        "bn_beta": jnp.zeros((channels,), jnp.float32),
    }


def residual_block_reference(params, x_nchw):
    """Pure-XLA f32 reference of ResidualBlock.forward (training BN, dropout=0)."""
    x = jnp.transpose(x_nchw, (0, 2, 3, 1))
    V, g, b = params["V"], params["g"], params["b"]
    gamma, beta = params["bn_gamma"], params["bn_beta"]
    Cout = V.shape[0]
    norm = jnp.sqrt(jnp.sum(V.reshape(Cout, -1) ** 2, axis=1))
    Vn = V / jnp.maximum(norm, 1e-12)[:, None, None, None]
    w = jnp.transpose(Vn, (2, 3, 1, 0))                             # HWIO
    y = jax.lax.conv_general_dilated(
        jax.nn.relu(x), w, window_strides=(1, 1), padding="SAME",
        dimension_numbers=("NHWC", "HWIO", "NHWC"))
    y = y * g + b
    mean = jnp.mean(y, axis=(0, 1, 2), keepdims=True)
    var = jnp.mean((y - mean) ** 2, axis=(0, 1, 2), keepdims=True)
    y = (y - mean) * jax.lax.rsqrt(var + BN_EPS) * gamma + beta
    return jnp.transpose(x + y, (0, 3, 1, 2))


# ----------------------------------------------------------------------------
if __name__ == "__main__":
    key = jax.random.PRNGKey(0)
    kx, kp = jax.random.split(key)

    N, C, H, W = 2, 16, 16, 16                      # NCHW, module-consistent
    x = jax.random.normal(kx, (N, C, H, W), jnp.float32)
    params = init_residual_block_params(kp, C)

    fwd = jax.jit(residual_block_forward)
    out = jax.block_until_ready(fwd(params, x))
    assert out.shape == (N, C, H, W)

    ref = jax.block_until_ready(residual_block_reference(params, x))
    err = float(jnp.max(jnp.abs(out - ref)))
    assert err < 5e-2, f"max abs error vs reference too large: {err}"

    print("KERNEL_OK")
</pallas_src>

<mosaic_0001>
module attributes {stable_mosaic.version = 11 : i64} {
  func.func @kernel(%arg0: i32, %arg1: i32, %arg2: i32, %arg3: memref<1x18x18x16xbf16, #tpu.memory_space<vmem>>, %arg4: memref<144x16xbf16, #tpu.memory_space<vmem>>, %arg5: memref<1x16x16x16xbf16, #tpu.memory_space<vmem>>, %arg6: memref<1x2x16xf32, #tpu.memory_space<vmem>>) attributes {dimension_semantics = [#tpu.dimension_semantics<parallel>, #tpu.dimension_semantics<parallel>, #tpu.dimension_semantics<arbitrary>], iteration_bounds = array<i64: 2, 1, 1>, scalar_prefetch = 0 : i64, scratch_operands = 0 : i64, tpu.core_type = #tpu.core_type<tc>, window_params = [{transform_indices = @transform_0, window_bounds = array<i64: 1, 18, 18, 16>}, {transform_indices = @transform_1, window_bounds = array<i64: 144, 16>}, {transform_indices = @transform_2, window_bounds = array<i64: 1, 16, 16, 16>}, {transform_indices = @transform_3, window_bounds = array<i64: 1, 2, 16>}]} {
    %c16_i32 = arith.constant 16 : i32
    %0 = arith.muli %arg2, %c16_i32 : i32
    %1 = tpu.assume_multiple %0, 16 : i32
    %c0_i32 = arith.constant 0 : i32
    %2 = arith.addi %1, %c0_i32 : i32
    %c0 = arith.constant 0 : index
    %3 = arith.index_cast %2 : i32 to index
    %c0_0 = arith.constant 0 : index
    %c0_1 = arith.constant 0 : index
    %4 = vector.load %arg3[%c0, %3, %c0_0, %c0_1] : memref<1x18x18x16xbf16, #tpu.memory_space<vmem>>, vector<1x16x18x16xbf16>
    %5 = vector.shape_cast %4 : vector<1x16x18x16xbf16> to vector<16x18x16xbf16>
    %6 = vector.extract_strided_slice %5 {offsets = [0, 0, 0], sizes = [16, 16, 16], strides = [1, 1, 1]} : vector<16x18x16xbf16> to vector<16x16x16xbf16>
    %7 = vector.shape_cast %6 : vector<16x16x16xbf16> to vector<256x16xbf16>
    %8 = vector.extract_strided_slice %5 {offsets = [0, 1, 0], sizes = [16, 16, 16], strides = [1, 1, 1]} : vector<16x18x16xbf16> to vector<16x16x16xbf16>
    %9 = vector.shape_cast %8 : vector<16x16x16xbf16> to vector<256x16xbf16>
    %10 = vector.extract_strided_slice %5 {offsets = [0, 2, 0], sizes = [16, 16, 16], strides = [1, 1, 1]} : vector<16x18x16xbf16> to vector<16x16x16xbf16>
    %11 = vector.shape_cast %10 : vector<16x16x16xbf16> to vector<256x16xbf16>
    %c1_i32 = arith.constant 1 : i32
    %12 = arith.addi %1, %c1_i32 : i32
    %c0_2 = arith.constant 0 : index
    %13 = arith.index_cast %12 : i32 to index
    %c0_3 = arith.constant 0 : index
    %c0_4 = arith.constant 0 : index
    %14 = vector.load %arg3[%c0_2, %13, %c0_3, %c0_4] : memref<1x18x18x16xbf16, #tpu.memory_space<vmem>>, vector<1x16x18x16xbf16>
    %15 = vector.shape_cast %14 : vector<1x16x18x16xbf16> to vector<16x18x16xbf16>
    %16 = vector.extract_strided_slice %15 {offsets = [0, 0, 0], sizes = [16, 16, 16], strides = [1, 1, 1]} : vector<16x18x16xbf16> to vector<16x16x16xbf16>
    %17 = vector.shape_cast %16 : vector<16x16x16xbf16> to vector<256x16xbf16>
    %18 = vector.extract_strided_slice %15 {offsets = [0, 1, 0], sizes = [16, 16, 16], strides = [1, 1, 1]} : vector<16x18x16xbf16> to vector<16x16x16xbf16>
    %19 = vector.shape_cast %18 : vector<16x16x16xbf16> to vector<256x16xbf16>
    %20 = vector.extract_strided_slice %15 {offsets = [0, 2, 0], sizes = [16, 16, 16], strides = [1, 1, 1]} : vector<16x18x16xbf16> to vector<16x16x16xbf16>
    %21 = vector.shape_cast %20 : vector<16x16x16xbf16> to vector<256x16xbf16>
    %c2_i32 = arith.constant 2 : i32
    %22 = arith.addi %1, %c2_i32 : i32
    %c0_5 = arith.constant 0 : index
    %23 = arith.index_cast %22 : i32 to index
    %c0_6 = arith.constant 0 : index
    %c0_7 = arith.constant 0 : index
    %24 = vector.load %arg3[%c0_5, %23, %c0_6, %c0_7] : memref<1x18x18x16xbf16, #tpu.memory_space<vmem>>, vector<1x16x18x16xbf16>
    %25 = vector.shape_cast %24 : vector<1x16x18x16xbf16> to vector<16x18x16xbf16>
    %26 = vector.extract_strided_slice %25 {offsets = [0, 0, 0], sizes = [16, 16, 16], strides = [1, 1, 1]} : vector<16x18x16xbf16> to vector<16x16x16xbf16>
    %27 = vector.shape_cast %26 : vector<16x16x16xbf16> to vector<256x16xbf16>
    %28 = vector.extract_strided_slice %25 {offsets = [0, 1, 0], sizes = [16, 16, 16], strides = [1, 1, 1]} : vector<16x18x16xbf16> to vector<16x16x16xbf16>
    %29 = vector.shape_cast %28 : vector<16x16x16xbf16> to vector<256x16xbf16>
    %30 = vector.extract_strided_slice %25 {offsets = [0, 2, 0], sizes = [16, 16, 16], strides = [1, 1, 1]} : vector<16x18x16xbf16> to vector<16x16x16xbf16>
    %31 = vector.shape_cast %30 : vector<16x16x16xbf16> to vector<256x16xbf16>
    %32 = tpu.concatenate %7, %9, %11, %17, %19, %21, %27, %29, %31 in 1 : vector<256x16xbf16>, vector<256x16xbf16>, vector<256x16xbf16>, vector<256x16xbf16>, vector<256x16xbf16>, vector<256x16xbf16>, vector<256x16xbf16>, vector<256x16xbf16>, vector<256x16xbf16> -> vector<256x144xbf16>
    %c0_8 = arith.constant 0 : index
    %c0_9 = arith.constant 0 : index
    %33 = vector.load %arg4[%c0_8, %c0_9] : memref<144x16xbf16, #tpu.memory_space<vmem>>, vector<144x16xbf16>
    %cst = arith.constant dense<0.000000e+00> : vector<256x16xf32>
    %34 = tpu.matmul %32, %33, %cst {dimension_numbers = #tpu.dot_dimension_numbers<[1], [0], [0], [1], [0, 0, 1, 1], [], []>} : vector<256x144xbf16>, vector<144x16xbf16>, vector<256x16xf32> -> vector<256x16xf32>
    %35 = vector.shape_cast %34 : vector<256x16xf32> to vector<1x16x16x16xf32>
    %36 = arith.truncf %35 : vector<1x16x16x16xf32> to vector<1x16x16x16xbf16>
    %c0_10 = arith.constant 0 : index
    %c0_11 = arith.constant 0 : index
    %c0_12 = arith.constant 0 : index
    %c0_13 = arith.constant 0 : index
    %37 = vector.load %arg5[%c0_10, %c0_11, %c0_12, %c0_13] : memref<1x16x16x16xbf16, #tpu.memory_space<vmem>>, vector<1x16x16x16xbf16>
    tpu.vector_store %arg5[%c0_10, %c0_11, %c0_12, %c0_13], %36 {strides = array<i32>} : memref<1x16x16x16xbf16, #tpu.memory_space<vmem>>, vector<1x16x16x16xbf16>,
    %cst_14 = arith.constant dense<0.000000e+00> : vector<16xf32>
    %38 = vector.multi_reduction <add>, %34, %cst_14 [0] : vector<256x16xf32> to vector<16xf32>
    %39 = vector.shape_cast %38 : vector<16xf32> to vector<1x16xf32>
    %40 = arith.mulf %34, %34 : vector<256x16xf32>
    %cst_15 = arith.constant dense<0.000000e+00> : vector<16xf32>
    %41 = vector.multi_reduction <add>, %40, %cst_15 [0] : vector<256x16xf32> to vector<16xf32>
    %42 = vector.shape_cast %41 : vector<16xf32> to vector<1x16xf32>
    %43 = tpu.concatenate %39, %42 in 0 : vector<1x16xf32>, vector<1x16xf32> -> vector<2x16xf32>
    %44 = vector.shape_cast %43 : vector<2x16xf32> to vector<1x2x16xf32>
    %c0_i32_16 = arith.constant 0 : i32
    %45 = arith.cmpi eq, %arg2, %c0_i32_16 : i32
    %46 = arith.extui %45 : i1 to i32
    %c0_i32_17 = arith.constant 0 : i32
    %47 = arith.cmpi ne, %46, %c0_i32_17 : i32
    scf.if %47 {
      %cst_24 = arith.constant 0.000000e+00 : f32
      %51 = vector.broadcast %cst_24 : f32 to vector<1x2x16xf32>
      %c0_25 = arith.constant 0 : index
      %c0_26 = arith.constant 0 : index
      %c0_27 = arith.constant 0 : index
      %52 = vector.load %arg6[%c0_25, %c0_26, %c0_27] : memref<1x2x16xf32, #tpu.memory_space<vmem>>, vector<1x2x16xf32>
      tpu.vector_store %arg6[%c0_25, %c0_26, %c0_27], %51 {strides = array<i32>} : memref<1x2x16xf32, #tpu.memory_space<vmem>>, vector<1x2x16xf32>,
    } else {
    }
    %c0_18 = arith.constant 0 : index
    %c0_19 = arith.constant 0 : index
    %c0_20 = arith.constant 0 : index
    %48 = vector.load %arg6[%c0_18, %c0_19, %c0_20] : memref<1x2x16xf32, #tpu.memory_space<vmem>>, vector<1x2x16xf32>
    %49 = arith.addf %48, %44 : vector<1x2x16xf32>
    %c0_21 = arith.constant 0 : index
    %c0_22 = arith.constant 0 : index
    %c0_23 = arith.constant 0 : index
    %50 = vector.load %arg6[%c0_21, %c0_22, %c0_23] : memref<1x2x16xf32, #tpu.memory_space<vmem>>, vector<1x2x16xf32>
    tpu.vector_store %arg6[%c0_21, %c0_22, %c0_23], %49 {strides = array<i32>} : memref<1x2x16xf32, #tpu.memory_space<vmem>>, vector<1x2x16xf32>,
    return
  }
  func.func @transform_0(%arg0: i32, %arg1: i32, %arg2: i32) -> (i32, i32, i32, i32) {
    %c0_i32 = arith.constant 0 : i32
    %c0_i32_0 = arith.constant 0 : i32
    %c0_i32_1 = arith.constant 0 : i32
    %c0_i32_2 = arith.constant 0 : i32
    return %arg0, %c0_i32, %c0_i32_0, %c0_i32_1 : i32, i32, i32, i32
  }
  func.func @transform_1(%arg0: i32, %arg1: i32, %arg2: i32) -> (i32, i32) {
    %c0_i32 = arith.constant 0 : i32
    %c0_i32_0 = arith.constant 0 : i32
    return %c0_i32, %arg1 : i32, i32
  }
  func.func @transform_2(%arg0: i32, %arg1: i32, %arg2: i32) -> (i32, i32, i32, i32) {
    %c0_i32 = arith.constant 0 : i32
    %c0_i32_0 = arith.constant 0 : i32
    return %arg0, %arg2, %c0_i32, %arg1 : i32, i32, i32, i32
  }
  func.func @transform_3(%arg0: i32, %arg1: i32, %arg2: i32) -> (i32, i32, i32) {
    %c0_i32 = arith.constant 0 : i32
    %c0_i32_0 = arith.constant 0 : i32
    return %arg0, %c0_i32, %arg1 : i32, i32, i32
  }
}

module attributes {stable_mosaic.version = 11 : i64} {
  func.func @_bn_residual_kernel(%arg0: i32, %arg1: i32, %arg2: i32, %arg3: memref<1x16x16x16xbf16, #tpu.memory_space<vmem>>, %arg4: memref<1x16x16x16xf32, #tpu.memory_space<vmem>>, %arg5: memref<1x1x1x16xf32, #tpu.memory_space<vmem>>, %arg6: memref<1x1x1x16xf32, #tpu.memory_space<vmem>>, %arg7: memref<1x16x16x16xf32, #tpu.memory_space<vmem>>) attributes {dimension_semantics = [#tpu.dimension_semantics<parallel>, #tpu.dimension_semantics<parallel>, #tpu.dimension_semantics<parallel>], iteration_bounds = array<i64: 2, 1, 1>, scalar_prefetch = 0 : i64, scratch_operands = 0 : i64, tpu.core_type = #tpu.core_type<tc>, window_params = [{transform_indices = @transform_0, window_bounds = array<i64: 1, 16, 16, 16>}, {transform_indices = @transform_1, window_bounds = array<i64: 1, 16, 16, 16>}, {transform_indices = @transform_2, window_bounds = array<i64: 1, 1, 1, 16>}, {transform_indices = @transform_3, window_bounds = array<i64: 1, 1, 1, 16>}, {transform_indices = @transform_4, window_bounds = array<i64: 1, 16, 16, 16>}]} {
    %c0 = arith.constant 0 : index
    %c0_0 = arith.constant 0 : index
    %c0_1 = arith.constant 0 : index
    %c0_2 = arith.constant 0 : index
    %0 = vector.load %arg4[%c0, %c0_0, %c0_1, %c0_2] : memref<1x16x16x16xf32, #tpu.memory_space<vmem>>, vector<1x16x16x16xf32>
    %c0_3 = arith.constant 0 : index
    %c0_4 = arith.constant 0 : index
    %c0_5 = arith.constant 0 : index
    %c0_6 = arith.constant 0 : index
    %1 = vector.load %arg3[%c0_3, %c0_4, %c0_5, %c0_6] : memref<1x16x16x16xbf16, #tpu.memory_space<vmem>>, vector<1x16x16x16xbf16>
    %2 = arith.extf %1 : vector<1x16x16x16xbf16> to vector<1x16x16x16xf32>
    %c0_7 = arith.constant 0 : index
    %c0_8 = arith.constant 0 : index
    %c0_9 = arith.constant 0 : index
    %c0_10 = arith.constant 0 : index
    %3 = vector.load %arg5[%c0_7, %c0_8, %c0_9, %c0_10] : memref<1x1x1x16xf32, #tpu.memory_space<vmem>>, vector<1x1x1x16xf32>
    %4 = vector.broadcast %3 : vector<1x1x1x16xf32> to vector<1x16x16x16xf32>
    %5 = arith.mulf %2, %4 : vector<1x16x16x16xf32>
    %6 = arith.addf %0, %5 : vector<1x16x16x16xf32>
    %c0_11 = arith.constant 0 : index
    %c0_12 = arith.constant 0 : index
    %c0_13 = arith.constant 0 : index
    %c0_14 = arith.constant 0 : index
    %7 = vector.load %arg6[%c0_11, %c0_12, %c0_13, %c0_14] : memref<1x1x1x16xf32, #tpu.memory_space<vmem>>, vector<1x1x1x16xf32>
    %8 = vector.broadcast %7 : vector<1x1x1x16xf32> to vector<1x16x16x16xf32>
    %9 = arith.addf %6, %8 : vector<1x16x16x16xf32>
    %c0_15 = arith.constant 0 : index
    %c0_16 = arith.constant 0 : index
    %c0_17 = arith.constant 0 : index
    %c0_18 = arith.constant 0 : index
    %10 = vector.load %arg7[%c0_15, %c0_16, %c0_17, %c0_18] : memref<1x16x16x16xf32, #tpu.memory_space<vmem>>, vector<1x16x16x16xf32>
    tpu.vector_store %arg7[%c0_15, %c0_16, %c0_17, %c0_18], %9 {strides = array<i32>} : memref<1x16x16x16xf32, #tpu.memory_space<vmem>>, vector<1x16x16x16xf32>,
    return
  }
  func.func @transform_0(%arg0: i32, %arg1: i32, %arg2: i32) -> (i32, i32, i32, i32) {
    %c0_i32 = arith.constant 0 : i32
    %c0_i32_0 = arith.constant 0 : i32
    return %arg0, %arg2, %c0_i32, %arg1 : i32, i32, i32, i32
  }
  func.func @transform_1(%arg0: i32, %arg1: i32, %arg2: i32) -> (i32, i32, i32, i32) {
    %c0_i32 = arith.constant 0 : i32
    %c0_i32_0 = arith.constant 0 : i32
    return %arg0, %arg2, %c0_i32, %arg1 : i32, i32, i32, i32
  }
  func.func @transform_2(%arg0: i32, %arg1: i32, %arg2: i32) -> (i32, i32, i32, i32) {
    %c0_i32 = arith.constant 0 : i32
    %c0_i32_0 = arith.constant 0 : i32
    %c0_i32_1 = arith.constant 0 : i32
    %c0_i32_2 = arith.constant 0 : i32
    return %c0_i32, %c0_i32_0, %c0_i32_1, %arg1 : i32, i32, i32, i32
  }
  func.func @transform_3(%arg0: i32, %arg1: i32, %arg2: i32) -> (i32, i32, i32, i32) {
    %c0_i32 = arith.constant 0 : i32
    %c0_i32_0 = arith.constant 0 : i32
    %c0_i32_1 = arith.constant 0 : i32
    %c0_i32_2 = arith.constant 0 : i32
    return %c0_i32, %c0_i32_0, %c0_i32_1, %arg1 : i32, i32, i32, i32
  }
  func.func @transform_4(%arg0: i32, %arg1: i32, %arg2: i32) -> (i32, i32, i32, i32) {
    %c0_i32 = arith.constant 0 : i32
    %c0_i32_0 = arith.constant 0 : i32
    return %arg0, %arg2, %c0_i32, %arg1 : i32, i32, i32, i32
  }
}

</mosaic_0001>

<bundles_post_ra>
// kernel: residual_block_forward.3
= control target key start
LH: loop header
LB: loop body
LE: loop exit
PB: predicated region body
PF: predicated region fallthrough
CT: control target
= control target key end

     0   :  { %s917_s15 = smov 0   ;;  %s919_s16 = smov 0   ;;  %s1153_s0 = inlined_call_operand.vmem [shape: bf16[2,16,16,16], index: 0, kind: input, shape index: {}]   ;;  %s1154_s1 = inlined_call_operand.vmem [shape: f32[2,16,16,16], index: 1, kind: input, shape index: {}]   ;;  %s1155_s2 = inlined_call_operand.vmem [shape: f32[1,1,1,16], index: 2, kind: input, shape index: {}]   ;;  %s1156_s3 = inlined_call_operand.vmem [shape: f32[1,1,1,16], index: 3, kind: input, shape index: {}]   ;;  %s1157_s4 = inlined_call_operand.vmem [shape: f32[2,16,16,16], index: 4, kind: output, shape index: {}]  }
   0x1   :  { %s921_s17 = smov 0  }
   0x2 LB: > { %s33_s18 = sadd.s32 1, %s886_s16  ;;  %p751_p0 = scmp.ge.s32.totalorder %s890_s17, 1  ;;  %s890_s17 = sphi %s921_s17, %s14_s17   ;;  %s886_s16 = sphi %s919_s16, %s1159_s16   ;;  %s882_s15 = sphi %s917_s15, %s1158_s15  }
   0x3   : > { %p35_p1 = scmp.ge.s32.totalorder %s33_s18, 2  ;;  %p237_p2 = scmp.lt.s32.totalorder %s890_s17, 3 }
   0x5   : > { %s1161_s18 = smov (%p35_p1, %s33_s18), 0  ;;  %p238_p3 = pnand %p751_p0, %p237_p2 }
   0x6   : > { %p299_p4 = scmp.lt.s32.totalorder (!%p238_p3), %s882_s15, 1  ;;  %v955_v1 = vld [vmem:[%s1155_s2] ss:$0 sm:$0xff] (!%p238_p3)  ;;  %vm552_vm0 = vcmask (!%p238_p3), 130048  }
   0x7   : > { %241 = sbr.rel (%p238_p3) target bundleno = 54 (0x36), region = 36  ;;  %v969_v17 = vld [vmem:[%s1156_s3] ss:$0 sm:$0xff] (!%p238_p3) }
   0xe   : > { %s1163_s15 = smov (!%p299_p4, %s882_s15), 1 }
   0xf   : > { %s762_s19 = sshll.u32 %s1163_s15, 7  ;;  %s763_s20 = sshll.u32 %s1163_s15, 8 }
  0x10   : > { %s942_s23 = scalar_lea.vmem %s1153_s0, %s762_s19  ;;  %s949_s26 = scalar_lea.vmem %s1154_s1, %s763_s20 }
  0x11   : > { %v766_v0 = vld [vmem:[%s942_s23] sm:$0xff]   ;;  %v829_v4 = vld [vmem:[%s942_s23 + $0x8] sm:$0xff]   ;;  %v830_v9 = vld [vmem:[%s942_s23 + $0x10] sm:$0xff]   ;;  %s984_s7 = scalar_lea.vmem %s1157_s4, %s763_s20 }
  0x12   : > { %v767_v2 = vunpack.c.l.bf16 %v766_v0  ;;  %v768_v3 = vunpack.c.h.bf16 %v766_v0  ;;  %v346_v5 = vld [vmem:[%s949_s26] sm:$0xff]  ;;  %v347_v6 = vld [vmem:[%s949_s26 + $0x8] sm:$0xff]  ;;  %v771_v7 = vunpack.c.l.bf16 %v829_v4  ;;  %v772_v8 = vunpack.c.h.bf16 %v829_v4  ;;  %v348_v12 = vld [vmem:[%s949_s26 + $0x10] sm:$0xff] }
  0x13   : > { %v349_v13 = vld [vmem:[%s949_s26 + $0x18] sm:$0xff]  ;;  %v775_v14 = vunpack.c.l.bf16 %v830_v9  ;;  %v776_v15 = vunpack.c.h.bf16 %v830_v9  ;;  %v350_v20 = vld [vmem:[%s949_s26 + $0x20] sm:$0xff]  ;;  %v351_v21 = vld [vmem:[%s949_s26 + $0x28] sm:$0xff] }
  0x14   : > { %v449_v10 = vmul.f32 %v767_v2, %v955_v1  ;;  %v450_v11 = vmul.f32 %v768_v3, %v955_v1  ;;  %v831_v16 = vld [vmem:[%s942_s23 + $0x18] sm:$0xff]   ;;  %v451_v18 = vmul.f32 %v771_v7, %v955_v1  ;;  %v452_v19 = vmul.f32 %v772_v8, %v955_v1  ;;  %v352_v28 = vld [vmem:[%s949_s26 + $0x30] sm:$0xff]  ;;  %v832_v34 = vld [vmem:[%s942_s23 + $0x20] sm:$0xff]  }
  0x15   : > { %v779_v22 = vunpack.c.l.bf16 %v831_v16  ;;  %v780_v23 = vunpack.c.h.bf16 %v831_v16  ;;  %v453_v26 = vmul.f32 %v775_v14, %v955_v1  ;;  %v454_v27 = vmul.f32 %v776_v15, %v955_v1  ;;  %v353_v29 = vld [vmem:[%s949_s26 + $0x38] sm:$0xff]  ;;  %v833_v39 = vld [vmem:[%s942_s23 + $0x28] sm:$0xff]   ;;  %v834_v44 = vld [vmem:[%s942_s23 + $0x30] sm:$0xff]  }
  0x16   : > { %v481_v24 = vadd.f32 %v449_v10, %v346_v5  ;;  %v482_v25 = vadd.f32 %v450_v11, %v347_v6  ;;  %v483_v30 = vadd.f32 %v451_v18, %v348_v12  ;;  %v484_v31 = vadd.f32 %v452_v19, %v349_v13  ;;  %v835_v49 = vld [vmem:[%s942_s23 + $0x38] sm:$0xff]   ;;  %v354_v52 = vld [vmem:[%s949_s26 + $0x40] sm:$0xff]  ;;  %v355_v53 = vld [vmem:[%s949_s26 + $0x48] sm:$0xff] }
  0x17   : > { %v455_v32 = vmul.f32 %v779_v22, %v955_v1  ;;  %v456_v33 = vmul.f32 %v780_v23, %v955_v1  ;;  %v485_v37 = vadd.f32 %v453_v26, %v350_v20  ;;  %v486_v38 = vadd.f32 %v454_v27, %v351_v21  ;;  %v356_v58 = vld [vmem:[%s949_s26 + $0x50] sm:$0xff]  ;;  %v357_v59 = vld [vmem:[%s949_s26 + $0x58] sm:$0xff]  ;;  %v358_v0 = vld [vmem:[%s949_s26 + $0x60] sm:$0xff] }
  0x18   : > { %v520_v35 = vadd.f32 %v969_v17, %v481_v24  ;;  %v521_v36 = vadd.f32 %v969_v17, %v482_v25  ;;  %v522_v40 = vadd.f32 %v969_v17, %v483_v30  ;;  %v523_v41 = vadd.f32 %v969_v17, %v484_v31  ;;  %v359_v2 = vld [vmem:[%s949_s26 + $0x68] sm:$0xff]  ;;  %v360_v9 = vld [vmem:[%s949_s26 + $0x70] sm:$0xff]  ;;  %v361_v10 = vld [vmem:[%s949_s26 + $0x78] sm:$0xff] }
  0x19   : > { %v487_v42 = vadd.f32 %v455_v32, %v352_v28  ;;  %v488_v43 = vadd.f32 %v456_v33, %v353_v29  ;;  %v524_v45 = vadd.f32 %v969_v17, %v485_v37  ;;  %v525_v46 = vadd.f32 %v969_v17, %v486_v38  ;;  %v836_v15 = vld [vmem:[%s942_s23 + $0x40] sm:$0xff]   ;;  %v837_v21 = vld [vmem:[%s942_s23 + $0x48] sm:$0xff]   ;;  %v838_v26 = vld [vmem:[%s942_s23 + $0x50] sm:$0xff]  }
  0x1a   : > { %553 = vst.msk [vmem:[%s984_s7] sm:$0xff] %vm552_vm0, %v520_v35  ;;  %554 = vst.msk [vmem:[%s984_s7 + $0x8] sm:$0xff] %vm552_vm0, %v521_v36  ;;  %v783_v47 = vunpack.c.l.bf16 %v832_v34  ;;  %v784_v48 = vunpack.c.h.bf16 %v832_v34  ;;  %v787_v54 = vunpack.c.l.bf16 %v833_v39  ;;  %v788_v55 = vunpack.c.h.bf16 %v833_v39  ;;  %v839_v31 = vld [vmem:[%s942_s23 + $0x58] sm:$0xff]   ;;  %v362_v34 = vld [vmem:[%s949_s26 + $0x80] sm:$0xff] }
  0x1b   : > { %555 = vst.msk [vmem:[%s984_s7 + $0x10] sm:$0xff] %vm552_vm0, %v522_v40  ;;  %556 = vst.msk [vmem:[%s984_s7 + $0x18] sm:$0xff] %vm552_vm0, %v523_v41  ;;  %v526_v50 = vadd.f32 %v969_v17, %v487_v42  ;;  %v527_v51 = vadd.f32 %v969_v17, %v488_v43  ;;  %v791_v60 = vunpack.c.l.bf16 %v834_v44  ;;  %v792_v61 = vunpack.c.h.bf16 %v834_v44  ;;  %v363_v35 = vld [vmem:[%s949_s26 + $0x88] sm:$0xff]  ;;  %v364_v40 = vld [vmem:[%s949_s26 + $0x90] sm:$0xff] }
  0x1c   : > { %557 = vst.msk [vmem:[%s984_s7 + $0x20] sm:$0xff] %vm552_vm0, %v524_v45  ;;  %558 = vst.msk [vmem:[%s984_s7 + $0x28] sm:$0xff] %vm552_vm0, %v525_v46  ;;  %v457_v56 = vmul.f32 %v783_v47, %v955_v1  ;;  %v458_v57 = vmul.f32 %v784_v48, %v955_v1  ;;  %v459_v62 = vmul.f32 %v787_v54, %v955_v1  ;;  %v795_v3 = vunpack.c.l.bf16 %v835_v49  ;;  %v365_v41 = vld [vmem:[%s949_s26 + $0x98] sm:$0xff]  ;;  %v366_v46 = vld [vmem:[%s949_s26 + $0xa0] sm:$0xff] }
  0x1d   : > { %559 = vst.msk [vmem:[%s984_s7 + $0x30] sm:$0xff] %vm552_vm0, %v526_v50  ;;  %560 = vst.msk [vmem:[%s984_s7 + $0x38] sm:$0xff] %vm552_vm0, %v527_v51  ;;  %v460_v63 = vmul.f32 %v788_v55, %v955_v1  ;;  %v796_v4 = vunpack.c.h.bf16 %v835_v49  ;;  %v461_v7 = vmul.f32 %v791_v60, %v955_v1  ;;  %v462_v8 = vmul.f32 %v792_v61, %v955_v1  ;;  %v367_v47 = vld [vmem:[%s949_s26 + $0xa8] sm:$0xff]  ;;  %v368_v54 = vld [vmem:[%s949_s26 + $0xb0] sm:$0xff] }
  0x1e   : > { %v489_v5 = vadd.f32 %v457_v56, %v354_v52  ;;  %v490_v6 = vadd.f32 %v458_v57, %v355_v53  ;;  %v491_v11 = vadd.f32 %v459_v62, %v356_v58  ;;  %v463_v13 = vmul.f32 %v795_v3, %v955_v1  ;;  %v369_v55 = vld [vmem:[%s949_s26 + $0xb8] sm:$0xff]  ;;  %v840_v60 = vld [vmem:[%s942_s23 + $0x60] sm:$0xff]  }
  0x1f   : > { %v492_v12 = vadd.f32 %v460_v63, %v357_v59  ;;  %v464_v14 = vmul.f32 %v796_v4, %v955_v1  ;;  %v493_v19 = vadd.f32 %v461_v7, %v358_v0  ;;  %v494_v20 = vadd.f32 %v462_v8, %v359_v2  ;;  %v841_v2 = vld [vmem:[%s942_s23 + $0x68] sm:$0xff]   ;;  %v842_v7 = vld [vmem:[%s942_s23 + $0x70] sm:$0xff]  }
  0x20   : > { %v528_v16 = vadd.f32 %v969_v17, %v489_v5  ;;  %v529_v18 = vadd.f32 %v969_v17, %v490_v6  ;;  %v530_v22 = vadd.f32 %v969_v17, %v491_v11  ;;  %v495_v24 = vadd.f32 %v463_v13, %v360_v9 }
  0x21   : > { %v531_v23 = vadd.f32 %v969_v17, %v492_v12  ;;  %v496_v25 = vadd.f32 %v464_v14, %v361_v10  ;;  %v532_v27 = vadd.f32 %v969_v17, %v493_v19  ;;  %v533_v28 = vadd.f32 %v969_v17, %v494_v20  ;;  %v843_v12 = vld [vmem:[%s942_s23 + $0x78] sm:$0xff]  }
  0x22   : > { %561 = vst.msk [vmem:[%s984_s7 + $0x40] sm:$0xff] %vm552_vm0, %v528_v16  ;;  %562 = vst.msk [vmem:[%s984_s7 + $0x48] sm:$0xff] %vm552_vm0, %v529_v18  ;;  %v799_v29 = vunpack.c.l.bf16 %v836_v15  ;;  %v800_v30 = vunpack.c.h.bf16 %v836_v15  ;;  %v534_v32 = vadd.f32 %v969_v17, %v495_v24  ;;  %v803_v36 = vunpack.c.l.bf16 %v837_v21  ;;  %v370_v15 = vld [vmem:[%s949_s26 + $0xc0] sm:$0xff]  ;;  %v371_v16 = vld [vmem:[%s949_s26 + $0xc8] sm:$0xff] }
  0x23   : > { %563 = vst.msk [vmem:[%s984_s7 + $0x50] sm:$0xff] %vm552_vm0, %v530_v22  ;;  %564 = vst.msk [vmem:[%s984_s7 + $0x58] sm:$0xff] %vm552_vm0, %v531_v23  ;;  %v535_v33 = vadd.f32 %v969_v17, %v496_v25  ;;  %v804_v37 = vunpack.c.h.bf16 %v837_v21  ;;  %v807_v42 = vunpack.c.l.bf16 %v838_v26  ;;  %v808_v43 = vunpack.c.h.bf16 %v838_v26  ;;  %v372_v22 = vld [vmem:[%s949_s26 + $0xd0] sm:$0xff]  ;;  %v373_v23 = vld [vmem:[%s949_s26 + $0xd8] sm:$0xff] }
  0x24   : > { %565 = vst.msk [vmem:[%s984_s7 + $0x60] sm:$0xff] %vm552_vm0, %v532_v27  ;;  %566 = vst.msk [vmem:[%s984_s7 + $0x68] sm:$0xff] %vm552_vm0, %v533_v28  ;;  %v465_v38 = vmul.f32 %v799_v29, %v955_v1  ;;  %v466_v39 = vmul.f32 %v800_v30, %v955_v1  ;;  %v467_v44 = vmul.f32 %v803_v36, %v955_v1  ;;  %v811_v48 = vunpack.c.l.bf16 %v839_v31  ;;  %v374_v28 = vld [vmem:[%s949_s26 + $0xe0] sm:$0xff]  ;;  %v375_v29 = vld [vmem:[%s949_s26 + $0xe8] sm:$0xff] }
  0x25   : > { %567 = vst.msk [vmem:[%s984_s7 + $0x70] sm:$0xff] %vm552_vm0, %v534_v32  ;;  %568 = vst.msk [vmem:[%s984_s7 + $0x78] sm:$0xff] %vm552_vm0, %v535_v33  ;;  %v468_v45 = vmul.f32 %v804_v37, %v955_v1  ;;  %v812_v49 = vunpack.c.h.bf16 %v839_v31  ;;  %v469_v52 = vmul.f32 %v807_v42, %v955_v1  ;;  %v470_v53 = vmul.f32 %v808_v43, %v955_v1  ;;  %v376_v36 = vld [vmem:[%s949_s26 + $0xf0] sm:$0xff]  ;;  %v377_v37 = vld [vmem:[%s949_s26 + $0xf8] sm:$0xff] }
  0x26   : > { %v497_v50 = vadd.f32 %v465_v38, %v362_v34  ;;  %v498_v51 = vadd.f32 %v466_v39, %v363_v35  ;;  %v499_v56 = vadd.f32 %v467_v44, %v364_v40  ;;  %v471_v58 = vmul.f32 %v811_v48, %v955_v1 }
  0x27   : > { %v500_v57 = vadd.f32 %v468_v45, %v365_v41  ;;  %v472_v59 = vmul.f32 %v812_v49, %v955_v1  ;;  %v501_v63 = vadd.f32 %v469_v52, %v366_v46  ;;  %v502_v0 = vadd.f32 %v470_v53, %v367_v47 }
  0x28   : > { %v536_v61 = vadd.f32 %v969_v17, %v497_v50  ;;  %v537_v62 = vadd.f32 %v969_v17, %v498_v51  ;;  %v538_v3 = vadd.f32 %v969_v17, %v499_v56  ;;  %v503_v5 = vadd.f32 %v471_v58, %v368_v54 }
  0x29   : > { %v539_v4 = vadd.f32 %v969_v17, %v500_v57  ;;  %v504_v6 = vadd.f32 %v472_v59, %v369_v55  ;;  %v540_v8 = vadd.f32 %v969_v17, %v501_v63  ;;  %v541_v9 = vadd.f32 %v969_v17, %v502_v0 }
  0x2a   : > { %569 = vst.msk [vmem:[%s984_s7 + $0x80] sm:$0xff] %vm552_vm0, %v536_v61  ;;  %570 = vst.msk [vmem:[%s984_s7 + $0x88] sm:$0xff] %vm552_vm0, %v537_v62  ;;  %v815_v10 = vunpack.c.l.bf16 %v840_v60  ;;  %v816_v11 = vunpack.c.h.bf16 %v840_v60  ;;  %v542_v13 = vadd.f32 %v969_v17, %v503_v5  ;;  %v819_v18 = vunpack.c.l.bf16 %v841_v2 }
  0x2b   : > { %571 = vst.msk [vmem:[%s984_s7 + $0x90] sm:$0xff] %vm552_vm0, %v538_v3  ;;  %572 = vst.msk [vmem:[%s984_s7 + $0x98] sm:$0xff] %vm552_vm0, %v539_v4  ;;  %v543_v14 = vadd.f32 %v969_v17, %v504_v6  ;;  %v820_v19 = vunpack.c.h.bf16 %v841_v2  ;;  %v823_v24 = vunpack.c.l.bf16 %v842_v7  ;;  %v824_v25 = vunpack.c.h.bf16 %v842_v7 }
  0x2c   : > { %573 = vst.msk [vmem:[%s984_s7 + $0xa0] sm:$0xff] %vm552_vm0, %v540_v8  ;;  %574 = vst.msk [vmem:[%s984_s7 + $0xa8] sm:$0xff] %vm552_vm0, %v541_v9  ;;  %v473_v20 = vmul.f32 %v815_v10, %v955_v1  ;;  %v474_v21 = vmul.f32 %v816_v11, %v955_v1  ;;  %v475_v26 = vmul.f32 %v819_v18, %v955_v1  ;;  %v827_v30 = vunpack.c.l.bf16 %v843_v12 }
  0x2d   : > { %575 = vst.msk [vmem:[%s984_s7 + $0xb0] sm:$0xff] %vm552_vm0, %v542_v13  ;;  %576 = vst.msk [vmem:[%s984_s7 + $0xb8] sm:$0xff] %vm552_vm0, %v543_v14  ;;  %v476_v27 = vmul.f32 %v820_v19, %v955_v1  ;;  %v828_v31 = vunpack.c.h.bf16 %v843_v12  ;;  %v477_v34 = vmul.f32 %v823_v24, %v955_v1  ;;  %v478_v35 = vmul.f32 %v824_v25, %v955_v1 }
  0x2e   : > { %v505_v32 = vadd.f32 %v473_v20, %v370_v15  ;;  %v506_v33 = vadd.f32 %v474_v21, %v371_v16  ;;  %v507_v38 = vadd.f32 %v475_v26, %v372_v22  ;;  %v479_v40 = vmul.f32 %v827_v30, %v955_v1 }
  0x2f   : > { %v508_v39 = vadd.f32 %v476_v27, %v373_v23  ;;  %v480_v41 = vmul.f32 %v828_v31, %v955_v1  ;;  %v509_v44 = vadd.f32 %v477_v34, %v374_v28  ;;  %v510_v45 = vadd.f32 %v478_v35, %v375_v29 }
  0x30   : > { %v544_v42 = vadd.f32 %v969_v17, %v505_v32  ;;  %v545_v43 = vadd.f32 %v969_v17, %v506_v33  ;;  %v546_v46 = vadd.f32 %v969_v17, %v507_v38  ;;  %v511_v48 = vadd.f32 %v479_v40, %v376_v36 }
  0x31   : > { %v547_v47 = vadd.f32 %v969_v17, %v508_v39  ;;  %v512_v49 = vadd.f32 %v480_v41, %v377_v37  ;;  %v548_v1 = vadd.f32 %v969_v17, %v509_v44  ;;  %v549_v50 = vadd.f32 %v969_v17, %v510_v45 }
  0x32   : > { %577 = vst.msk [vmem:[%s984_s7 + $0xc0] sm:$0xff] %vm552_vm0, %v544_v42  ;;  %578 = vst.msk [vmem:[%s984_s7 + $0xc8] sm:$0xff] %vm552_vm0, %v545_v43  ;;  %v550_v51 = vadd.f32 %v969_v17, %v511_v48 }
  0x33   : > { %579 = vst.msk [vmem:[%s984_s7 + $0xd0] sm:$0xff] %vm552_vm0, %v546_v46  ;;  %580 = vst.msk [vmem:[%s984_s7 + $0xd8] sm:$0xff] %vm552_vm0, %v547_v47  ;;  %v551_v52 = vadd.f32 %v969_v17, %v512_v49 }
  0x34   : > { %581 = vst.msk [vmem:[%s984_s7 + $0xe0] sm:$0xff] %vm552_vm0, %v548_v1  ;;  %582 = vst.msk [vmem:[%s984_s7 + $0xe8] sm:$0xff] %vm552_vm0, %v549_v50 }
  0x35   : > { %583 = vst.msk [vmem:[%s984_s7 + $0xf0] sm:$0xff] %vm552_vm0, %v550_v51  ;;  %584 = vst.msk [vmem:[%s984_s7 + $0xf8] sm:$0xff] %vm552_vm0, %v551_v52 }
  0x36 PF: > { %s14_s17 = sadd.s32 1, %s890_s17   ;;  %s1158_s15 = smov %s886_s16 }
  0x37   : > { %p11_p5 = scmp.ge.s32.totalorder %s14_s17, 4   ;;  %s1159_s16 = smov %s1161_s18 }
  0x39   :  { %13 = sbr.rel (!%p11_p5) target bundleno = 2 (0x2), region = 75 }

// kernel: residual_block_forward.2
= control target key start
LH: loop header
LB: loop body
LE: loop exit
PB: predicated region body
PF: predicated region fallthrough
CT: control target
= control target key end

     0   :  { %s4339_s12 = smov 0   ;;  %s4341_s13 = smov 0   ;;  %s6276_s0 = inlined_call_operand.vmem [shape: bf16[2,18,18,16], index: 0, kind: input, shape index: {}]   ;;  %s6277_s1 = inlined_call_operand.vmem [shape: bf16[144,16], index: 1, kind: input, shape index: {}]   ;;  %s6278_s2 = inlined_call_operand.vmem [shape: bf16[2,16,16,16], index: 2, kind: output, shape index: {0}]   ;;  %s6279_s3 = inlined_call_operand.vmem [shape: f32[2,2,16], index: 3, kind: output, shape index: {1}]  }
   0x1   :  { %s4343_s14 = smov 0  }
   0x2 LB: > { %s33_s15 = sadd.s32 1, %s4304_s13  ;;  %p3756_p0 = scmp.ge.s32.totalorder %s4308_s14, 1  ;;  %s4308_s14 = sphi %s4343_s14, %s14_s14   ;;  %s4304_s13 = sphi %s4341_s13, %s6360_s13   ;;  %s4300_s12 = sphi %s4339_s12, %s6359_s12  }
   0x3   : > { %p35_p1 = scmp.ge.s32.totalorder %s33_s15, 2  ;;  %p174_p2 = scmp.lt.s32.totalorder %s4308_s14, 3 }
   0x5   : > { %s6362_s15 = smov (%p35_p1, %s33_s15), 0  ;;  %p175_p3 = pnand %p3756_p0, %p174_p2 }
   0x7   : > { %178 = sbr.rel (%p175_p3) target bundleno = 678 (0x2a6), region = 28 }
   0xe   : > { %p217_p4 = scmp.lt.s32.totalorder %s4300_s12, 1  ;;  %vm735_vm0 = vcmask 1042432   ;;  %vm300_vm1 = vsmask.f32 3328  ;;  %vm736_vm2 = vcmask 1046532   ;;  %s4310_s20 = smov 48  }
   0xf   : > { %vm301_vm3 = vsmask.f32 7440  ;;  %vm4390_vm4 = vmor %vm735_vm0, %vm736_vm2  ;;  %s4311_s21 = smov 96   ;;  %s4312_s22 = smov 32   ;;  %vm2698_vm6 = vcmask 130048   ;;  %vm2747_vm7 = vcmask 261120  }
  0x10   : > { %s6364_s12 = smov (!%p217_p4, %s4300_s12), 1  ;;  %vm4418_vm5 = vmor %vm300_vm1, %vm301_vm3  ;;  %s4313_s23 = smov 80   ;;  %vm2780_vm8 = vcmask 392192   ;;  %vm2813_vm9 = vcmask 523264   ;;  %vm2846_vm10 = vcmask 654336   ;;  %vm2879_vm11 = vcmask 785408  }
  0x11   : > { %s4159_s16 = smul.u32 216, %s6364_s12  ;;  %s4314_s24 = smov 64   ;;  %vm2912_vm12 = vcmask 916480   ;;  %vm3370_vm13 = vcmask 125952   ;;  %vm3579_vm14 = vcmask 123904   ;;  %vm3573_vm15 = vcmask 1040384  }
  0x12   : > { %s4315_s25 = smov 16   ;;  %s4316_s26 = smov 112  }
  0x13   : > { %s4363_s19 = scalar_lea.vmem %s6276_s0, %s4159_s16 }
  0x14   : > { %v3777_v0 = vld [vmem:[%s4363_s19 + $0xc] sm:$0xf]  ;;  %v3778_v1 = vld [vmem:[%s4363_s19 + $0x10] sm:$0xf]  ;;  %v4368_v2 = vld [vmem:[%s4363_s19 + $0x18] sm:$0xf] }
  0x15   : > { %v916_v3 = vshrl.u32 %v3778_v1, 16  ;;  %v3953_v4 = vcombine.low %v3777_v0, %v3778_v1  ;;  %v903_v5 = vshrl.u32 %v3777_v0, 16  ;;  %v4371_v6 = vld [vmem:[%s4363_s19 + $0x1c] sm:$0xf]  ;;  %v912_v7 = vshll.u32 %v3778_v1, 16 }
  0x16   : > { %v906_v8 = vshll.u32 %v3777_v0, 16  ;;  %v1499_v9 = vshrl.u32 %v4368_v2, 16  ;;  %v1502_v10 = vshll.u32 %v4368_v2, 16  ;;  %v4376_v11 = vld [vmem:[%s4363_s19] sm:$0xf]  ;;  %v1512_v13 = vshrl.u32 %v4371_v6, 16 }
  0x17   : > { %2298 = vrot.lane.b32.xlu1 %v3953_v4, %s4310_s20  ;;  %v905_v12 = vrot.slane %v903_v5, 4  ;;  %v4001_v14 = vcombine.low %v4368_v2, %v4371_v6  ;;  %v4383_v15 = vld [vmem:[%s4363_s19 + $0x4] sm:$0xf]  ;;  %v4386_v16 = vld [vmem:[%s4363_s19 + $0x8] sm:$0x1]  ;;  %v918_v18 = vrot.slane %v916_v3, 4 }
  0x18   : > { %v908_v19 = vrot.slane %v906_v8, 5  ;;  %v3761_v20 = vrot.slane %v4376_v11, 9  ;;  %v740_v21 = vrot.slane %v4383_v15, 5  ;;  %v4397_v22 = vld [vmem:[%s4363_s19 + $0x18] sm:$0xf]  ;;  %v323_v23 = vshll.u32 %v4386_v16, 16 }
  0x19   : > { %v743_v24 = vrot.slane %v4386_v16, 5  ;;  %v4402_v25 = vld [vmem:[%s4363_s19 + $0x1c] sm:$0xf]  ;;  %v927_v26 = vshrl.u32 %v4397_v22, 16  ;;  %v3825_v27 = vrot.slane %v3777_v0, 9  ;;  %v930_v30 = vshll.u32 %v4397_v22, 16 }
  0x1a   : > { %v741_v28 = vsel %vm4390_vm4, %v3761_v20, %v740_v21  ;;  %v742_v29 = vrot.slane %v740_v21, 4  ;;  %v3954_v31 = vcombine.low %v4397_v22, %v4402_v25  ;;  %v3779_v32 = vld [vmem:[%s4363_s19 + $0x14] sm:$0x1]  ;;  %v255_v33 = vld [vmem:[%s4363_s19 + $0xc] sm:$0xf]  ;;  %v1336_v34 = vrot.slane %v3778_v1, 5 }
  0x1b   : > { %2538 = vrot.lane.b32.xlu1 %v4001_v14, %s4311_s21  ;;  %v1339_v35 = vrot.slane %v3779_v32, 5  ;;  %v909_v36 = vor.u32 %v908_v19, %v905_v12  ;;  %v914_v37 = vrot.slane %v912_v7, 5  ;;  %v256_v38 = vld [vmem:[%s4363_s19 + $0x10] sm:$0xf]  ;;  %v922_v41 = vshll.u32 %v3779_v32, 16 }
  0x1c   : > { %v744_v39 = vsel %vm4390_vm4, %v742_v29, %v743_v24  ;;  %v257_v42 = vld [vmem:[%s4363_s19 + $0x14] sm:$0x1]  ;;  %v3762_v43 = vrot.slane %v255_v33, 9  ;;  %v747_v44 = vrot.slane %v256_v38, 5  ;;  %v1337_v46 = vsel %vm4390_vm4, %v3825_v27, %v1336_v34  ;;  %v4443_v24 = vld [vmem:[%s4363_s19 + $0x20] sm:$0x1] }
  0x1d   : > { %v3937_v45 = vcombine.low %v741_v28, %v744_v39  ;;  %v1338_v47 = vrot.slane %v1336_v34, 4  ;;  %v910_v48 = vrot.slane %v909_v36, 4  ;;  %v919_v49 = vor.u32 %v918_v18, %v914_v37  ;;  %v3843_v39 = vld [vmem:[%s4363_s19 + $0x20] sm:$0x1] }
  0x1e   : > { %v924_v50 = vrot.slane %v922_v41, 5  ;;  %v748_v51 = vsel %vm4390_vm4, %v3762_v43, %v747_v44  ;;  %v749_v52 = vrot.slane %v747_v44, 4  ;;  %v750_v55 = vrot.slane %v257_v42, 5 }
  0x1f   : > { %2218 = vrot.lane.b32.xlu0 %v3937_v45, %s4312_s22  ;;  %2300 = vrot.lane.b32.xlu1 %v3954_v31, %s4310_s20  ;;  %v1340_v53 = vsel %vm4390_vm4, %v1338_v47, %v1339_v35  ;;  %v915_v54 = vsel %vm4418_vm5, %v910_v48, %v914_v37  ;;  %v328_v56 = vshrl.u32 %v255_v33, 16  ;;  %v920_v58 = vrot.slane %v919_v49, 4  ;;  %v4465_v49 = vld [vmem:[%s4363_s19 + $0x24] sm:$0xf] }
  0x20   : > { %v3985_v57 = vcombine.low %v1337_v46, %v1340_v53  ;;  %v331_v59 = vshll.u32 %v255_v33, 16  ;;  %v337_v60 = vshll.u32 %v256_v38, 16  ;;  %v751_v61 = vsel %vm4390_vm4, %v749_v52, %v750_v55  ;;  %v4472_v52 = vld [vmem:[%s4363_s19 + $0x28] sm:$0xf] }
  0x21   : > { %v330_v62 = vrot.slane %v328_v56, 4  ;;  %v341_v63 = vshrl.u32 %v256_v38, 16  ;;  %v347_v0 = vshll.u32 %v257_v42, 16  ;;  %v925_v1 = vsel %vm4418_vm5, %v920_v58, %v924_v50 }
  0x22   : > { %v3938_v3 = vcombine.low %v748_v51, %v751_v61  ;;  %v333_v4 = vrot.slane %v331_v59, 5  ;;  %v339_v5 = vrot.slane %v337_v60, 5  ;;  %v3969_v7 = vcombine.low %v915_v54, %v925_v1 }
  0x23   : > { %2458 = vrot.lane.b32.xlu0 %v3985_v57, %s4313_s23  ;;  %v343_v8 = vrot.slane %v341_v63, 4  ;;  %v349_v12 = vrot.slane %v347_v0, 5  ;;  %v304_v14 = vshrl.u32 %v4376_v11, 16  ;;  %v307_v19 = vshll.u32 %v4376_v11, 16  ;;  %v4480_v57 = vld [vmem:[%s4363_s19 + $0x2c] sm:$0x1] }
  0x24   : > { %v334_v18 = vor.u32 %v333_v4, %v330_v62  ;;  %v313_v20 = vshll.u32 %v4383_v15, 16  ;;  %v317_v21 = vshrl.u32 %v4383_v15, 16  ;;  %2378 = vrot.lane.b32.xlu1 %v3969_v7, %s4314_s24  ;;  %v325_v29 = vrot.slane %v323_v23, 5 }
  0x25   : > { %v344_v27 = vor.u32 %v343_v8, %v339_v5  ;;  %v306_v28 = vrot.slane %v304_v14, 4  ;;  %v3826_v31 = vrot.slane %v4397_v22, 9  ;;  %v309_v33 = vrot.slane %v307_v19, 5 }
  0x26   : > { %v335_v32 = vrot.slane %v334_v18, 4  ;;  %v315_v11 = vrot.slane %v313_v20, 5  ;;  %v319_v34 = vrot.slane %v317_v21, 4  ;;  %v1343_v35 = vrot.slane %v4402_v25, 5  ;;  %v4498_v18 = vld [vmem:[%s4363_s19 + $0x1c] sm:$0xf] }
  0x27   : > { %2220 = vrot.lane.b32.xlu0 %v3938_v3, %s4312_s22  ;;  %v345_v15 = vrot.slane %v344_v27, 4  ;;  %v1346_v36 = vrot.slane %v4443_v24, 5  ;;  %v1501_v37 = vrot.slane %v1499_v9, 4  ;;  %v310_v23 = vor.u32 %v309_v33, %v306_v28  ;;  %v260_v28 = vld [vmem:[%s4363_s19 + $0x20] sm:$0x1] }
  0x28   : > { %v340_v16 = vsel %vm4418_vm5, %v335_v32, %v339_v5  ;;  %v320_v38 = vor.u32 %v319_v34, %v315_v11  ;;  %v1504_v41 = vrot.slane %v1502_v10, 5  ;;  %v1344_v43 = vsel %vm4390_vm4, %v3826_v31, %v1343_v35  ;;  %v4492_v5 = vld [vmem:[%s4363_s19 + $0x18] sm:$0xf] }
  0x29   : > { %v350_v42 = vsel %vm4418_vm5, %v345_v15, %v349_v12  ;;  %v1345_v44 = vrot.slane %v1343_v35, 4  ;;  %v1508_v45 = vshll.u32 %v4371_v6, 16  ;;  %v311_v46 = vrot.slane %v310_v23, 4 }
  0x2a   : > { %v3922_v9 = vcombine.low %v340_v16, %v350_v42  ;;  %v321_v47 = vrot.slane %v320_v38, 4  ;;  %v1505_v48 = vor.u32 %v1504_v41, %v1501_v37  ;;  %v1514_v50 = vrot.slane %v1512_v13, 4 }
  0x2b   : > { %v1347_v2 = vsel %vm4390_vm4, %v1345_v44, %v1346_v36  ;;  %v1510_v10 = vrot.slane %v1508_v45, 5  ;;  %v1518_v51 = vshll.u32 %v3843_v39, 16  ;;  %v316_v53 = vsel %vm4418_vm5, %v311_v46, %v315_v11  ;;  %v4511_v36 = vld [vmem:[%s4363_s19 + $0x24] sm:$0xf]  ;;  %v4525_v44 = vld [vmem:[%s4363_s19 + $0x2c] sm:$0x1] }
  0x2c   : > { %2140 = vrot.lane.b32.xlu1 %v3922_v9, %s4315_s25  ;;  %v326_v54 = vsel %vm4418_vm5, %v321_v47, %v325_v29  ;;  %v3986_v55 = vcombine.low %v1344_v43, %v1347_v2  ;;  %v1506_v56 = vrot.slane %v1505_v48, 4  ;;  %v1523_v59 = vshrl.u32 %v4465_v49, 16 }
  0x2d   : > { %v3921_v58 = vcombine.low %v316_v53, %v326_v54  ;;  %v1515_v6 = vor.u32 %v1514_v50, %v1510_v10  ;;  %v1520_v13 = vrot.slane %v1518_v51, 5  ;;  %v940_v60 = vshrl.u32 %v4402_v25, 16 }
  0x2e   : > { %v1526_v61 = vshll.u32 %v4465_v49, 16  ;;  %v1532_v62 = vshll.u32 %v4472_v52, 16  ;;  %v1536_v63 = vshrl.u32 %v4472_v52, 16  ;;  %v1511_v0 = vsel %vm4418_vm5, %v1506_v56, %v1510_v10 }
  0x2f   : > { %2138 = vrot.lane.b32.xlu0 %v3921_v58, %s4315_s25  ;;  %v1516_v1 = vrot.slane %v1515_v6, 4  ;;  %v1525_v3 = vrot.slane %v1523_v59, 4  ;;  %v1542_v4 = vshll.u32 %v4480_v57, 16  ;;  %v929_v14 = vrot.slane %v927_v26, 4 }
  0x30   : > { %2460 = vrot.lane.b32.xlu1 %v3986_v55, %s4313_s23  ;;  %v1528_v7 = vrot.slane %v1526_v61, 5  ;;  %v1534_v8 = vrot.slane %v1532_v62, 5  ;;  %v1538_v12 = vrot.slane %v1536_v63, 4  ;;  %v932_v21 = vrot.slane %v930_v30, 5 }
  0x31   : > { %v1521_v19 = vsel %vm4418_vm5, %v1516_v1, %v1520_v13  ;;  %v1544_v20 = vrot.slane %v1542_v4, 5  ;;  %v936_v27 = vshll.u32 %v4402_v25, 16  ;;  %v942_v33 = vrot.slane %v940_v60, 4  ;;  %v4545_v1 = vld [vmem:[%s4363_s19 + $0x30] sm:$0xf] }
  0x32   : > { %v4017_v29 = vcombine.low %v1511_v0, %v1521_v19  ;;  %v1529_v31 = vor.u32 %v1528_v7, %v1525_v3  ;;  %v1539_v32 = vor.u32 %v1538_v12, %v1534_v8  ;;  %v933_v11 = vor.u32 %v932_v21, %v929_v14  ;;  %v4549_v14 = vld [vmem:[%s4363_s19 + $0x34] sm:$0xf] }
  0x33   : > { %v938_v26 = vrot.slane %v936_v27, 5  ;;  %v946_v34 = vshll.u32 %v4443_v24, 16  ;;  %v3763_v15 = vrot.slane %v4492_v5, 9  ;;  %v754_v25 = vrot.slane %v4498_v18, 5  ;;  %v4516_v24 = vld [vmem:[%s4363_s19 + $0x28] sm:$0xf] }
  0x34   : > { %2618 = vrot.lane.b32.xlu0 %v4017_v29, %s4316_s26  ;;  %v1530_v22 = vrot.slane %v1529_v31, 4  ;;  %v1540_v30 = vrot.slane %v1539_v32, 4  ;;  %v757_v35 = vrot.slane %v260_v28, 5  ;;  %v934_v37 = vrot.slane %v933_v11, 4  ;;  %v4553_v27 = vld [vmem:[%s4363_s19 + $0x24] sm:$0xf] }
  0x35   : > { %v943_v16 = vor.u32 %v942_v33, %v938_v26  ;;  %v948_v23 = vrot.slane %v946_v34, 5  ;;  %v4002_v38 = vcombine.low %v4465_v49, %v4472_v52  ;;  %v755_v42 = vsel %vm4390_vm4, %v3763_v15, %v754_v25  ;;  %v4565_v33 = vld [vmem:[%s4363_s19 + $0x2c] sm:$0x1] }
  0x36   : > { %v1535_v39 = vsel %vm4418_vm5, %v1530_v22, %v1534_v8  ;;  %v1545_v41 = vsel %vm4418_vm5, %v1540_v30, %v1544_v20  ;;  %v756_v43 = vrot.slane %v754_v25, 4  ;;  %v939_v9 = vsel %vm4418_vm5, %v934_v37, %v938_v26 }
  0x37   : > { %v4018_v45 = vcombine.low %v1535_v39, %v1545_v41  ;;  %v944_v46 = vrot.slane %v943_v16, 4  ;;  %v951_v47 = vshrl.u32 %v4511_v36, 16  ;;  %v954_v49 = vshll.u32 %v4511_v36, 16  ;;  %v4580_v39 = vld [vmem:[%s4363_s19 + $0x30] sm:$0xf] }
  0x38   : > { %v758_v48 = vsel %vm4390_vm4, %v756_v43, %v757_v35  ;;  %v960_v2 = vshll.u32 %v4516_v24, 16  ;;  %v964_v10 = vshrl.u32 %v4516_v24, 16  ;;  %v970_v53 = vshll.u32 %v4525_v44, 16 }
  0x39   : > { %2620 = vrot.lane.b32.xlu1 %v4018_v45, %s4316_s26  ;;  %v949_v50 = vsel %vm4418_vm5, %v944_v46, %v948_v23  ;;  %v3939_v51 = vcombine.low %v755_v42, %v758_v48  ;;  %v953_v52 = vrot.slane %v951_v47, 4  ;;  %v956_v55 = vrot.slane %v954_v49, 5  ;;  %v4588_v49 = vld [vmem:[%s4363_s19 + $0x34] sm:$0xf] }
  0x3a   : > { %v3970_v54 = vcombine.low %v939_v9, %v949_v50  ;;  %v962_v56 = vrot.slane %v960_v2, 5  ;;  %v966_v58 = vrot.slane %v964_v10, 4  ;;  %v972_v6 = vrot.slane %v970_v53, 5 }
  0x3b   : > { %v352_v13 = vshrl.u32 %v4492_v5, 16  ;;  %v355_v59 = vshll.u32 %v4492_v5, 16  ;;  %v361_v60 = vshll.u32 %v4498_v18, 16  ;;  %v957_v61 = vor.u32 %v956_v55, %v953_v52 }
  0x3c   : > { %2380 = vrot.lane.b32.xlu0 %v3970_v54, %s4314_s24  ;;  %v967_v62 = vor.u32 %v966_v58, %v962_v56  ;;  %v365_v63 = vshrl.u32 %v4498_v18, 16  ;;  %v371_v0 = vshll.u32 %v260_v28, 16  ;;  %v1547_v21 = vshrl.u32 %v4545_v1, 16  ;;  %v4556_v18 = vld [vmem:[%s4363_s19 + $0x28] sm:$0xf] }
  0x3d   : > { %2222 = vrot.lane.b32.xlu1 %v3939_v51, %s4312_s22  ;;  %v354_v3 = vrot.slane %v352_v13, 4  ;;  %v357_v4 = vrot.slane %v355_v59, 5  ;;  %v363_v7 = vrot.slane %v361_v60, 5  ;;  %v958_v5 = vrot.slane %v957_v61, 4  ;;  %v4598_v54 = vld [vmem:[%s4363_s19 + $0x38] sm:$0x1] }
  0x3e   : > { %v968_v8 = vrot.slane %v967_v62, 4  ;;  %v367_v12 = vrot.slane %v365_v63, 4  ;;  %v373_v20 = vrot.slane %v371_v0, 5  ;;  %v1550_v32 = vshll.u32 %v4545_v1, 16 }
  0x3f   : > { %v358_v19 = vor.u32 %v357_v4, %v354_v3  ;;  %v963_v28 = vsel %vm4418_vm5, %v958_v5, %v962_v56  ;;  %v1560_v34 = vshrl.u32 %v4549_v14, 16  ;;  %v4003_v15 = vcombine.low %v4545_v1, %v4549_v14  ;;  %v3788_v3 = vld [vmem:[%s4363_s19 + $0x38] sm:$0x1] }
  0x40   : > { %2540 = vrot.lane.b32.xlu0 %v4002_v38, %s4311_s21  ;;  %v973_v29 = vsel %vm4418_vm5, %v968_v8, %v972_v6  ;;  %v368_v31 = vor.u32 %v367_v12, %v363_v7  ;;  %v376_v30 = vshrl.u32 %v4553_v27, 16  ;;  %v379_v25 = vshll.u32 %v4553_v27, 16 }
  0x41   : > { %v3971_v11 = vcombine.low %v963_v28, %v973_v29  ;;  %v359_v26 = vrot.slane %v358_v19, 4  ;;  %v385_v35 = vshll.u32 %v4556_v18, 16  ;;  %v389_v16 = vshrl.u32 %v4556_v18, 16  ;;  %v4616_v28 = vld [vmem:[%s4363_s19 + $0x3c] sm:$0xf] }
  0x42   : > { %v369_v22 = vrot.slane %v368_v31, 4  ;;  %v395_v23 = vshll.u32 %v4565_v33, 16  ;;  %v3827_v38 = vrot.slane %v4511_v36, 9  ;;  %v378_v42 = vrot.slane %v376_v30, 4 }
  0x43   : > { %2382 = vrot.lane.b32.xlu1 %v3971_v11, %s4314_s24  ;;  %v364_v37 = vsel %vm4418_vm5, %v359_v26, %v363_v7  ;;  %v381_v43 = vrot.slane %v379_v25, 5  ;;  %v387_v45 = vrot.slane %v385_v35, 5  ;;  %v3955_v46 = vcombine.low %v4511_v36, %v4516_v24  ;;  %v4621_v26 = vld [vmem:[%s4363_s19 + $0x40] sm:$0xf]  ;;  %v4630_v25 = vld [vmem:[%s4363_s19 + $0x44] sm:$0x1] }
  0x44   : > { %v374_v41 = vsel %vm4418_vm5, %v369_v22, %v373_v20  ;;  %v391_v47 = vrot.slane %v389_v16, 4  ;;  %v1350_v48 = vrot.slane %v4516_v24, 5  ;;  %v397_v10 = vrot.slane %v395_v23, 5 }
  0x45   : > { %v3923_v9 = vcombine.low %v364_v37, %v374_v41  ;;  %v382_v2 = vor.u32 %v381_v43, %v378_v42  ;;  %v1353_v50 = vrot.slane %v4525_v44, 5  ;;  %v975_v51 = vshrl.u32 %v4580_v39, 16 }
  0x46   : > { %v392_v52 = vor.u32 %v391_v47, %v387_v45  ;;  %v1351_v53 = vsel %vm4390_vm4, %v3827_v38, %v1350_v48  ;;  %v1352_v36 = vrot.slane %v1350_v48, 4  ;;  %v978_v24 = vshll.u32 %v4580_v39, 16  ;;  %v276_v47 = vld [vmem:[%s4363_s19 + $0x60] sm:$0xf] }
  0x47   : > { %2142 = vrot.lane.b32.xlu0 %v3923_v9, %s4315_s25  ;;  %2542 = vrot.lane.b32.xlu1 %v4003_v15, %s4311_s21  ;;  %v383_v55 = vrot.slane %v382_v2, 4  ;;  %v988_v56 = vshrl.u32 %v4588_v49, 16  ;;  %v1549_v44 = vrot.slane %v1547_v21, 4  ;;  %v1552_v58 = vrot.slane %v1550_v32, 5 }
  0x48   : > { %v393_v6 = vrot.slane %v392_v52, 4  ;;  %v1354_v13 = vsel %vm4390_vm4, %v1352_v36, %v1353_v50  ;;  %v1556_v59 = vshll.u32 %v4549_v14, 16  ;;  %v1562_v60 = vrot.slane %v1560_v34, 4  ;;  %v277_v52 = vld [vmem:[%s4363_s19 + $0x64] sm:$0xf] }
  0x49   : > { %v388_v61 = vsel %vm4418_vm5, %v383_v55, %v387_v45  ;;  %v3956_v62 = vcombine.low %v4580_v39, %v4588_v49  ;;  %v1553_v63 = vor.u32 %v1552_v58, %v1549_v44  ;;  %v1566_v0 = vshll.u32 %v4598_v54, 16 }
  0x4a   : > { %v398_v4 = vsel %vm4418_vm5, %v393_v6, %v397_v10  ;;  %v3987_v7 = vcombine.low %v1351_v53, %v1354_v13  ;;  %v1558_v5 = vrot.slane %v1556_v59, 5  ;;  %v3828_v8 = vrot.slane %v4580_v39, 9 }
  0x4b   : > { %2302 = vrot.lane.b32.xlu0 %v3955_v46, %s4310_s20  ;;  %v3924_v12 = vcombine.low %v388_v61, %v398_v4  ;;  %v1554_v19 = vrot.slane %v1553_v63, 4  ;;  %v1568_v20 = vrot.slane %v1566_v0, 5  ;;  %v1357_v21 = vrot.slane %v4588_v49, 5  ;;  %v278_v63 = vld [vmem:[%s4363_s19 + $0x68] sm:$0x1] }
  0x4c   : > { %v1563_v29 = vor.u32 %v1562_v60, %v1558_v5  ;;  %v1360_v31 = vrot.slane %v3788_v3, 5  ;;  %v3764_v32 = vrot.slane %v4553_v27, 9  ;;  %v761_v11 = vrot.slane %v4556_v18, 5 }
  0x4d   : > { %2144 = vrot.lane.b32.xlu1 %v3924_v12, %s4315_s25  ;;  %v1559_v34 = vsel %vm4418_vm5, %v1554_v19, %v1558_v5  ;;  %v1358_v15 = vsel %vm4390_vm4, %v3828_v8, %v1357_v21  ;;  %v1359_v22 = vrot.slane %v1357_v21, 4  ;;  %v764_v30 = vrot.slane %v4565_v33, 5 }
  0x4e   : > { %v1564_v27 = vrot.slane %v1563_v29, 4  ;;  %v762_v18 = vsel %vm4390_vm4, %v3764_v32, %v761_v11  ;;  %v763_v35 = vrot.slane %v761_v11, 4  ;;  %v1571_v37 = vshrl.u32 %v4616_v28, 16  ;;  %v264_v11 = vld [vmem:[%s4363_s19 + $0x30] sm:$0xf] }
  0x4f   : > { %2462 = vrot.lane.b32.xlu0 %v3987_v7, %s4313_s23  ;;  %v1361_v16 = vsel %vm4390_vm4, %v1359_v22, %v1360_v31  ;;  %v1574_v23 = vshll.u32 %v4616_v28, 16  ;;  %v1580_v33 = vshll.u32 %v4621_v26, 16  ;;  %v1584_v38 = vshrl.u32 %v4621_v26, 16 }
  0x50   : > { %v1569_v39 = vsel %vm4418_vm5, %v1564_v27, %v1568_v20  ;;  %v765_v41 = vsel %vm4390_vm4, %v763_v35, %v764_v30  ;;  %v1573_v42 = vrot.slane %v1571_v37, 4  ;;  %v3988_v45 = vcombine.low %v1358_v15, %v1361_v16  ;;  %v265_v27 = vld [vmem:[%s4363_s19 + $0x34] sm:$0xf] }
  0x51   : > { %2304 = vrot.lane.b32.xlu1 %v3956_v62, %s4310_s20  ;;  %v4019_v43 = vcombine.low %v1559_v34, %v1569_v39  ;;  %v1576_v9 = vrot.slane %v1574_v23, 5  ;;  %v1582_v46 = vrot.slane %v1580_v33, 5  ;;  %v3940_v48 = vcombine.low %v762_v18, %v765_v41 }
  0x52   : > { %v1586_v2 = vrot.slane %v1584_v38, 4  ;;  %v1590_v10 = vshll.u32 %v4630_v25, 16  ;;  %v977_v50 = vrot.slane %v975_v51, 4  ;;  %v980_v36 = vrot.slane %v978_v24, 5  ;;  %v266_v38 = vld [vmem:[%s4363_s19 + $0x38] sm:$0x1] }
  0x53   : > { %2622 = vrot.lane.b32.xlu0 %v4019_v43, %s4316_s26  ;;  %v1577_v53 = vor.u32 %v1576_v9, %v1573_v42  ;;  %v984_v55 = vshll.u32 %v4588_v49, 16  ;;  %v990_v44 = vrot.slane %v988_v56, 4  ;;  %v994_v13 = vshll.u32 %v3788_v3, 16  ;;  %v4669_v42 = vld [vmem:[%s4363_s19 + $0x6c] sm:$0xf] }
  0x54   : > { %v1587_v58 = vor.u32 %v1586_v2, %v1582_v46  ;;  %v1592_v6 = vrot.slane %v1590_v10, 5  ;;  %v496_v59 = vshrl.u32 %v276_v47, 16  ;;  %v981_v61 = vor.u32 %v980_v36, %v977_v50  ;;  %v3802_v2 = vld [vmem:[%s4363_s19 + $0x70] sm:$0xf] }
  0x55   : > { %2464 = vrot.lane.b32.xlu1 %v3988_v45, %s4313_s23  ;;  %v1578_v60 = vrot.slane %v1577_v53, 4  ;;  %v986_v62 = vrot.slane %v984_v55, 5  ;;  %v499_v0 = vshll.u32 %v276_v47, 16  ;;  %v996_v4 = vrot.slane %v994_v13, 5 }
  0x56   : > { %v1588_v51 = vrot.slane %v1587_v58, 4  ;;  %v498_v7 = vrot.slane %v496_v59, 4  ;;  %v505_v5 = vshll.u32 %v277_v52, 16  ;;  %v982_v24 = vrot.slane %v981_v61, 4 }
  0x57   : > { %2224 = vrot.lane.b32.xlu0 %v3940_v48, %s4312_s22  ;;  %v1583_v49 = vsel %vm4418_vm5, %v1578_v60, %v1582_v46  ;;  %v991_v56 = vor.u32 %v990_v44, %v986_v62  ;;  %v501_v3 = vrot.slane %v499_v0, 5  ;;  %v509_v19 = vshrl.u32 %v277_v52, 16  ;;  %v3803_v0 = vld [vmem:[%s4363_s19 + $0x74] sm:$0x1] }
  0x58   : > { %v1593_v8 = vsel %vm4418_vm5, %v1588_v51, %v1592_v6  ;;  %v507_v12 = vrot.slane %v505_v5, 5  ;;  %v515_v20 = vshll.u32 %v278_v63, 16  ;;  %v987_v29 = vsel %vm4418_vm5, %v982_v24, %v986_v62 }
  0x59   : > { %v4020_v21 = vcombine.low %v1583_v49, %v1593_v8  ;;  %v992_v31 = vrot.slane %v991_v56, 4  ;;  %v502_v32 = vor.u32 %v501_v3, %v498_v7  ;;  %v511_v34 = vrot.slane %v509_v19, 4  ;;  %v4687_v49 = vld [vmem:[%s4363_s19 + $0x3c] sm:$0xf] }
  0x5a   : > { %v517_v15 = vrot.slane %v515_v20, 5  ;;  %v4004_v22 = vcombine.low %v4616_v28, %v4621_v26  ;;  %v3769_v30 = vrot.slane %v276_v47, 9  ;;  %v796_v37 = vrot.slane %v277_v52, 5 }
  0x5b   : > { %2624 = vrot.lane.b32.xlu1 %v4020_v21, %s4316_s26  ;;  %v997_v18 = vsel %vm4418_vm5, %v992_v31, %v996_v4  ;;  %v503_v35 = vrot.slane %v502_v32, 4  ;;  %v799_v16 = vrot.slane %v278_v63, 5  ;;  %v512_v33 = vor.u32 %v511_v34, %v507_v12 }
  0x5c   : > { %v3972_v23 = vcombine.low %v987_v29, %v997_v18  ;;  %v400_v39 = vshrl.u32 %v264_v11, 16  ;;  %v403_v41 = vshll.u32 %v264_v11, 16  ;;  %v797_v26 = vsel %vm4390_vm4, %v3769_v30, %v796_v37  ;;  %v4694_v29 = vld [vmem:[%s4363_s19 + $0x40] sm:$0xf] }
  0x5d   : > { %v508_v28 = vsel %vm4418_vm5, %v503_v35, %v507_v12  ;;  %v798_v43 = vrot.slane %v796_v37, 4  ;;  %v409_v45 = vshll.u32 %v265_v27, 16  ;;  %v513_v9 = vrot.slane %v512_v33, 4 }
  0x5e   : > { %2384 = vrot.lane.b32.xlu0 %v3972_v23, %s4314_s24  ;;  %v402_v46 = vrot.slane %v400_v39, 4  ;;  %v405_v47 = vrot.slane %v403_v41, 5  ;;  %v413_v48 = vshrl.u32 %v265_v27, 16  ;;  %v419_v52 = vshll.u32 %v266_v38, 16  ;;  %v3791_v23 = vld [vmem:[%s4363_s19 + $0x44] sm:$0x1] }
  0x5f   : > { %v800_v10 = vsel %vm4390_vm4, %v798_v43, %v799_v16  ;;  %v411_v50 = vrot.slane %v409_v45, 5  ;;  %v1095_v53 = vshrl.u32 %v4669_v42, 16  ;;  %v518_v36 = vsel %vm4418_vm5, %v513_v9, %v517_v15 }
  0x60   : > { %v406_v55 = vor.u32 %v405_v47, %v402_v46  ;;  %v415_v44 = vrot.slane %v413_v48, 4  ;;  %v3929_v58 = vcombine.low %v508_v28, %v518_v36  ;;  %v3945_v6 = vcombine.low %v797_v26, %v800_v10  ;;  %v4711_v28 = vld [vmem:[%s4363_s19 + $0x78] sm:$0xf] }
  0x61   : > { %v1098_v13 = vshll.u32 %v4669_v42, 16  ;;  %v1108_v59 = vshrl.u32 %v3802_v2, 16  ;;  %v421_v62 = vrot.slane %v419_v52, 5  ;;  %v3765_v63 = vrot.slane %v264_v11, 9 }
  0x62   : > { %2544 = vrot.lane.b32.xlu0 %v4004_v22, %s4311_s21  ;;  %v407_v60 = vrot.slane %v406_v55, 4  ;;  %v416_v61 = vor.u32 %v415_v44, %v411_v50  ;;  %2154 = vrot.lane.b32.xlu1 %v3929_v58, %s4315_s25  ;;  %v768_v51 = vrot.slane %v265_v27, 5  ;;  %v771_v4 = vrot.slane %v266_v38, 5 }
  0x63   : > { %v1097_v7 = vrot.slane %v1095_v53, 4  ;;  %v1100_v5 = vrot.slane %v1098_v13, 5  ;;  %v1104_v3 = vshll.u32 %v3802_v2, 16  ;;  %v1110_v8 = vrot.slane %v1108_v59, 4 }
  0x64   : > { %v412_v24 = vsel %vm4418_vm5, %v407_v60, %v411_v50  ;;  %v417_v56 = vrot.slane %v416_v61, 4  ;;  %v769_v12 = vsel %vm4390_vm4, %v3765_v63, %v768_v51  ;;  %v770_v19 = vrot.slane %v768_v51, 4  ;;  %v3866_v50 = vld [vmem:[%s4363_s19 + $0x7c] sm:$0xf]  ;;  %v3867_v51 = vld [vmem:[%s4363_s19 + $0x80] sm:$0x1] }
  0x65   : > { %v1101_v20 = vor.u32 %v1100_v5, %v1097_v7  ;;  %v1114_v21 = vshll.u32 %v3803_v0, 16  ;;  %v1106_v32 = vrot.slane %v1104_v3, 5  ;;  %v999_v11 = vshrl.u32 %v4687_v49, 16 }
  0x66   : > { %v422_v31 = vsel %vm4418_vm5, %v417_v56, %v421_v62  ;;  %v1002_v34 = vshll.u32 %v4687_v49, 16  ;;  %2234 = vrot.lane.b32.xlu1 %v3945_v6, %s4312_s22  ;;  %v3961_v22 = vcombine.low %v4669_v42, %v3802_v2  ;;  %v772_v30 = vsel %vm4390_vm4, %v770_v19, %v771_v4  ;;  %v4734_v56 = vld [vmem:[%s4363_s19 + $0x48] sm:$0xf] }
  0x67   : > { %v3925_v15 = vcombine.low %v412_v24, %v422_v31  ;;  %v1102_v27 = vrot.slane %v1101_v20, 4  ;;  %v3941_v18 = vcombine.low %v769_v12, %v772_v30  ;;  %v1111_v35 = vor.u32 %v1110_v8, %v1106_v32  ;;  %v4743_v31 = vld [vmem:[%s4363_s19 + $0x4c] sm:$0xf]  ;;  %v280_v30 = vld [vmem:[%s4363_s19 + $0x70] sm:$0xf] }
  0x68   : > { %v1116_v37 = vrot.slane %v1114_v21, 5  ;;  %v1012_v16 = vshrl.u32 %v4694_v29, 16  ;;  %v3833_v38 = vrot.slane %v4669_v42, 9  ;;  %v1392_v39 = vrot.slane %v3802_v2, 5 }
  0x69   : > { %2146 = vrot.lane.b32.xlu0 %v3925_v15, %s4315_s25  ;;  %v1107_v33 = vsel %vm4418_vm5, %v1102_v27, %v1106_v32  ;;  %v1395_v41 = vrot.slane %v3803_v0, 5  ;;  %v1112_v26 = vrot.slane %v1111_v35, 4  ;;  %v1001_v43 = vrot.slane %v999_v11, 4 }
  0x6a   : > { %v1004_v45 = vrot.slane %v1002_v34, 5  ;;  %v1008_v9 = vshll.u32 %v4694_v29, 16  ;;  %2314 = vrot.lane.b32.xlu1 %v3961_v22, %s4310_s20  ;;  %v1393_v46 = vsel %vm4390_vm4, %v3833_v38, %v1392_v39  ;;  %v1394_v47 = vrot.slane %v1392_v39, 4  ;;  %v279_v22 = vld [vmem:[%s4363_s19 + $0x6c] sm:$0xf] }
  0x6b   : > { %v1014_v48 = vrot.slane %v1012_v16, 4  ;;  %v1018_v10 = vshll.u32 %v3791_v23, 16  ;;  %v1117_v42 = vsel %vm4418_vm5, %v1112_v26, %v1116_v37  ;;  %v1691_v53 = vshrl.u32 %v4711_v28, 16  ;;  %v281_v37 = vld [vmem:[%s4363_s19 + $0x74] sm:$0x1] }
  0x6c   : > { %v1005_v2 = vor.u32 %v1004_v45, %v1001_v43  ;;  %v1010_v52 = vrot.slane %v1008_v9, 5  ;;  %v3977_v36 = vcombine.low %v1107_v33, %v1117_v42  ;;  %v3957_v55 = vcombine.low %v4687_v49, %v4694_v29 }
  0x6d   : > { %2226 = vrot.lane.b32.xlu0 %v3941_v18, %s4312_s22  ;;  %v1396_v44 = vsel %vm4390_vm4, %v1394_v47, %v1395_v41  ;;  %v1694_v58 = vshll.u32 %v4711_v28, 16  ;;  %v1020_v59 = vrot.slane %v1018_v10, 5  ;;  %v1704_v60 = vshrl.u32 %v3866_v50, 16 }
  0x6e   : > { %v1006_v6 = vrot.slane %v1005_v2, 4  ;;  %v1015_v13 = vor.u32 %v1014_v48, %v1010_v52  ;;  %2394 = vrot.lane.b32.xlu1 %v3977_v36, %s4314_s24  ;;  %v3993_v61 = vcombine.low %v1393_v46, %v1396_v44  ;;  %v3829_v62 = vrot.slane %v4687_v49, 9 }
  0x6f   : > { %v1364_v63 = vrot.slane %v4694_v29, 5  ;;  %v1367_v0 = vrot.slane %v3791_v23, 5  ;;  %v1693_v5 = vrot.slane %v1691_v53, 4  ;;  %v1696_v24 = vrot.slane %v1694_v58, 5 }
  0x70   : > { %v1011_v4 = vsel %vm4418_vm5, %v1006_v6, %v1010_v52  ;;  %v1016_v7 = vrot.slane %v1015_v13, 4  ;;  %v4009_v3 = vcombine.low %v4711_v28, %v3866_v50  ;;  %v1700_v8 = vshll.u32 %v3866_v50, 16  ;;  %v4760_v50 = vld [vmem:[%s4363_s19 + $0x50] sm:$0x1] }
  0x71   : > { %2306 = vrot.lane.b32.xlu0 %v3957_v55, %s4310_s20  ;;  %v1366_v49 = vrot.slane %v1364_v63, 4  ;;  %v1706_v12 = vrot.slane %v1704_v60, 4  ;;  %v1365_v20 = vsel %vm4390_vm4, %v3829_v62, %v1364_v63  ;;  %v1697_v21 = vor.u32 %v1696_v24, %v1693_v5 }
  0x72   : > { %v1021_v19 = vsel %vm4418_vm5, %v1016_v7, %v1020_v59  ;;  %v1710_v29 = vshll.u32 %v3867_v51, 16  ;;  %2474 = vrot.lane.b32.xlu1 %v3993_v61, %s4313_s23  ;;  %v1702_v34 = vrot.slane %v1700_v8, 5  ;;  %v1595_v15 = vshrl.u32 %v4734_v56, 16 }
  0x73   : > { %v3973_v32 = vcombine.low %v1011_v4, %v1021_v19  ;;  %v1368_v11 = vsel %vm4390_vm4, %v1366_v49, %v1367_v0  ;;  %v1942_v27 = vrot.slane %v4480_v57, 5  ;;  %v1698_v18 = vrot.slane %v1697_v21, 4  ;;  %v267_v4 = vld [vmem:[%s4363_s19 + $0x3c] sm:$0xf]  ;;  %v268_v49 = vld [vmem:[%s4363_s19 + $0x40] sm:$0xf] }
  0x74   : > { %v1598_v35 = vshll.u32 %v4734_v56, 16  ;;  %v3989_v16 = vcombine.low %v1365_v20, %v1368_v11  ;;  %v1707_v23 = vor.u32 %v1706_v12, %v1702_v34  ;;  %v1712_v33 = vrot.slane %v1710_v29, 5 }
  0x75   : > { %2386 = vrot.lane.b32.xlu0 %v3973_v32, %s4314_s24  ;;  %v1608_v38 = vshrl.u32 %v4743_v31, 16  ;;  %v1703_v39 = vsel %vm4418_vm5, %v1698_v18, %v1702_v34  ;;  %v520_v41 = vshrl.u32 %v279_v22, 16  ;;  %v523_v28 = vshll.u32 %v279_v22, 16  ;;  %v269_v32 = vld [vmem:[%s4363_s19 + $0x44] sm:$0x1] }
  0x76   : > { %v529_v26 = vshll.u32 %v280_v30, 16  ;;  %2554 = vrot.lane.b32.xlu1 %v4009_v3, %s4311_s21  ;;  %v1708_v43 = vrot.slane %v1707_v23, 4  ;;  %v533_v45 = vshrl.u32 %v280_v30, 16  ;;  %v539_v9 = vshll.u32 %v281_v37, 16 }
  0x77   : > { %v1597_v46 = vrot.slane %v1595_v15, 4  ;;  %v522_v47 = vrot.slane %v520_v41, 4  ;;  %v525_v48 = vrot.slane %v523_v28, 5  ;;  %v1600_v42 = vrot.slane %v1598_v35, 5  ;;  %v4785_v35 = vld [vmem:[%s4363_s19 + $0x78] sm:$0xf] }
  0x78   : > { %v531_v10 = vrot.slane %v529_v26, 5  ;;  %v1713_v2 = vsel %vm4418_vm5, %v1708_v43, %v1712_v33  ;;  %v4005_v52 = vcombine.low %v4734_v56, %v4743_v31  ;;  %v535_v53 = vrot.slane %v533_v45, 4 }
  0x79   : > { %2466 = vrot.lane.b32.xlu0 %v3989_v16, %s4313_s23  ;;  %v1604_v36 = vshll.u32 %v4743_v31, 16  ;;  %v4025_v55 = vcombine.low %v1703_v39, %v1713_v2  ;;  %v526_v44 = vor.u32 %v525_v48, %v522_v47  ;;  %v1601_v58 = vor.u32 %v1600_v42, %v1597_v46  ;;  %v3806_v2 = vld [vmem:[%s4363_s19 + $0x80] sm:$0x1] }
  0x7a   : > { %v1610_v6 = vrot.slane %v1608_v38, 4  ;;  %v536_v13 = vor.u32 %v535_v53, %v531_v10  ;;  %v541_v59 = vrot.slane %v539_v9, 5  ;;  %v1614_v61 = vshll.u32 %v4760_v50, 16 }
  0x7b   : > { %v1606_v60 = vrot.slane %v1604_v36, 5  ;;  %2634 = vrot.lane.b32.xlu1 %v4025_v55, %s4316_s26  ;;  %v527_v62 = vrot.slane %v526_v44, 4  ;;  %v1602_v63 = vrot.slane %v1601_v58, 4  ;;  %v3770_v0 = vrot.slane %v279_v22, 9  ;;  %v4801_v44 = vld [vmem:[%s4363_s19 + $0x48] sm:$0xf] }
  0x7c   : > { %v803_v51 = vrot.slane %v280_v30, 5  ;;  %v537_v7 = vrot.slane %v536_v13, 4  ;;  %v1616_v24 = vrot.slane %v1614_v61, 5  ;;  %v806_v3 = vrot.slane %v281_v37, 5  ;;  %v4788_v37 = vld [vmem:[%s4363_s19 + $0x7c] sm:$0xf] }
  0x7d   : > { %2546 = vrot.lane.b32.xlu0 %v4005_v52, %s4311_s21  ;;  %v1611_v5 = vor.u32 %v1610_v6, %v1606_v60  ;;  %v532_v8 = vsel %vm4418_vm5, %v527_v62, %v531_v10  ;;  %v1607_v12 = vsel %vm4418_vm5, %v1602_v63, %v1606_v60  ;;  %v424_v11 = vshrl.u32 %v267_v4, 16 }
  0x7e   : > { %v804_v19 = vsel %vm4390_vm4, %v3770_v0, %v803_v51  ;;  %v805_v20 = vrot.slane %v803_v51, 4  ;;  %v542_v21 = vsel %vm4418_vm5, %v537_v7, %v541_v59  ;;  %v427_v34 = vshll.u32 %v267_v4, 16  ;;  %v4810_v0 = vld [vmem:[%s4363_s19 + $0x4c] sm:$0xf] }
  0x7f   : > { %v1612_v29 = vrot.slane %v1611_v5, 4  ;;  %v3930_v15 = vcombine.low %v532_v8, %v542_v21  ;;  %v433_v30 = vshll.u32 %v268_v49, 16  ;;  %v437_v18 = vshrl.u32 %v268_v49, 16 }
  0x80   : > { %v807_v22 = vsel %vm4390_vm4, %v805_v20, %v806_v3  ;;  %v426_v33 = vrot.slane %v424_v11, 4  ;;  %v429_v38 = vrot.slane %v427_v34, 5  ;;  %v443_v26 = vshll.u32 %v269_v32, 16 }
  0x81   : > { %v1617_v16 = vsel %vm4418_vm5, %v1612_v29, %v1616_v24  ;;  %v3946_v23 = vcombine.low %v804_v19, %v807_v22  ;;  %2156 = vrot.lane.b32.xlu1 %v3930_v15, %s4315_s25  ;;  %v435_v41 = vrot.slane %v433_v30, 5  ;;  %v439_v28 = vrot.slane %v437_v18, 4  ;;  %v4828_v22 = vld [vmem:[%s4363_s19 + $0x50] sm:$0x1] }
  0x82   : > { %v4021_v39 = vcombine.low %v1607_v12, %v1617_v16  ;;  %v430_v43 = vor.u32 %v429_v38, %v426_v33  ;;  %v1119_v45 = vshrl.u32 %v4785_v35, 16  ;;  %v1122_v9 = vshll.u32 %v4785_v35, 16  ;;  %v4207_v33 = vld [vmem:[%s6277_s1] sm:$0xff]  }
  0x83   : > { %v1132_v46 = vshrl.u32 %v4788_v37, 16  ;;  %v440_v47 = vor.u32 %v439_v28, %v435_v41  ;;  %v445_v48 = vrot.slane %v443_v26, 5  ;;  %v3962_v10 = vcombine.low %v4785_v35, %v4788_v37  ;;  %v4836_v38 = vld [vmem:[%s4363_s19 + $0x84] sm:$0xf] }
  0x84   : > { %2626 = vrot.lane.b32.xlu0 %v4021_v39, %s4316_s26  ;;  %v3766_v42 = vrot.slane %v267_v4, 9  ;;  %v431_v52 = vrot.slane %v430_v43, 4  ;;  %v775_v53 = vrot.slane %v268_v49, 5  ;;  %v778_v36 = vrot.slane %v269_v32, 5 }
  0x85   : > { %v1121_v55 = vrot.slane %v1119_v45, 4  ;;  %2236 = vrot.lane.b32.xlu1 %v3946_v23, %s4312_s22  ;;  %v441_v58 = vrot.slane %v440_v47, 4  ;;  %v1124_v6 = vrot.slane %v1122_v9, 5  ;;  %v1128_v13 = vshll.u32 %v4788_v37, 16  ;;  %v4847_v9 = vld [vmem:[%s4363_s19 + $0x88] sm:$0xf] }
  0x86   : > { %v1134_v59 = vrot.slane %v1132_v46, 4  ;;  %v436_v60 = vsel %vm4418_vm5, %v431_v52, %v435_v41  ;;  %v776_v61 = vsel %vm4390_vm4, %v3766_v42, %v775_v53  ;;  %v777_v62 = vrot.slane %v775_v53, 4 }
  0x87   : > { %v1138_v63 = vshll.u32 %v3806_v2, 16  ;;  %v446_v51 = vsel %vm4418_vm5, %v441_v58, %v445_v48  ;;  %v1125_v4 = vor.u32 %v1124_v6, %v1121_v55  ;;  %v1130_v7 = vrot.slane %v1128_v13, 5  ;;  %v4209_v55 = vld [vmem:[%s6277_s1 + $0x8] sm:$0xff]  }
  0x88   : > { %v1023_v5 = vshrl.u32 %v4801_v44, 16  ;;  %v3926_v3 = vcombine.low %v436_v60, %v446_v51  ;;  %v779_v49 = vsel %vm4390_vm4, %v777_v62, %v778_v36  ;;  %v1026_v12 = vshll.u32 %v4801_v44, 16 }
  0x89   : > { %v4815_v24 = vpop.permute.xlu1 %2298  ;;  %v1140_v8 = vrot.slane %v1138_v63, 5  ;;  %2316 = vrot.lane.b32.xlu1 %v3962_v10, %s4310_s20  ;;  %v3942_v19 = vcombine.low %v776_v61, %v779_v49  ;;  %v1126_v20 = vrot.slane %v1125_v4, 4  ;;  %v1135_v21 = vor.u32 %v1134_v59, %v1130_v7  ;;  %v4872_v4 = vld [vmem:[%s4363_s19 + $0x8c] sm:$0x1] }
  0x8a   : > { %v1036_v29 = vshrl.u32 %v4810_v0, 16  ;;  %2148 = vrot.lane.b32.xlu0 %v3926_v3, %s4315_s25  ;;  %v3958_v32 = vcombine.low %v4801_v44, %v4810_v0  ;;  %v3834_v11 = vrot.slane %v4785_v35, 9  ;;  %v1399_v34 = vrot.slane %v4788_v37, 5 }
  0x8b   : > { %v1402_v15 = vrot.slane %v3806_v2, 5  ;;  %v1131_v30 = vsel %vm4418_vm5, %v1126_v20, %v1130_v7  ;;  %v1136_v18 = vrot.slane %v1135_v21, 4  ;;  %v1025_v16 = vrot.slane %v1023_v5, 4  ;;  %v4883_v20 = vld [vmem:[%s4363_s19 + $0x54] sm:$0xf] }
  0x8c   : > { %v1028_v23 = vrot.slane %v1026_v12, 5  ;;  %v1400_v35 = vsel %vm4390_vm4, %v3834_v11, %v1399_v34  ;;  %v1401_v37 = vrot.slane %v1399_v34, 4  ;;  %v1032_v41 = vshll.u32 %v4810_v0, 16  ;;  %v4211_v21 = vld [vmem:[%s6277_s1 + $0x10] sm:$0xff]  }
  0x8d   : > { %v4838_v39 = vpop.permute.xlu1 %2538  ;;  %v1038_v28 = vrot.slane %v1036_v29, 4  ;;  %v1141_v26 = vsel %vm4418_vm5, %v1136_v18, %v1140_v8  ;;  %v1042_v45 = vshll.u32 %v4828_v22, 16  ;;  %v4317_v10 = vmov 0  }
  0x8e   : > { %v1029_v43 = vor.u32 %v1028_v23, %v1025_v16  ;;  %2228 = vrot.lane.b32.xlu0 %v3942_v19, %s4312_s22  ;;  %v3978_v46 = vcombine.low %v1131_v30, %v1141_v26  ;;  %v1403_v47 = vsel %vm4390_vm4, %v1401_v37, %v1402_v15  ;;  %v1034_v48 = vrot.slane %v1032_v41, 5  ;;  %3081 = vmatprep.subr.bf16.mxu0 %v4317_v10  ;;  %v4895_v15 = vld [vmem:[%s4363_s19 + $0x58] sm:$0xf] }
  0x8f   : > { %v1715_v42 = vshrl.u32 %v4836_v38, 16  ;;  %3082 = vmatpush1.bf16.msra.mxu0 %v4207_v33  ;;  %v1718_v36 = vshll.u32 %v4836_v38, 16  ;;  %4141 = vmatprep.subr.bf16.mxu1 %v4317_v10  ;;  %v3994_v6 = vcombine.low %v1400_v35, %v1403_v47  ;;  %v1044_v59 = vrot.slane %v1042_v45, 5  ;;  %v4907_v35 = vld [vmem:[%s4363_s19 + $0x7c] sm:$0xf] }
  0x90   : > { %v1030_v53 = vrot.slane %v1029_v43, 4  ;;  %2396 = vrot.lane.b32.xlu1 %v3978_v46, %s4314_s24  ;;  %v1039_v13 = vor.u32 %v1038_v28, %v1034_v48  ;;  %v1728_v60 = vshrl.u32 %v4847_v9, 16  ;;  %3083 = vmatprep.subr.bf16.mxu0 %v4317_v10  ;;  %v3830_v63 = vrot.slane %v4801_v44, 9  ;;  %v4913_v43 = vld [vmem:[%s4363_s19 + $0x80] sm:$0x1] }
  0x91   : > { %v4860_v58 = vpop.permute.xlu0 %2218  ;;  %v1371_v51 = vrot.slane %v4810_v0, 5  ;;  %v4874_v7 = vpop.permute.xlu1 %2300  ;;  %4150 = vmatpush1.bf16.msra.mxu1 %v4207_v33  ;;  %v1374_v3 = vrot.slane %v4828_v22, 5  ;;  %v1717_v49 = vrot.slane %v1715_v42, 4  ;;  %v1720_v8 = vrot.slane %v1718_v36, 5  ;;  %v4904_v33 = vld [vmem:[%s4363_s19 + $0x78] sm:$0xf] }
  0x92   : > { %v1035_v62 = vsel %vm4418_vm5, %v1030_v53, %v1034_v48  ;;  %2308 = vrot.lane.b32.xlu0 %v3958_v32, %s4310_s20  ;;  %v1040_v5 = vrot.slane %v1039_v13, 4  ;;  %4142 = vmatprep.subr.bf16.mxu1 %v4317_v10  ;;  %v4010_v44 = vcombine.low %v4836_v38, %v4847_v9  ;;  %v1724_v0 = vshll.u32 %v4847_v9, 16  ;;  %v4212_v42 = vld [vmem:[%s6277_s1 + $0x18] sm:$0xff]  }
  0x93   : > { %v1373_v12 = vrot.slane %v1371_v51, 4  ;;  %3084 = vmatpush1.bf16.msra.mxu0 %v4209_v55  ;;  %v1730_v19 = vrot.slane %v1728_v60, 4  ;;  %v1372_v32 = vsel %vm4390_vm4, %v3830_v63, %v1371_v51  ;;  %v1721_v11 = vor.u32 %v1720_v8, %v1717_v49 }
  0x94   : > { %2476 = vrot.lane.b32.xlu1 %v3994_v6, %s4313_s23  ;;  %v1045_v29 = vsel %vm4418_vm5, %v1040_v5, %v1044_v59  ;;  %v1734_v34 = vshll.u32 %v4872_v4, 16  ;;  %3085 = vmatprep.subr.bf16.mxu0 %v4317_v10  ;;  %v1726_v23 = vrot.slane %v1724_v0, 5  ;;  %v1619_v28 = vshrl.u32 %v4883_v20, 16 }
  0x95   : > { %v4898_v22 = vpop.permute.xlu0 %2458  ;;  %v3974_v18 = vcombine.low %v1035_v62, %v1045_v29  ;;  %v1375_v16 = vsel %vm4390_vm4, %v1373_v12, %v1374_v3  ;;  %4151 = vmatpush1.bf16.msra.mxu1 %v4209_v55  ;;  %v1722_v41 = vrot.slane %v1721_v11, 4  ;;  %v1622_v26 = vshll.u32 %v4883_v20, 16  ;;  %v4934_v3 = vld [vmem:[%s4363_s19 + $0x5c] sm:$0x1]  ;;  %v4213_v29 = vld [vmem:[%s6277_s1 + $0x20] sm:$0xff]  }
  0x96   : > { %4143 = vmatprep.subr.bf16.mxu1 %v4317_v10  ;;  %v3990_v46 = vcombine.low %v1372_v32, %v1375_v16  ;;  %v1731_v47 = vor.u32 %v1730_v19, %v1726_v23  ;;  %v1736_v48 = vrot.slane %v1734_v34, 5  ;;  %v4921_v53 = vpop.permute.xlu1 %2378  ;;  %v1632_v55 = vshrl.u32 %v4895_v15, 16 }
  0x97   : > { %2388 = vrot.lane.b32.xlu0 %v3974_v18, %s4314_s24  ;;  %3086 = vmatpush1.bf16.msra.mxu0 %v4211_v21  ;;  %v1727_v36 = vsel %vm4418_vm5, %v1722_v41, %v1726_v23  ;;  %v544_v6 = vshrl.u32 %v4904_v33, 16  ;;  %v547_v13 = vshll.u32 %v4904_v33, 16  ;;  %v553_v60 = vshll.u32 %v4907_v35, 16 }
  0x98   : > { %2556 = vrot.lane.b32.xlu1 %v4010_v44, %s4311_s21  ;;  %3087 = vmatprep.subr.bf16.mxu0 %v4317_v10  ;;  %v1732_v59 = vrot.slane %v1731_v47, 4  ;;  %v557_v62 = vshrl.u32 %v4907_v35, 16  ;;  %v563_v63 = vshll.u32 %v4913_v43, 16  ;;  %v1621_v49 = vrot.slane %v1619_v28, 4 }
  0x99   : > { %4152 = vmatpush1.bf16.msra.mxu1 %v4211_v21  ;;  %v546_v51 = vrot.slane %v544_v6, 4  ;;  %v549_v5 = vrot.slane %v547_v13, 5  ;;  %v1624_v8 = vrot.slane %v1622_v26, 5  ;;  %v4936_v44 = vpop.permute.xlu0 %2220  ;;  %v4006_v0 = vcombine.low %v4883_v20, %v4895_v15  ;;  %v4951_v26 = vld [vmem:[%s4363_s19 + $0x48] sm:$0xf] }
  0x9a   : > { %4144 = vmatprep.subr.bf16.mxu1 %v4317_v10  ;;  %v1737_v12 = vsel %vm4418_vm5, %v1732_v59, %v1736_v48  ;;  %v555_v19 = vrot.slane %v553_v60, 5  ;;  %v559_v21 = vrot.slane %v557_v62, 4  ;;  %v1628_v18 = vshll.u32 %v4895_v15, 16  ;;  %v4965_v62 = vld [vmem:[%s4363_s19 + $0x4c] sm:$0xf] }
  0x9b   : > { %2468 = vrot.lane.b32.xlu0 %v3990_v46, %s4313_s23  ;;  %3088 = vmatpush1.bf16.msra.mxu0 %v4212_v42  ;;  %v4026_v32 = vcombine.low %v1727_v36, %v1737_v12  ;;  %v550_v11 = vor.u32 %v549_v5, %v546_v51  ;;  %v1625_v34 = vor.u32 %v1624_v8, %v1621_v49  ;;  %v565_v23 = vrot.slane %v563_v63, 5  ;;  %v4972_v5 = vld [vmem:[%s4363_s19 + $0x50] sm:$0x1] }
  0x9c   : > { %3089 = vmatprep.subr.bf16.mxu0 %v4317_v10  ;;  %v560_v16 = vor.u32 %v559_v21, %v555_v19  ;;  %v1634_v41 = vrot.slane %v1632_v55, 4  ;;  %v1638_v28 = vshll.u32 %v4934_v3, 16  ;;  %v1630_v36 = vrot.slane %v1628_v18, 5  ;;  %v4215_v55 = vld [vmem:[%s6277_s1 + $0x28] sm:$0xff]  }
  0x9d   : > { %4153 = vmatpush1.bf16.msra.mxu1 %v4212_v42  ;;  %2636 = vrot.lane.b32.xlu1 %v4026_v32, %s4316_s26  ;;  %v551_v47 = vrot.slane %v550_v11, 4  ;;  %v1626_v48 = vrot.slane %v1625_v34, 4  ;;  %v3771_v6 = vrot.slane %v4904_v33, 9  ;;  %v810_v42 = vrot.slane %v4907_v35, 5 }
  0x9e   : > { %v4953_v46 = vpop.permute.xlu1 %2140  ;;  %4145 = vmatprep.subr.bf16.mxu1 %v4317_v10  ;;  %v561_v13 = vrot.slane %v560_v16, 4  ;;  %v1640_v59 = vrot.slane %v1638_v28, 5  ;;  %v813_v60 = vrot.slane %v4913_v43, 5  ;;  %v1635_v51 = vor.u32 %v1634_v41, %v1630_v36  ;;  %v4993_v28 = vld [vmem:[%s4363_s19 + $0x88] sm:$0xf] }
  0x9f   : > { %2548 = vrot.lane.b32.xlu0 %v4006_v0, %s4311_s21  ;;  %3090 = vmatpush1.bf16.msra.mxu0 %v4213_v29  ;;  %v556_v33 = vsel %vm4418_vm5, %v551_v47, %v555_v19  ;;  %v1631_v63 = vsel %vm4418_vm5, %v1626_v48, %v1630_v36  ;;  %v448_v49 = vshrl.u32 %v4951_v26, 16  ;;  %v811_v43 = vsel %vm4390_vm4, %v3771_v6, %v810_v42  ;;  %v4984_v19 = vld [vmem:[%s4363_s19 + $0x84] sm:$0xf] }
  0xa0   : > { %3091 = vmatprep.subr.bf16.mxu0 %v4317_v10  ;;  %v566_v35 = vsel %vm4418_vm5, %v561_v13, %v565_v23  ;;  %v812_v12 = vrot.slane %v810_v42, 4  ;;  %v451_v0 = vshll.u32 %v4951_v26, 16  ;;  %v1636_v32 = vrot.slane %v1635_v51, 4 }
  0xa1   : > { %v4976_v8 = vpop.permute.xlu0 %2138  ;;  %4154 = vmatpush1.bf16.msra.mxu1 %v4213_v29  ;;  %v3931_v21 = vcombine.low %v556_v33, %v566_v35  ;;  %v450_v11 = vrot.slane %v448_v49, 4  ;;  %v457_v34 = vshll.u32 %v4965_v62, 16  ;;  %v461_v23 = vshrl.u32 %v4965_v62, 16  ;;  %v4217_v29 = vld [vmem:[%s6277_s1 + $0x30] sm:$0xff]  }
  0xa2   : > { %4146 = vmatprep.subr.bf16.mxu1 %v4317_v10  ;;  %v814_v18 = vsel %vm4390_vm4, %v812_v12, %v813_v60  ;;  %v453_v16 = vrot.slane %v451_v0, 5  ;;  %v467_v41 = vshll.u32 %v4972_v5, 16  ;;  %v4998_v47 = vpop.permute.xlu1 %2460  ;;  %v1641_v48 = vsel %vm4418_vm5, %v1636_v32, %v1640_v59 }
  0xa3   : > { %3092 = vmatpush1.bf16.msra.mxu0 %v4215_v55  ;;  %2158 = vrot.lane.b32.xlu1 %v3931_v21, %s4315_s25  ;;  %v3947_v36 = vcombine.low %v811_v43, %v814_v18  ;;  %v459_v6 = vrot.slane %v457_v34, 5  ;;  %v1143_v13 = vshrl.u32 %v4984_v19, 16  ;;  %v4022_v42 = vcombine.low %v1631_v63, %v1641_v48  ;;  %v5011_v43 = vld [vmem:[%s4363_s19 + $0x8c] sm:$0x1] }
  0xa4   : > { %3093 = vmatprep.subr.bf16.mxu0 %v4317_v10  ;;  %v454_v60 = vor.u32 %v453_v16, %v450_v11  ;;  %v463_v33 = vrot.slane %v461_v23, 4  ;;  %v469_v51 = vrot.slane %v467_v41, 5  ;;  %v1146_v49 = vshll.u32 %v4984_v19, 16  ;;  %v5020_v11 = vld [vmem:[%s4363_s19 + $0x54] sm:$0xf] }
  0xa5   : > { %4155 = vmatpush1.bf16.msra.mxu1 %v4215_v55  ;;  %v1156_v35 = vshrl.u32 %v4993_v28, 16  ;;  %v3963_v12 = vcombine.low %v4984_v19, %v4993_v28  ;;  %v3767_v59 = vrot.slane %v4951_v26, 9  ;;  %2628 = vrot.lane.b32.xlu0 %v4022_v42, %s4316_s26  ;;  %v782_v55 = vrot.slane %v4965_v62, 5  ;;  %v4220_v26 = vld [vmem:[%s6277_s1 + $0x38] sm:$0xff]  }
  0xa6   : > { %v5013_v0 = vpop.permute.xlu0 %2618  ;;  %4147 = vmatprep.subr.bf16.mxu1 %v4317_v10  ;;  %v455_v63 = vrot.slane %v454_v60, 4  ;;  %v464_v21 = vor.u32 %v463_v33, %v459_v6  ;;  %v785_v32 = vrot.slane %v4972_v5, 5  ;;  %v1145_v34 = vrot.slane %v1143_v13, 4  ;;  %v5033_v42 = vld [vmem:[%s4363_s19 + $0x58] sm:$0xf] }
  0xa7   : > { %3094 = vmatpush1.bf16.msra.mxu0 %v4217_v29  ;;  %2238 = vrot.lane.b32.xlu1 %v3947_v36, %s4312_s22  ;;  %v1148_v18 = vrot.slane %v1146_v49, 5  ;;  %v1152_v16 = vshll.u32 %v4993_v28, 16  ;;  %v1158_v23 = vrot.slane %v1156_v35, 4  ;;  %v783_v41 = vsel %vm4390_vm4, %v3767_v59, %v782_v55 }
  0xa8   : > { %3095 = vmatprep.subr.bf16.mxu0 %v4317_v10  ;;  %v460_v62 = vsel %vm4418_vm5, %v455_v63, %v459_v6  ;;  %v465_v5 = vrot.slane %v464_v21, 4  ;;  %v784_v48 = vrot.slane %v782_v55, 4  ;;  %v1162_v33 = vshll.u32 %v5011_v43, 16  ;;  %v5057_v6 = vld [vmem:[%s4363_s19 + $0x5c] sm:$0x1] }
  0xa9   : > { %4156 = vmatpush1.bf16.msra.mxu1 %v4217_v29  ;;  %v1149_v36 = vor.u32 %v1148_v18, %v1145_v34  ;;  %v1154_v13 = vrot.slane %v1152_v16, 5  ;;  %v1047_v49 = vshrl.u32 %v5020_v11, 16  ;;  %v1050_v63 = vshll.u32 %v5020_v11, 16  ;;  %v4222_v29 = vld [vmem:[%s6277_s1 + $0x40] sm:$0xff]  }
  0xaa   : > { %4148 = vmatprep.subr.bf16.mxu1 %v4317_v10  ;;  %v470_v35 = vsel %vm4418_vm5, %v465_v5, %v469_v51  ;;  %v786_v59 = vsel %vm4390_vm4, %v784_v48, %v785_v32  ;;  %v1060_v18 = vshrl.u32 %v5033_v42, 16  ;;  %v1164_v32 = vrot.slane %v1162_v33, 5 }
  0xab   : > { %v5035_v60 = vpop.permute.xlu1 %2620  ;;  %3096 = vmatpush1.bf16.msra.mxu0 %v4220_v26  ;;  %v3927_v21 = vcombine.low %v460_v62, %v470_v35  ;;  %2318 = vrot.lane.b32.xlu1 %v3963_v12, %s4310_s20  ;;  %v1150_v55 = vrot.slane %v1149_v36, 4  ;;  %v1159_v34 = vor.u32 %v1158_v23, %v1154_v13  ;;  %v3943_v16 = vcombine.low %v783_v41, %v786_v59 }
  0xac   : > { %3097 = vmatprep.subr.bf16.mxu0 %v4317_v10  ;;  %v3835_v5 = vrot.slane %v4984_v19, 9  ;;  %v1406_v48 = vrot.slane %v4993_v28, 5  ;;  %v1409_v62 = vrot.slane %v5011_v43, 5  ;;  %v1049_v41 = vrot.slane %v1047_v49, 4 }
  0xad   : > { %4157 = vmatpush1.bf16.msra.mxu1 %v4220_v26  ;;  %2150 = vrot.lane.b32.xlu0 %v3927_v21, %s4315_s25  ;;  %v1155_v12 = vsel %vm4418_vm5, %v1150_v55, %v1154_v13  ;;  %v1160_v23 = vrot.slane %v1159_v34, 4  ;;  %v1052_v36 = vrot.slane %v1050_v63, 5  ;;  %v1056_v33 = vshll.u32 %v5033_v42, 16  ;;  %v5077_v21 = vld [vmem:[%s4363_s19 + $0x90] sm:$0xf] }
  0xae   : > { %v5052_v51 = vpop.permute.xlu0 %2380  ;;  %4149 = vmatprep.subr.bf16.mxu1 %v4317_v10  ;;  %v1407_v19 = vsel %vm4390_vm4, %v3835_v5, %v1406_v48  ;;  %v1408_v28 = vrot.slane %v1406_v48, 4  ;;  %v3959_v43 = vcombine.low %v5020_v11, %v5033_v42  ;;  %v1062_v13 = vrot.slane %v1060_v18, 4  ;;  %v4251_v5 = vld [vmem:[%s4363_s19 + $0x10] sm:$0xf] }
  0xaf   : > { %v5059_v37 = vpop.permute.xlu1 %2222  ;;  %3098 = vmatpush1.bf16.msra.mxu0 %v4222_v29  ;;  %v1165_v26 = vsel %vm4418_vm5, %v1160_v23, %v1164_v32  ;;  %v1066_v10 = vshll.u32 %v5057_v6, 16  ;;  %v1053_v59 = vor.u32 %v1052_v36, %v1049_v41  ;;  %v1058_v63 = vrot.slane %v1056_v33, 5  ;;  %v4250_v32 = vld [vmem:[%s4363_s19 + $0xc] sm:$0xf]  ;;  %v4252_v41 = vld [vmem:[%s4363_s19] sm:$0xf] }
  0xb0   : > { %v3979_v49 = vcombine.low %v1155_v12, %v1165_v26  ;;  %v1410_v35 = vsel %vm4390_vm4, %v1408_v28, %v1409_v62  ;;  %v3906_v48 = vcombine.low %v4250_v32, %v4251_v5  ;;  %v5085_v12 = vld [vmem:[%s4363_s19 + $0x94] sm:$0xf]  ;;  %v4253_v28 = vld [vmem:[%s4363_s19 + $0x4] sm:$0xf]  ;;  %v1742_v26 = vshll.u32 %v5077_v21, 16 }
  0xb1   : > { %4158 = vmatpush1.bf16.msra.mxu1 %v4222_v29  ;;  %2230 = vrot.lane.b32.xlu0 %v3943_v16, %s4312_s22  ;;  %v3995_v34 = vcombine.low %v1407_v19, %v1410_v35  ;;  %v1068_v18 = vrot.slane %v1066_v10, 5  ;;  %v1054_v23 = vrot.slane %v1053_v59, 4  ;;  %v1063_v62 = vor.u32 %v1062_v13, %v1058_v63  ;;  %v5155_v59 = vld [vmem:[%s4363_s19 + $0x84] sm:$0xf]  ;;  %v287_v29 = vld [vmem:[%s4363_s19 + $0x8c] sm:$0x1] }
  0xb2   : > { %v5079_v55 = vpop.permute.xlu0 %2540  ;;  %2398 = vrot.lane.b32.xlu1 %v3979_v49, %s4314_s24  ;;  %v3905_v36 = vcombine.low %v4252_v41, %v4253_v28  ;;  %v1739_v19 = vshrl.u32 %v5077_v21, 16  ;;  %v1752_v35 = vshrl.u32 %v5085_v12, 16  ;;  %v2704_v32 = vsel %vm2698_vm6, %v3906_v48, %v4953_v46  ;;  %v5121_v28 = vld [vmem:[%s4363_s19 + $0x60] sm:$0xf] }
  0xb3   : > { %v1059_v10 = vsel %vm4418_vm5, %v1054_v23, %v1058_v63  ;;  %v1064_v49 = vrot.slane %v1063_v62, 4  ;;  %v3831_v23 = vrot.slane %v5020_v11, 9  ;;  %v5115_v62 = vld [vmem:[%s4363_s19 + $0x98] sm:$0x1]  ;;  %6300 = vst [vmem:[#allocation3_spill] sm:$0xff] %v5121_v28  ;;  %v1748_v11 = vshll.u32 %v5085_v12, 16 }
  0xb4   : > { %v2701_v13 = vsel %vm2698_vm6, %v3905_v36, %v4976_v8  ;;  %v4011_v8 = vcombine.low %v5077_v21, %v5085_v12  ;;  %6299 = vst [vmem:[#allocation2_spill] sm:$0xff] %v5115_v62  ;;  %v1741_v41 = vrot.slane %v1739_v19, 4  ;;  %v568_v16 = vshrl.u32 %v5155_v59, 16 }
  0xb5   : > { %v5090_v33 = vpop.permute.xlu1 %2382  ;;  %2310 = vrot.lane.b32.xlu0 %v3959_v43, %s4310_s20  ;;  %v2749_v5 = vsel %vm2747_vm7, %v2701_v13, %v4860_v58  ;;  %v1069_v63 = vsel %vm4418_vm5, %v1064_v49, %v1068_v18  ;;  %v1378_v43 = vrot.slane %v5033_v42, 5  ;;  %v1381_v58 = vrot.slane %v5057_v6, 5  ;;  %v5129_v13 = vld [vmem:[%s4363_s19 + $0x64] sm:$0xf] }
  0xb6   : > { %2478 = vrot.lane.b32.xlu1 %v3995_v34, %s4313_s23  ;;  %v3975_v48 = vcombine.low %v1059_v10, %v1069_v63  ;;  %v1744_v34 = vrot.slane %v1742_v26, 5  ;;  %v1754_v42 = vrot.slane %v1752_v35, 4  ;;  %v2751_v6 = vsel %vm2747_vm7, %v2704_v32, %v4936_v44 }
  0xb7   : > { %v1379_v36 = vsel %vm4390_vm4, %v3831_v23, %v1378_v43  ;;  %v1380_v49 = vrot.slane %v1378_v43, 4  ;;  %v1758_v26 = vshll.u32 %v5115_v62, 16  ;;  %v2782_v10 = vsel %vm2780_vm8, %v2749_v5, %v4815_v24 }
  0xb8   : > { %v1745_v19 = vor.u32 %v1744_v34, %v1741_v41  ;;  %v1750_v63 = vrot.slane %v1748_v11, 5  ;;  %v1643_v23 = vshrl.u32 %v5121_v28, 16  ;;  %v1656_v41 = vshrl.u32 %v5129_v13, 16  ;;  %v4254_v34 = vld [vmem:[%s4363_s19 + $0x18] sm:$0xf] }
  0xb9   : > { %v5117_v46 = vpop.permute.xlu0 %2142  ;;  %v5123_v18 = vpop.permute.xlu1 %2542  ;;  %2390 = vrot.lane.b32.xlu0 %v3975_v48, %s4314_s24  ;;  %v1382_v35 = vsel %vm4390_vm4, %v1380_v49, %v1381_v58  ;;  %v1646_v48 = vshll.u32 %v5121_v28, 16  ;;  %v1760_v5 = vrot.slane %v1758_v26, 5  ;;  %v3889_v58 = vrot.slane %v4254_v34, 9  ;;  %v4255_v11 = vld [vmem:[%s4363_s19 + $0x1c] sm:$0xf] }
  0xba   : > { %2558 = vrot.lane.b32.xlu1 %v4011_v8, %s4311_s21  ;;  %v3991_v44 = vcombine.low %v1379_v36, %v1382_v35  ;;  %v1746_v32 = vrot.slane %v1745_v19, 4  ;;  %v1755_v24 = vor.u32 %v1754_v42, %v1750_v63  ;;  %v4007_v8 = vcombine.low %v5121_v28, %v5129_v13  ;;  %v4256_v19 = vld [vmem:[%s4363_s19 + $0x20] sm:$0x1] }
  0xbb   : > { %v1932_v36 = vrot.slane %v4255_v11, 5  ;;  %v1935_v35 = vrot.slane %v4256_v19, 5  ;;  %v2815_v34 = vsel %vm2813_vm9, %v2782_v10, %v4921_v53  ;;  %v286_v19 = vld [vmem:[%s4363_s19 + $0x88] sm:$0xf]  ;;  %v2784_v10 = vsel %vm2780_vm8, %v2751_v6, %v4874_v7 }
  0xbc   : > { %v1751_v49 = vsel %vm4418_vm5, %v1746_v32, %v1750_v63  ;;  %v1756_v26 = vrot.slane %v1755_v24, 4  ;;  %v2848_v11 = vsel %vm2846_vm10, %v2815_v34, %v4898_v22  ;;  %v570_v34 = vrot.slane %v568_v16, 4 }
  0xbd   : > { %v5142_v43 = vpop.permute.xlu0 %2302  ;;  %2470 = vrot.lane.b32.xlu0 %v3991_v44, %s4313_s23  ;;  %v1933_v63 = vsel %vm4390_vm4, %v3889_v58, %v1932_v36  ;;  %v1934_v32 = vrot.slane %v1932_v36, 4  ;;  %v2881_v53 = vsel %vm2879_vm11, %v2848_v11, %v4838_v39  ;;  %v571_v7 = vshll.u32 %v5155_v59, 16  ;;  %v5187_v11 = vld [vmem:[%s4363_s19 + $0x68] sm:$0x1] }
  0xbe   : > { %v1761_v24 = vsel %vm4418_vm5, %v1756_v26, %v1760_v5  ;;  %v2914_v36 = vsel %vm2912_vm12, %v2881_v53, %v5013_v0  ;;  %v2817_v5 = vsel %vm2813_vm9, %v2784_v10, %v5052_v51  ;;  %v577_v6 = vshll.u32 %v286_v19, 16  ;;  %6301 = vst [vmem:[#allocation4_spill] sm:$0xff] %v5187_v11 }
  0xbf   : > { %v5157_v42 = vpop.permute.xlu1 %2144  ;;  %v4027_v58 = vcombine.low %v1751_v49, %v1761_v24  ;;  %v1936_v22 = vsel %vm4390_vm4, %v1934_v32, %v1935_v35  ;;  %v587_v49 = vshll.u32 %v287_v29, 16  ;;  %v1645_v35 = vrot.slane %v1643_v23, 4 }
  0xc0   : > { %v4033_v39 = vcombine.low %v1933_v63, %v1936_v22  ;;  %v1648_v32 = vrot.slane %v1646_v48, 5  ;;  %v573_v51 = vrot.slane %v571_v7, 5  ;;  %v579_v24 = vrot.slane %v577_v6, 5 }
  0xc1   : > { %v5161_v44 = vpop.permute.xlu0 %2462  ;;  %2550 = vrot.lane.b32.xlu0 %v4007_v8, %s4311_s21  ;;  %2638 = vrot.lane.b32.xlu1 %v4027_v58, %s4316_s26  ;;  %v581_v8 = vshrl.u32 %v286_v19, 16  ;;  %v1652_v16 = vshll.u32 %v5129_v13, 16  ;;  %v1658_v63 = vrot.slane %v1656_v41, 4  ;;  %v1662_v58 = vshll.u32 %v5187_v11, 16 }
  0xc2   : > { %4058 = vmatprep.mubr.msk.bf16.mxu0 %vm2698_vm6, %v4033_v39  ;;  %v1649_v22 = vor.u32 %v1648_v32, %v1645_v35  ;;  %v574_v23 = vor.u32 %v573_v51, %v570_v34  ;;  %v589_v48 = vrot.slane %v587_v49, 5  ;;  %v2850_v30 = vsel %vm2846_vm10, %v2817_v5, %v4998_v47  ;;  %v5199_v39 = vld [vmem:[%s4363_s19 + $0x54] sm:$0xf]  ;;  %v5207_v32 = vld [vmem:[%s4363_s19 + $0x58] sm:$0xf] }
  0xc3   : > { %v5183_v26 = vpop.permute.xlu1 %2304  ;;  %3114 = vmatmul.mubr.bf16.vlgmr.msra.gmra.mrb[0].mxu0 %v2914_v36  ;;  %v583_v10 = vrot.slane %v581_v8, 4  ;;  %v1654_v45 = vrot.slane %v1652_v16, 5  ;;  %v1664_v61 = vrot.slane %v1662_v58, 5  ;;  %v2883_v41 = vsel %vm2879_vm11, %v2850_v30, %v5079_v55 }
  0xc4   : > { %v1650_v6 = vrot.slane %v1649_v22, 4  ;;  %v575_v8 = vrot.slane %v574_v23, 4  ;;  %v3772_v34 = vrot.slane %v5155_v59, 9  ;;  %v817_v49 = vrot.slane %v286_v19, 5  ;;  %v5221_v22 = vld [vmem:[%s4363_s19 + $0x5c] sm:$0x1] }
  0xc5   : > { %v5190_v0 = vpop.permute.xlu0 %2622  ;;  %v584_v7 = vor.u32 %v583_v10, %v579_v24  ;;  %v1659_v35 = vor.u32 %v1658_v63, %v1654_v45  ;;  %v820_v16 = vrot.slane %v287_v29, 5  ;;  %v472_v30 = vshrl.u32 %v5199_v39, 16 }
  0xc6   : > { %v1655_v5 = vsel %vm4418_vm5, %v1650_v6, %v1654_v45  ;;  %v580_v55 = vsel %vm4418_vm5, %v575_v8, %v579_v24  ;;  %v818_v59 = vsel %vm4390_vm4, %v3772_v34, %v817_v49  ;;  %v819_v19 = vrot.slane %v817_v49, 4 }
  0xc7   : > { %v5203_v36 = vpop.permute.xlu1 %2464  ;;  %v585_v47 = vrot.slane %v584_v7, 4  ;;  %v1660_v10 = vrot.slane %v1659_v35, 4  ;;  %v474_v58 = vrot.slane %v472_v30, 4  ;;  %v475_v45 = vshll.u32 %v5199_v39, 16 }
  0xc8   : > { %v481_v29 = vshll.u32 %v5207_v32, 16  ;;  %v821_v7 = vsel %vm4390_vm4, %v819_v19, %v820_v16  ;;  %v485_v6 = vshrl.u32 %v5207_v32, 16  ;;  %v4258_v16 = vld [vmem:[%s4363_s19 + $0x28] sm:$0xf]  ;;  %v2917_v52 = vsel %vm2912_vm12, %v2883_v41, %v5035_v60 }
  0xc9   : > { %v5209_v51 = vpop.permute.xlu0 %2224  ;;  %v590_v63 = vsel %vm4418_vm5, %v585_v47, %v589_v48  ;;  %v1665_v24 = vsel %vm4418_vm5, %v1660_v10, %v1664_v61  ;;  %v5231_v48 = vld [vmem:[%s4363_s19 + $0x90] sm:$0xf]  ;;  %v3948_v35 = vcombine.low %v818_v59, %v821_v7  ;;  %v477_v34 = vrot.slane %v475_v45, 5  ;;  %v4259_v45 = vld [vmem:[%s4363_s19 + $0x18] sm:$0xf] }
  0xca   : > { %v3932_v23 = vcombine.low %v580_v55, %v590_v63  ;;  %v4023_v8 = vcombine.low %v1655_v5, %v1665_v24  ;;  %v483_v49 = vrot.slane %v481_v29, 5  ;;  %v487_v30 = vrot.slane %v485_v6, 4  ;;  %v4257_v55 = vld [vmem:[%s4363_s19 + $0x24] sm:$0xf]  ;;  %v5240_v63 = vld [vmem:[%s4363_s19 + $0x94] sm:$0xf] }
  0xcb   : > { %v491_v61 = vshll.u32 %v5221_v22, 16  ;;  %v3890_v10 = vrot.slane %v4257_v55, 9  ;;  %v1939_v19 = vrot.slane %v4258_v16, 5  ;;  %v478_v59 = vor.u32 %v477_v34, %v474_v58  ;;  %v4260_v29 = vld [vmem:[%s4363_s19 + $0x1c] sm:$0xf] }
  0xcc   : > { %2160 = vrot.lane.b32.xlu1 %v3932_v23, %s4315_s25  ;;  %2630 = vrot.lane.b32.xlu0 %v4023_v8, %s4316_s26  ;;  %v3907_v24 = vcombine.low %v4259_v45, %v4260_v29  ;;  %v1167_v23 = vshrl.u32 %v5231_v48, 16  ;;  %v488_v7 = vor.u32 %v487_v30, %v483_v49  ;;  %v1170_v5 = vshll.u32 %v5231_v48, 16 }
  0xcd   : > { %v5233_v47 = vpop.permute.xlu1 %2624  ;;  %v493_v6 = vrot.slane %v491_v61, 5  ;;  %v1940_v55 = vsel %vm4390_vm4, %v3890_v10, %v1939_v19  ;;  %v1941_v16 = vrot.slane %v1939_v19, 4  ;;  %v479_v2 = vrot.slane %v478_v59, 4  ;;  %v3812_v19 = vld [vmem:[%s4363_s19 + $0x98] sm:$0x1] }
  0xce   : > { %v1180_v58 = vshrl.u32 %v5240_v63, 16  ;;  %v489_v8 = vrot.slane %v488_v7, 4  ;;  %v3964_v30 = vcombine.low %v5231_v48, %v5240_v63  ;;  %v3768_v61 = vrot.slane %v5199_v39, 9 }
  0xcf   : > { %v1943_v34 = vsel %vm4390_vm4, %v1941_v16, %v1942_v27  ;;  %v484_v60 = vsel %vm4418_vm5, %v479_v2, %v483_v49  ;;  %v789_v10 = vrot.slane %v5207_v32, 5  ;;  %v2707_v39 = vsel %vm2698_vm6, %v3907_v24, %v5117_v46  ;;  %v5277_v2 = vld [vmem:[%s4363_s19 + $0x60] sm:$0xf] }
  0xd0   : > { %v5242_v53 = vpop.permute.xlu0 %2384  ;;  %2240 = vrot.lane.b32.xlu1 %v3948_v35, %s4312_s22  ;;  %v4034_v41 = vcombine.low %v1940_v55, %v1943_v34  ;;  %v792_v35 = vrot.slane %v5221_v22, 5  ;;  %v494_v27 = vsel %vm4418_vm5, %v489_v8, %v493_v6  ;;  %v1169_v45 = vrot.slane %v1167_v23, 4 }
  0xd1   : > { %v1172_v29 = vrot.slane %v1170_v5, 5  ;;  %v3928_v49 = vcombine.low %v484_v60, %v494_v27  ;;  %v790_v22 = vsel %vm4390_vm4, %v3768_v61, %v789_v10  ;;  %v791_v7 = vrot.slane %v789_v10, 4  ;;  %v5286_v5 = vld [vmem:[%s4363_s19 + $0x64] sm:$0xf] }
  0xd2   : > { %4059 = vmatprep.mubr.msk.bf16.mxu0 %vm2698_vm6, %v4034_v41  ;;  %v1176_v55 = vshll.u32 %v5240_v63, 16  ;;  %v1182_v46 = vrot.slane %v1180_v58, 4  ;;  %v1186_v24 = vshll.u32 %v3812_v19, 16  ;;  %v2753_v16 = vsel %vm2747_vm7, %v2707_v39, %v5059_v37 }
  0xd3   : > { %3122 = vmatmul.mubr.bf16.gmra.mrb[4].mxu0 %v2917_v52  ;;  %v1173_v6 = vor.u32 %v1172_v29, %v1169_v45  ;;  %2152 = vrot.lane.b32.xlu0 %v3928_v49, %s4315_s25  ;;  %v793_v23 = vsel %vm4390_vm4, %v791_v7, %v792_v35  ;;  %v1071_v52 = vshrl.u32 %v5277_v2, 16  ;;  %v1074_v8 = vshll.u32 %v5277_v2, 16  ;;  %v4261_v29 = vld [vmem:[%s4363_s19 + $0x24] sm:$0xf]  ;;  %v4262_v49 = vld [vmem:[%s4363_s19 + $0x28] sm:$0xf] }
  0xd4   : > { %v5268_v59 = vpop.permute.xlu1 %2154  ;;  %v5270_v57 = vpop.permute.xlu0 %2544  ;;  %2320 = vrot.lane.b32.xlu1 %v3964_v30, %s4310_s20  ;;  %v3944_v58 = vcombine.low %v790_v22, %v793_v23  ;;  %v2786_v30 = vsel %vm2780_vm8, %v2753_v16, %v5142_v43  ;;  %v1178_v60 = vrot.slane %v1176_v55, 5  ;;  %v1188_v10 = vrot.slane %v1186_v24, 5  ;;  %v5310_v7 = vld [vmem:[%s4363_s19 + $0x68] sm:$0x1] }
  0xd5   : > { %v1174_v61 = vrot.slane %v1173_v6, 4  ;;  %v1084_v35 = vshrl.u32 %v5286_v5, 16  ;;  %v3836_v37 = vrot.slane %v5231_v48, 9  ;;  %v3960_v45 = vcombine.low %v5277_v2, %v5286_v5 }
  0xd6   : > { %v1183_v39 = vor.u32 %v1182_v46, %v1178_v60  ;;  %v3908_v22 = vcombine.low %v4261_v29, %v4262_v49  ;;  %v1413_v43 = vrot.slane %v5240_v63, 5  ;;  %v2819_v6 = vsel %vm2813_vm9, %v2786_v30, %v5090_v33  ;;  %v5321_v49 = vld [vmem:[%s4363_s19 + $0x9c] sm:$0xf] }
  0xd7   : > { %2232 = vrot.lane.b32.xlu0 %v3944_v58, %s4312_s22  ;;  %v1416_v48 = vrot.slane %v3812_v19, 5  ;;  %v1073_v55 = vrot.slane %v1071_v52, 4  ;;  %v1076_v24 = vrot.slane %v1074_v8, 5  ;;  %v1179_v23 = vsel %vm4418_vm5, %v1174_v61, %v1178_v60  ;;  %6302 = vst [vmem:[#allocation5_spill] sm:$0xff] %v5321_v49 }
  0xd8   : > { %v5295_v34 = vpop.permute.xlu1 %2234  ;;  %v1184_v16 = vrot.slane %v1183_v39, 4  ;;  %v1415_v29 = vrot.slane %v1413_v43, 4  ;;  %v1080_v63 = vshll.u32 %v5286_v5, 16  ;;  %v1414_v58 = vsel %vm4390_vm4, %v3836_v37, %v1413_v43  ;;  %v5335_v39 = vld [vmem:[%s4363_s19 + $0xa0] sm:$0xf] }
  0xd9   : > { %v1077_v32 = vor.u32 %v1076_v24, %v1073_v55  ;;  %v1086_v33 = vrot.slane %v1084_v35, 4  ;;  %v1090_v19 = vshll.u32 %v5310_v7, 16  ;;  %v2852_v30 = vsel %vm2846_vm10, %v2819_v6, %v5161_v44  ;;  %6303 = vst [vmem:[#allocation6_spill] sm:$0xff] %v5335_v39 }
  0xda   : > { %v1189_v8 = vsel %vm4418_vm5, %v1184_v16, %v1188_v10  ;;  %v1417_v61 = vsel %vm4390_vm4, %v1415_v29, %v1416_v48  ;;  %v1082_v60 = vrot.slane %v1080_v63, 5  ;;  %v2710_v35 = vsel %vm2698_vm6, %v3908_v22, %v5157_v42 }
  0xdb   : > { %v5302_v27 = vpop.permute.xlu0 %2146  ;;  %v3980_v41 = vcombine.low %v1179_v23, %v1189_v8  ;;  %2312 = vrot.lane.b32.xlu0 %v3960_v45, %s4310_s20  ;;  %v1078_v37 = vrot.slane %v1077_v32, 4  ;;  %v1763_v43 = vshrl.u32 %v5321_v49, 16  ;;  %v3996_v10 = vcombine.low %v1414_v58, %v1417_v61  ;;  %v5370_v61 = vld [vmem:[%s4363_s19 + $0xa4] sm:$0x1] }
  0xdc   : > { %v5315_v46 = vpop.permute.xlu1 %2314  ;;  %v1087_v24 = vor.u32 %v1086_v33, %v1082_v60  ;;  %v1092_v44 = vrot.slane %v1090_v19, 5  ;;  %v1766_v6 = vshll.u32 %v5321_v49, 16  ;;  %v1776_v45 = vshrl.u32 %v5335_v39, 16  ;;  %6308 = vst [vmem:[#allocation7_spill] sm:$0xff] %v5370_v61 }
  0xdd   : > { %2400 = vrot.lane.b32.xlu1 %v3980_v41, %s4314_s24  ;;  %v1083_v48 = vsel %vm4418_vm5, %v1078_v37, %v1082_v60  ;;  %v6304_v42 = vrot.slane %v4549_v14, 5  ;;  %v6305_v32 = vrot.slane %v4545_v1, 9  ;;  %v3832_v41 = vrot.slane %v5277_v2, 9 }
  0xde   : > { %v1088_v63 = vrot.slane %v1087_v24, 4  ;;  %v1385_v58 = vrot.slane %v5286_v5, 5  ;;  %v1388_v33 = vrot.slane %v5310_v7, 5  ;;  %v4012_v19 = vcombine.low %v5321_v49, %v5335_v39  ;;  %v5379_v24 = vld [vmem:[%s4363_s19 + $0x6c] sm:$0xf] }
  0xdf   : > { %v5326_v52 = vpop.permute.xlu0 %2226  ;;  %v1947_v22 = vsel %vm4390_vm4, %v6305_v32, %v6304_v42  ;;  %v6306_v23 = vmov %v6304_v42  ;;  %v6307_v1 = vrot.slane %v4598_v54, 5  ;;  %v2885_v8 = vsel %vm2879_vm11, %v2852_v30, %v5123_v18  ;;  %6309 = vst [vmem:[#allocation8_spill] sm:$0xff] %v5379_v24  ;;  %v5386_v32 = vld [vmem:[%s4363_s19 + $0x70] sm:$0xf] }
  0xe0   : > { %v5341_v55 = vpop.permute.xlu1 %2394  ;;  %v1948_v16 = vrot.slane %v6306_v23, 4  ;;  %v1765_v60 = vrot.slane %v1763_v43, 4  ;;  %v1093_v5 = vsel %vm4418_vm5, %v1088_v63, %v1092_v44  ;;  %v1386_v37 = vsel %vm4390_vm4, %v3832_v41, %v1385_v58  ;;  %6310 = vst [vmem:[#allocation9_spill] sm:$0xff] %v5386_v32 }
  0xe1   : > { %v1387_v54 = vrot.slane %v1385_v58, 4  ;;  %2480 = vrot.lane.b32.xlu1 %v3996_v10, %s4313_s23  ;;  %v3976_v42 = vcombine.low %v1083_v48, %v1093_v5  ;;  %v2920_v18 = vsel %vm2912_vm12, %v2885_v8, %v5190_v0  ;;  %v1768_v30 = vrot.slane %v1766_v6, 5 }
  0xe2   : > { %v1950_v14 = vsel %vm4390_vm4, %v1948_v16, %v6307_v1  ;;  %v1772_v43 = vshll.u32 %v5335_v39, 16  ;;  %v1778_v10 = vrot.slane %v1776_v45, 4  ;;  %v1782_v48 = vshll.u32 %v5370_v61, 16 }
  0xe3   : > { %v5356_v29 = vpop.permute.xlu0 %2306  ;;  %v4035_v7 = vcombine.low %v1947_v22, %v1950_v14  ;;  %v1389_v44 = vsel %vm4390_vm4, %v1387_v54, %v1388_v33  ;;  %v2755_v22 = vsel %vm2747_vm7, %v2710_v35, %v5209_v51  ;;  %2392 = vrot.lane.b32.xlu0 %v3976_v42, %s4314_s24  ;;  %v1769_v6 = vor.u32 %v1768_v30, %v1765_v60  ;;  %v5408_v60 = vld [vmem:[%s4363_s19 + $0x74] sm:$0x1] }
  0xe4   : > { %v5372_v2 = vpop.permute.xlu1 %2474  ;;  %v3992_v0 = vcombine.low %v1386_v37, %v1389_v44  ;;  %v1774_v16 = vrot.slane %v1772_v43, 5  ;;  %v1667_v63 = vshrl.u32 %v5379_v24, 16  ;;  %v1670_v51 = vshll.u32 %v5379_v24, 16  ;;  %6311 = vst [vmem:[#allocation10_spill] sm:$0xff] %v5408_v60 }
  0xe5   : > { %4060 = vmatprep.mubr.msk.bf16.mxu0 %vm2698_vm6, %v4035_v7  ;;  %v1680_v35 = vshrl.u32 %v5386_v32, 16  ;;  %2560 = vrot.lane.b32.xlu1 %v4012_v19, %s4311_s21  ;;  %v1770_v45 = vrot.slane %v1769_v6, 4  ;;  %v1784_v14 = vrot.slane %v1782_v48, 5  ;;  %v4008_v8 = vcombine.low %v5379_v24, %v5386_v32 }
  0xe6   : > { %3130 = vmatmul.mubr.bf16.gmra.mrb[8].mxu0 %v2920_v18  ;;  %v1779_v1 = vor.u32 %v1778_v10, %v1774_v16  ;;  %v2788_v7 = vsel %vm2780_vm8, %v2755_v22, %v5183_v26  ;;  %v1669_v37 = vrot.slane %v1667_v63, 4  ;;  %v1672_v54 = vrot.slane %v1670_v51, 5  ;;  %v5416_v18 = vld [vmem:[%s4363_s19 + $0x90] sm:$0xf]  ;;  %v289_v51 = vld [vmem:[%s4363_s19 + $0x94] sm:$0xf] }
  0xe7   : > { %v5388_v23 = vpop.permute.xlu0 %2386  ;;  %v1676_v42 = vshll.u32 %v5386_v32, 16  ;;  %2472 = vrot.lane.b32.xlu0 %v3992_v0, %s4313_s23  ;;  %v1775_v19 = vsel %vm4418_vm5, %v1770_v45, %v1774_v16  ;;  %v2821_v43 = vsel %vm2813_vm9, %v2788_v7, %v5242_v53  ;;  %v1682_v44 = vrot.slane %v1680_v35, 4  ;;  %v4264_v63 = vld [vmem:[%s4363_s19 + $0x40] sm:$0xf] }
  0xe8   : > { %v5398_v41 = vpop.permute.xlu1 %2554  ;;  %v1780_v30 = vrot.slane %v1779_v1, 4  ;;  %v1673_v22 = vor.u32 %v1672_v54, %v1669_v37  ;;  %v1686_v48 = vshll.u32 %v5408_v60, 16  ;;  %v2854_v16 = vsel %vm2846_vm10, %v2821_v43, %v5203_v36  ;;  %v290_v37 = vld [vmem:[%s4363_s19 + $0x98] sm:$0x1]  ;;  %v4263_v54 = vld [vmem:[%s4363_s19 + $0x3c] sm:$0xf] }
  0xe9   : > { %v1678_v10 = vrot.slane %v1676_v42, 5  ;;  %v592_v53 = vshrl.u32 %v5416_v18, 16  ;;  %v595_v36 = vshll.u32 %v5416_v18, 16  ;;  %v824_v26 = vrot.slane %v289_v51, 5 }
  0xea   : > { %v1785_v0 = vsel %vm4418_vm5, %v1780_v30, %v1784_v14  ;;  %v1674_v45 = vrot.slane %v1673_v22, 4  ;;  %v1688_v7 = vrot.slane %v1686_v48, 5  ;;  %v2887_v14 = vsel %vm2879_vm11, %v2854_v16, %v5270_v57 }
  0xeb   : > { %v5410_v5 = vpop.permute.xlu0 %2466  ;;  %v4028_v35 = vcombine.low %v1775_v19, %v1785_v0  ;;  %v1683_v1 = vor.u32 %v1682_v44, %v1678_v10  ;;  %2552 = vrot.lane.b32.xlu0 %v4008_v8, %s4311_s21  ;;  %v594_v42 = vrot.slane %v592_v53, 4  ;;  %v601_v44 = vshll.u32 %v289_v51, 16 }
  0xec   : > { %v1679_v19 = vsel %vm4418_vm5, %v1674_v45, %v1678_v10  ;;  %v605_v22 = vshrl.u32 %v289_v51, 16  ;;  %v597_v48 = vrot.slane %v595_v36, 5  ;;  %v611_v0 = vshll.u32 %v290_v37, 16 }
  0xed   : > { %v5425_v6 = vpop.permute.xlu1 %2634  ;;  %2640 = vrot.lane.b32.xlu1 %v4028_v35, %s4316_s26  ;;  %v1684_v43 = vrot.slane %v1683_v1, 4  ;;  %v3892_v8 = vrot.slane %v4263_v54, 9  ;;  %v1953_v57 = vrot.slane %v4264_v63, 5  ;;  %v603_v53 = vrot.slane %v601_v44, 5 }
  0xee   : > { %v607_v33 = vrot.slane %v605_v22, 4  ;;  %v3773_v35 = vrot.slane %v5416_v18, 9  ;;  %v598_v1 = vor.u32 %v597_v48, %v594_v42  ;;  %v613_v36 = vrot.slane %v611_v0, 5  ;;  %v4265_v18 = vld [vmem:[%s4363_s19 + $0x60] sm:$0xf] }
  0xef   : > { %v5440_v30 = vpop.permute.xlu0 %2546  ;;  %v1689_v16 = vsel %vm4418_vm5, %v1684_v43, %v1688_v7  ;;  %v1954_v54 = vsel %vm4390_vm4, %v3892_v8, %v1953_v57  ;;  %v1955_v63 = vrot.slane %v1953_v57, 4  ;;  %v827_v49 = vrot.slane %v290_v37, 5  ;;  %v3813_v7 = vld [vmem:[%s4363_s19 + $0x9c] sm:$0xf]  ;;  %v3814_v48 = vld [vmem:[%s4363_s19 + $0xa0] sm:$0xf] }
  0xf0   : > { %v4024_v45 = vcombine.low %v1679_v19, %v1689_v16  ;;  %v608_v58 = vor.u32 %v607_v33, %v603_v53  ;;  %v4266_v19 = vld [vmem:[%s4363_s19 + $0x64] sm:$0xf]  ;;  %v599_v42 = vrot.slane %v598_v1, 4  ;;  %v6312_v33 = vrot.slane %v4630_v25, 5 }
  0xf1   : > { %v3913_v22 = vcombine.low %v4265_v18, %v4266_v19  ;;  %v825_v37 = vsel %vm4390_vm4, %v3773_v35, %v824_v26  ;;  %v826_v57 = vrot.slane %v824_v26, 4  ;;  %v2923_v1 = vsel %vm2912_vm12, %v2887_v14, %v5233_v47 }
  0xf2   : > { %2632 = vrot.lane.b32.xlu0 %v4024_v45, %s4316_s26  ;;  %v609_v8 = vrot.slane %v608_v58, 4  ;;  %v1957_v51 = vsel %vm4390_vm4, %v1955_v63, %v6312_v33  ;;  %v604_v45 = vsel %vm4418_vm5, %v599_v42, %v603_v53  ;;  %v1191_v19 = vshrl.u32 %v3813_v7, 16  ;;  %v3815_v58 = vld [vmem:[%s4363_s19 + $0xa4] sm:$0x1] }
  0xf3   : > { %v5450_v10 = vpop.permute.xlu1 %2156  ;;  %v4036_v18 = vcombine.low %v1954_v54, %v1957_v51  ;;  %v828_v63 = vsel %vm4390_vm4, %v826_v57, %v827_v49  ;;  %v1194_v35 = vshll.u32 %v3813_v7, 16  ;;  %v1204_v26 = vshrl.u32 %v3814_v48, 16 }
  0xf4   : > { %v614_v25 = vsel %vm4418_vm5, %v609_v8, %v613_v36  ;;  %v3949_v53 = vcombine.low %v825_v37, %v828_v63  ;;  %v1193_v54 = vrot.slane %v1191_v19, 4  ;;  %v1200_v14 = vshll.u32 %v3814_v48, 16  ;;  %v5483_v8 = vld [vmem:[%s4363_s19 + $0xa8] sm:$0xf]  ;;  %v4267_v19 = vld [vmem:[%s4363_s19 + $0x30] sm:$0xf] }
  0xf5   : > { %v3933_v44 = vcombine.low %v604_v45, %v614_v25  ;;  %4061 = vmatprep.mubr.msk.bf16.mxu0 %vm2698_vm6, %v4036_v18  ;;  %v1196_v47 = vrot.slane %v1194_v35, 5  ;;  %v1206_v42 = vrot.slane %v1204_v26, 4  ;;  %v1210_v36 = vshll.u32 %v3815_v58, 16  ;;  %v5490_v45 = vld [vmem:[%s4363_s19 + $0xac] sm:$0xf] }
  0xf6   : > { %v5461_v0 = vpop.permute.xlu0 %2626  ;;  %3138 = vmatmul.mubr.bf16.gmra.mrb[12].mxu0 %v2923_v1  ;;  %v2725_v49 = vsel %vm2698_vm6, %v3913_v22, %v5268_v59  ;;  %2242 = vrot.lane.b32.xlu1 %v3949_v53, %s4312_s22  ;;  %v3965_v51 = vcombine.low %v3813_v7, %v3814_v48  ;;  %v3837_v57 = vrot.slane %v3813_v7, 9  ;;  %v1420_v37 = vrot.slane %v3814_v48, 5  ;;  %v4268_v25 = vld [vmem:[%s4363_s19 + $0x34] sm:$0xf] }
  0xf7   : > { %v5469_v16 = vpop.permute.xlu1 %2236  ;;  %2162 = vrot.lane.b32.xlu0 %v3933_v44, %s4315_s25  ;;  %v3909_v63 = vcombine.low %v4267_v19, %v4268_v25  ;;  %v1197_v35 = vor.u32 %v1196_v47, %v1193_v54  ;;  %v1202_v26 = vrot.slane %v1200_v14, 5  ;;  %v1423_v59 = vrot.slane %v3815_v58, 5  ;;  %v5511_v14 = vld [vmem:[%s4363_s19 + $0xb0] sm:$0x1] }
  0xf8   : > { %v1421_v44 = vsel %vm4390_vm4, %v3837_v57, %v1420_v37  ;;  %v1422_v22 = vrot.slane %v1420_v37, 4  ;;  %v1787_v7 = vshrl.u32 %v5483_v8, 16  ;;  %v1790_v48 = vshll.u32 %v5483_v8, 16 }
  0xf9   : > { %v1198_v53 = vrot.slane %v1197_v35, 4  ;;  %v1207_v33 = vor.u32 %v1206_v42, %v1202_v26  ;;  %v1212_v43 = vrot.slane %v1210_v36, 5  ;;  %v1800_v61 = vshrl.u32 %v5490_v45, 16  ;;  %v5514_v42 = vld [vmem:[%s4363_s19 + $0x9c] sm:$0xf] }
  0xfa   : > { %v2765_v58 = vsel %vm2747_vm7, %v2725_v49, %v5295_v34  ;;  %v1424_v47 = vsel %vm4390_vm4, %v1422_v22, %v1423_v59  ;;  %6313 = vst [vmem:[#allocation11_spill] sm:$0xff] %v5514_v42  ;;  %v2713_v57 = vsel %vm2698_vm6, %v3909_v63, %v5302_v27  ;;  %v1789_v49 = vrot.slane %v1787_v7, 4  ;;  %v5524_v22 = vld [vmem:[%s4363_s19 + $0xa0] sm:$0xf] }
  0xfb   : > { %v5494_v1 = vpop.permute.xlu1 %2316  ;;  %2322 = vrot.lane.b32.xlu0 %v3965_v51, %s4310_s20  ;;  %v1203_v37 = vsel %vm4418_vm5, %v1198_v53, %v1202_v26  ;;  %v1208_v25 = vrot.slane %v1207_v33, 4  ;;  %v3997_v34 = vcombine.low %v1421_v44, %v1424_v47  ;;  %v1792_v51 = vrot.slane %v1790_v48, 5  ;;  %6314 = vst [vmem:[#allocation12_spill] sm:$0xff] %v5524_v22  ;;  %v293_v26 = vld [vmem:[%s4363_s19 + $0xa4] sm:$0x1] }
  0xfc   : > { %v5492_v18 = vpop.permute.xlu0 %2148  ;;  %v1796_v35 = vshll.u32 %v5490_v45, 16  ;;  %v1802_v59 = vrot.slane %v1800_v61, 4  ;;  %v4013_v27 = vcombine.low %v5483_v8, %v5490_v45  ;;  %v1806_v63 = vshll.u32 %v5511_v14, 16 }
  0xfd   : > { %v1213_v19 = vsel %vm4418_vm5, %v1208_v25, %v1212_v43  ;;  %v616_v33 = vshrl.u32 %v5514_v42, 16  ;;  %v1793_v7 = vor.u32 %v1792_v51, %v1789_v49  ;;  %v619_v48 = vshll.u32 %v5514_v42, 16 }
  0xfe   : > { %v3981_v44 = vcombine.low %v1203_v37, %v1213_v19  ;;  %v1798_v61 = vrot.slane %v1796_v35, 5  ;;  %v1808_v47 = vrot.slane %v1806_v63, 5  ;;  %v625_v25 = vshll.u32 %v5524_v22, 16 }
  0xff   : > { %2482 = vrot.lane.b32.xlu0 %v3997_v34, %s4313_s23  ;;  %v618_v43 = vrot.slane %v616_v33, 4  ;;  %v629_v60 = vshrl.u32 %v5524_v22, 16  ;;  %v1794_v24 = vrot.slane %v1793_v7, 4  ;;  %v621_v19 = vrot.slane %v619_v48, 5  ;;  %v5549_v33 = vld [vmem:[%s4363_s19 + $0xa8] sm:$0xf] }
 0x100   : > { %v5516_v36 = vpop.permute.xlu0 %2228  ;;  %2402 = vrot.lane.b32.xlu1 %v3981_v44, %s4314_s24  ;;  %v1803_v32 = vor.u32 %v1802_v59, %v1798_v61  ;;  %v635_v37 = vshll.u32 %v293_v26, 16  ;;  %v2798_v49 = vsel %vm2780_vm8, %v2765_v58, %v5315_v46  ;;  %v2757_v51 = vsel %vm2747_vm7, %v2713_v57, %v5326_v52  ;;  %v3817_v46 = vld [vmem:[%s4363_s19 + $0xac] sm:$0xf] }
 0x101   : > { %v627_v35 = vrot.slane %v625_v25, 5  ;;  %v631_v63 = vrot.slane %v629_v60, 4  ;;  %v1799_v44 = vsel %vm4418_vm5, %v1794_v24, %v1798_v61  ;;  %v622_v59 = vor.u32 %v621_v19, %v618_v43 }
 0x102   : > { %v5526_v54 = vpop.permute.xlu1 %2396  ;;  %v1804_v7 = vrot.slane %v1803_v32, 4  ;;  %v637_v48 = vrot.slane %v635_v37, 5  ;;  %v3774_v11 = vrot.slane %v5514_v42, 9  ;;  %v831_v28 = vrot.slane %v5524_v22, 5  ;;  %v3818_v37 = vld [vmem:[%s4363_s19 + $0xb0] sm:$0x1] }
 0x103   : > { %v632_v39 = vor.u32 %v631_v63, %v627_v35  ;;  %v834_v62 = vrot.slane %v293_v26, 5  ;;  %v623_v60 = vrot.slane %v622_v59, 4  ;;  %v1215_v24 = vshrl.u32 %v5549_v33, 16 }
 0x104   : > { %v5537_v53 = vpop.permute.xlu0 %2308  ;;  %2562 = vrot.lane.b32.xlu1 %v4013_v27, %s4311_s21  ;;  %v1809_v52 = vsel %vm4418_vm5, %v1804_v7, %v1808_v47  ;;  %v1218_v32 = vshll.u32 %v5549_v33, 16  ;;  %v832_v43 = vsel %vm4390_vm4, %v3774_v11, %v831_v28  ;;  %v833_v26 = vrot.slane %v831_v28, 4 }
 0x105   : > { %v4029_v57 = vcombine.low %v1799_v44, %v1809_v52  ;;  %v633_v61 = vrot.slane %v632_v39, 4  ;;  %v2831_v25 = vsel %vm2813_vm9, %v2798_v49, %v5341_v55  ;;  %v2790_v27 = vsel %vm2780_vm8, %v2757_v51, %v5356_v29 }
 0x106   : > { %v5542_v34 = vpop.permute.xlu1 %2476  ;;  %v628_v47 = vsel %vm4418_vm5, %v623_v60, %v627_v35  ;;  %v1228_v19 = vshrl.u32 %v3817_v46, 16  ;;  %v835_v28 = vsel %vm4390_vm4, %v833_v26, %v834_v62  ;;  %v3966_v11 = vcombine.low %v5549_v33, %v3817_v46 }
 0x107   : > { %2642 = vrot.lane.b32.xlu0 %v4029_v57, %s4316_s26  ;;  %v638_v39 = vsel %vm4418_vm5, %v633_v61, %v637_v48  ;;  %v1217_v55 = vrot.slane %v1215_v24, 4  ;;  %v3950_v49 = vcombine.low %v832_v43, %v835_v28  ;;  %v1220_v51 = vrot.slane %v1218_v32, 5  ;;  %v4269_v57 = vld [vmem:[%s4363_s19 + $0x78] sm:$0xf] }
 0x108   : > { %v3934_v29 = vcombine.low %v628_v47, %v638_v39  ;;  %v1224_v35 = vshll.u32 %v3817_v46, 16  ;;  %v1230_v7 = vrot.slane %v1228_v19, 4  ;;  %v1234_v59 = vshll.u32 %v3818_v37, 16  ;;  %v5592_v47 = vld [vmem:[%s4363_s19 + $0xb4] sm:$0xf] }
 0x109   : > { %v5556_v58 = vpop.permute.xlu0 %2388  ;;  %v3838_v52 = vrot.slane %v5549_v33, 9  ;;  %v1427_v48 = vrot.slane %v3817_v46, 5  ;;  %v1221_v62 = vor.u32 %v1220_v51, %v1217_v55  ;;  %v1430_v24 = vrot.slane %v3818_v37, 5  ;;  %v4270_v33 = vld [vmem:[%s4363_s19 + $0x7c] sm:$0xf] }
 0x10a   : > { %v5572_v63 = vpop.permute.xlu1 %2556  ;;  %2164 = vrot.lane.b32.xlu1 %v3934_v29, %s4315_s25  ;;  %v1226_v60 = vrot.slane %v1224_v35, 5  ;;  %v3897_v61 = vrot.slane %v4269_v57, 9  ;;  %v2864_v32 = vsel %vm2846_vm10, %v2831_v25, %v5372_v2  ;;  %v1988_v46 = vrot.slane %v4270_v33, 5  ;;  %v4271_v55 = vld [vmem:[%s4363_s19 + $0x80] sm:$0x1] }
 0x10b   : > { %2244 = vrot.lane.b32.xlu0 %v3950_v49, %s4312_s22  ;;  %v1428_v43 = vsel %vm4390_vm4, %v3838_v52, %v1427_v48  ;;  %v1429_v26 = vrot.slane %v1427_v48, 4  ;;  %v1222_v19 = vrot.slane %v1221_v62, 4  ;;  %v1236_v28 = vrot.slane %v1234_v59, 5  ;;  %v5596_v29 = vld [vmem:[%s4363_s19 + $0xb8] sm:$0xf] }
 0x10c   : > { %v1231_v39 = vor.u32 %v1230_v7, %v1226_v60  ;;  %v1991_v37 = vrot.slane %v4271_v55, 5  ;;  %v2823_v2 = vsel %vm2813_vm9, %v2790_v27, %v5388_v23  ;;  %v1989_v49 = vsel %vm4390_vm4, %v3897_v61, %v1988_v46  ;;  %v5619_v57 = vld [vmem:[%s4363_s19 + $0xbc] sm:$0x1]  ;;  %v5639_v55 = vld [vmem:[%s4363_s19 + $0xac] sm:$0xf] }
 0x10d   : > { %v5580_v44 = vpop.permute.xlu0 %2468  ;;  %v1431_v25 = vsel %vm4390_vm4, %v1429_v26, %v1430_v24  ;;  %v1990_v35 = vrot.slane %v1988_v46, 4  ;;  %v1227_v7 = vsel %vm4418_vm5, %v1222_v19, %v1226_v60  ;;  %v1811_v48 = vshrl.u32 %v5592_v47, 16  ;;  %v5629_v19 = vld [vmem:[%s4363_s19 + $0xa8] sm:$0xf] }
 0x10e   : > { %2324 = vrot.lane.b32.xlu1 %v3966_v11, %s4310_s20  ;;  %v1232_v59 = vrot.slane %v1231_v39, 4  ;;  %v3998_v52 = vcombine.low %v1428_v43, %v1431_v25  ;;  %v2897_v23 = vsel %vm2879_vm11, %v2864_v32, %v5398_v41  ;;  %v1814_v24 = vshll.u32 %v5592_v47, 16 }
 0x10f   : > { %v5598_v51 = vpop.permute.xlu1 %2636  ;;  %v1992_v27 = vsel %vm4390_vm4, %v1990_v35, %v1991_v37  ;;  %v1824_v11 = vshrl.u32 %v5596_v29, 16  ;;  %v2856_v60 = vsel %vm2846_vm10, %v2823_v2, %v5410_v5  ;;  %v2938_v41 = vsel %vm2912_vm12, %v2897_v23, %v5425_v6  ;;  %v4273_v23 = vld [vmem:[%s4363_s19 + $0x70] sm:$0xf] }
 0x110   : > { %v1237_v61 = vsel %vm4418_vm5, %v1232_v59, %v1236_v28  ;;  %v4041_v43 = vcombine.low %v1989_v49, %v1992_v27  ;;  %v1813_v26 = vrot.slane %v1811_v48, 4  ;;  %v1816_v33 = vrot.slane %v1814_v24, 5  ;;  %v4272_v48 = vld [vmem:[%s4363_s19 + $0x6c] sm:$0xf]  ;;  %v296_v24 = vld [vmem:[%s4363_s19 + $0xb0] sm:$0x1] }
 0x111   : > { %v5610_v62 = vpop.permute.xlu0 %2548  ;;  %v3982_v32 = vcombine.low %v1227_v7, %v1237_v61  ;;  %v1820_v46 = vshll.u32 %v5596_v29, 16  ;;  %v2889_v5 = vsel %vm2879_vm11, %v2856_v60, %v5440_v30  ;;  %v4014_v6 = vcombine.low %v5592_v47, %v5596_v29 }
 0x112   : > { %2484 = vrot.lane.b32.xlu1 %v3998_v52, %s4313_s23  ;;  %4066 = vmatprep.mubr.msk.bf16.mxu1 %vm2698_vm6, %v4041_v43  ;;  %v1826_v39 = vrot.slane %v1824_v11, 4  ;;  %v1830_v28 = vshll.u32 %v5619_v57, 16  ;;  %v1817_v2 = vor.u32 %v1816_v33, %v1813_v26  ;;  %v6315_v49 = vrot.slane %v4743_v31, 5 }
 0x113   : > { %2404 = vrot.lane.b32.xlu0 %v3982_v32, %s4314_s24  ;;  %3178 = vmatmul.mubr.bf16.vlgmr.msra.gmra.mrb[0].mxu1 %v2938_v41  ;;  %v1822_v25 = vrot.slane %v1820_v46, 5  ;;  %v6316_v30 = vrot.slane %v4734_v56, 9  ;;  %v3914_v27 = vcombine.low %v4272_v48, %v4273_v23  ;;  %v640_v11 = vshrl.u32 %v5629_v19, 16  ;;  %v5673_v48 = vld [vmem:[%s4363_s19 + $0xb4] sm:$0xf] }
 0x114   : > { %v6317_v7 = vmov %v6315_v49  ;;  %v1832_v52 = vrot.slane %v1830_v28, 5  ;;  %v643_v60 = vshll.u32 %v5629_v19, 16  ;;  %v1818_v43 = vrot.slane %v1817_v2, 4 }
 0x115   : > { %v5641_v37 = vpop.permute.xlu1 %2158  ;;  %v1961_v35 = vsel %vm4390_vm4, %v6316_v30, %v6315_v49  ;;  %v1962_v59 = vrot.slane %v6317_v7, 4  ;;  %v1827_v41 = vor.u32 %v1826_v39, %v1822_v25  ;;  %v6318_v56 = vrot.slane %v4760_v50, 5 }
 0x116   : > { %v649_v31 = vshll.u32 %v5639_v55, 16  ;;  %v642_v33 = vrot.slane %v640_v11, 4  ;;  %v645_v46 = vrot.slane %v643_v60, 5  ;;  %v653_v28 = vshrl.u32 %v5639_v55, 16 }
 0x117   : > { %v5657_v61 = vpop.permute.xlu0 %2628  ;;  %v1964_v32 = vsel %vm4390_vm4, %v1962_v59, %v6318_v56  ;;  %2564 = vrot.lane.b32.xlu0 %v4014_v6, %s4311_s21  ;;  %v1823_v49 = vsel %vm4418_vm5, %v1818_v43, %v1822_v25  ;;  %v1828_v39 = vrot.slane %v1827_v41, 4  ;;  %v659_v50 = vshll.u32 %v296_v24, 16  ;;  %v3820_v43 = vld [vmem:[%s4363_s19 + $0xb8] sm:$0xf] }
 0x118   : > { %v4037_v26 = vcombine.low %v1961_v35, %v1964_v32  ;;  %v651_v2 = vrot.slane %v649_v31, 5  ;;  %v646_v30 = vor.u32 %v645_v46, %v642_v33  ;;  %v655_v7 = vrot.slane %v653_v28, 4  ;;  %v4275_v33 = vld [vmem:[%s4363_s19 + $0x40] sm:$0xf] }
 0x119   : > { %v2926_v35 = vsel %vm2912_vm12, %v2889_v5, %v5461_v0  ;;  %v3775_v59 = vrot.slane %v5629_v19, 9  ;;  %v5675_v6 = vpop.permute.xlu1 %2238  ;;  %v1833_v25 = vsel %vm4418_vm5, %v1828_v39, %v1832_v52  ;;  %v2728_v23 = vsel %vm2698_vm6, %v3914_v27, %v5450_v10  ;;  %v4274_v52 = vld [vmem:[%s4363_s19 + $0x3c] sm:$0xf] }
 0x11a   : > { %4062 = vmatprep.mubr.msk.bf16.mxu0 %vm2698_vm6, %v4037_v26  ;;  %v838_v11 = vrot.slane %v5639_v55, 5  ;;  %v841_v60 = vrot.slane %v296_v24, 5  ;;  %v4030_v0 = vcombine.low %v1823_v49, %v1833_v25  ;;  %v647_v5 = vrot.slane %v646_v30, 4  ;;  %v3821_v39 = vld [vmem:[%s4363_s19 + $0xbc] sm:$0x1] }
 0x11b   : > { %3146 = vmatmul.mubr.bf16.gmra.mrb[16].mxu0 %v2926_v35  ;;  %v656_v41 = vor.u32 %v655_v7, %v651_v2  ;;  %v661_v56 = vrot.slane %v659_v50, 5  ;;  %v3910_v46 = vcombine.low %v4274_v52, %v4275_v33  ;;  %v1239_v10 = vshrl.u32 %v5673_v48, 16 }
 0x11c   : > { %v839_v31 = vsel %vm4390_vm4, %v3775_v59, %v838_v11  ;;  %v840_v26 = vrot.slane %v838_v11, 4  ;;  %2644 = vrot.lane.b32.xlu1 %v4030_v0, %s4316_s26  ;;  %v652_v27 = vsel %vm4418_vm5, %v647_v5, %v651_v2  ;;  %v1242_v28 = vshll.u32 %v5673_v48, 16  ;;  %v5703_v0 = vld [vmem:[%s4363_s19 + $0xc0] sm:$0xf] }
 0x11d   : > { %v657_v24 = vrot.slane %v656_v41, 4  ;;  %v1252_v49 = vshrl.u32 %v3820_v43, 16  ;;  %v2767_v7 = vsel %vm2747_vm7, %v2728_v23, %v5469_v16  ;;  %v1241_v35 = vrot.slane %v1239_v10, 4  ;;  %v5705_v5 = vpop.permute.xlu1 %2318 }
 0x11e   : > { %v842_v30 = vsel %vm4390_vm4, %v840_v26, %v841_v60  ;;  %v1244_v2 = vrot.slane %v1242_v28, 5  ;;  %v1248_v11 = vshll.u32 %v3820_v43, 16  ;;  %v2716_v52 = vsel %vm2698_vm6, %v3910_v46, %v5492_v18  ;;  %v5710_v26 = vld [vmem:[%s4363_s19 + $0xc4] sm:$0xf] }
 0x11f   : > { %v5683_v32 = vpop.permute.xlu0 %2150  ;;  %v662_v59 = vsel %vm4418_vm5, %v657_v24, %v661_v56  ;;  %v3951_v25 = vcombine.low %v839_v31, %v842_v30  ;;  %v1254_v33 = vrot.slane %v1252_v49, 4  ;;  %v1258_v60 = vshll.u32 %v3821_v39, 16  ;;  %6319 = vst [vmem:[#allocation13_spill] sm:$0xff] %v5710_v26 }
 0x120   : > { %v3935_v41 = vcombine.low %v652_v27, %v662_v59  ;;  %v3967_v16 = vcombine.low %v5673_v48, %v3820_v43  ;;  %v1245_v23 = vor.u32 %v1244_v2, %v1241_v35  ;;  %v1250_v56 = vrot.slane %v1248_v11, 5  ;;  %v5731_v2 = vld [vmem:[%s4363_s19 + $0xb4] sm:$0xf] }
 0x121   : > { %2246 = vrot.lane.b32.xlu1 %v3951_v25, %s4312_s22  ;;  %v3839_v31 = vrot.slane %v5673_v48, 9  ;;  %v1260_v27 = vrot.slane %v1258_v60, 5  ;;  %v1434_v18 = vrot.slane %v3820_v43, 5  ;;  %v1437_v46 = vrot.slane %v3821_v39, 5  ;;  %v5728_v39 = vld [vmem:[%s4363_s19 + $0xc8] sm:$0x1] }
 0x122   : > { %2166 = vrot.lane.b32.xlu0 %v3935_v41, %s4315_s25  ;;  %v1835_v24 = vshrl.u32 %v5703_v0, 16  ;;  %v1246_v28 = vrot.slane %v1245_v23, 4  ;;  %v1255_v49 = vor.u32 %v1254_v33, %v1250_v56  ;;  %v1838_v30 = vshll.u32 %v5703_v0, 16  ;;  %6320 = vst [vmem:[#allocation14_spill] sm:$0xff] %v5728_v39 }
 0x123   : > { %v5715_v10 = vpop.permute.xlu0 %2230  ;;  %v1848_v35 = vshrl.u32 %v5710_v26, 16  ;;  %v2800_v59 = vsel %vm2780_vm8, %v2767_v7, %v5494_v1  ;;  %v2759_v48 = vsel %vm2747_vm7, %v2716_v52, %v5516_v36  ;;  %v1435_v25 = vsel %vm4390_vm4, %v3839_v31, %v1434_v18  ;;  %v5744_v31 = vld [vmem:[%s4363_s19 + $0xb8] sm:$0xf] }
 0x124   : > { %v1436_v43 = vrot.slane %v1434_v18, 4  ;;  %v1251_v11 = vsel %vm4418_vm5, %v1246_v28, %v1250_v56  ;;  %v1256_v41 = vrot.slane %v1255_v49, 4  ;;  %v4015_v1 = vcombine.low %v5703_v0, %v5710_v26  ;;  %v5737_v33 = vpop.permute.xlu1 %2398 }
 0x125   : > { %v1837_v7 = vrot.slane %v1835_v24, 4  ;;  %v1840_v52 = vrot.slane %v1838_v30, 5  ;;  %v1844_v60 = vshll.u32 %v5710_v26, 16  ;;  %v1850_v23 = vrot.slane %v1848_v35, 4  ;;  %v299_v24 = vld [vmem:[%s4363_s19 + $0xbc] sm:$0x1] }
 0x126   : > { %2326 = vrot.lane.b32.xlu0 %v3967_v16, %s4310_s20  ;;  %v1438_v36 = vsel %vm4390_vm4, %v1436_v43, %v1437_v46  ;;  %v1261_v56 = vsel %vm4418_vm5, %v1256_v41, %v1260_v27  ;;  %v1854_v28 = vshll.u32 %v5728_v39, 16  ;;  %v664_v49 = vshrl.u32 %v5731_v2, 16 }
 0x127   : > { %v3999_v18 = vcombine.low %v1435_v25, %v1438_v36  ;;  %v5751_v50 = vpop.permute.xlu0 %2310  ;;  %v3983_v16 = vcombine.low %v1251_v11, %v1261_v56  ;;  %v1841_v42 = vor.u32 %v1840_v52, %v1837_v7  ;;  %v1846_v46 = vrot.slane %v1844_v60, 5 }
 0x128   : > { %v667_v30 = vshll.u32 %v5731_v2, 16  ;;  %v1856_v35 = vrot.slane %v1854_v28, 5  ;;  %v666_v43 = vrot.slane %v664_v49, 4  ;;  %v673_v22 = vshll.u32 %v5744_v31, 16  ;;  %v5763_v28 = vld [vmem:[%s4363_s19 + $0xc0] sm:$0xf]  ;;  %v5765_v49 = vpop.permute.xlu1 %2478 }
 0x129   : > { %v677_v27 = vshrl.u32 %v5744_v31, 16  ;;  %2406 = vrot.lane.b32.xlu1 %v3983_v16, %s4314_s24  ;;  %v1842_v25 = vrot.slane %v1841_v42, 4  ;;  %v1851_v41 = vor.u32 %v1850_v23, %v1846_v46  ;;  %v683_v11 = vshll.u32 %v299_v24, 16 }
 0x12a   : > { %2486 = vrot.lane.b32.xlu0 %v3999_v18, %s4313_s23  ;;  %v669_v36 = vrot.slane %v667_v30, 5  ;;  %v2833_v7 = vsel %vm2813_vm9, %v2800_v59, %v5526_v54  ;;  %v2792_v52 = vsel %vm2780_vm8, %v2759_v48, %v5537_v53  ;;  %v675_v60 = vrot.slane %v673_v22, 5  ;;  %v3823_v53 = vld [vmem:[%s4363_s19 + $0xc4] sm:$0xf] }
 0x12b   : > { %v679_v56 = vrot.slane %v677_v27, 4  ;;  %v1847_v18 = vsel %vm4418_vm5, %v1842_v25, %v1846_v46  ;;  %v1852_v42 = vrot.slane %v1851_v41, 4  ;;  %v685_v16 = vrot.slane %v683_v11, 5  ;;  %v5772_v22 = vpop.permute.xlu0 %2390 }
 0x12c   : > { %v670_v23 = vor.u32 %v669_v36, %v666_v43  ;;  %v3776_v39 = vrot.slane %v5731_v2, 9  ;;  %v845_v54 = vrot.slane %v5744_v31, 5  ;;  %v848_v59 = vrot.slane %v299_v24, 5 }
 0x12d   : > { %v680_v30 = vor.u32 %v679_v56, %v675_v60  ;;  %2566 = vrot.lane.b32.xlu1 %v4015_v1, %s4311_s21  ;;  %v1857_v48 = vsel %vm4418_vm5, %v1852_v42, %v1856_v35  ;;  %v1263_v46 = vshrl.u32 %v5763_v28, 16  ;;  %v1266_v43 = vshll.u32 %v5763_v28, 16  ;;  %v3824_v42 = vld [vmem:[%s4363_s19 + $0xc8] sm:$0x1] }
 0x12e   : > { %v671_v27 = vrot.slane %v670_v23, 4  ;;  %v4031_v25 = vcombine.low %v1847_v18, %v1857_v48  ;;  %v846_v36 = vsel %vm4390_vm4, %v3776_v39, %v845_v54  ;;  %v847_v24 = vrot.slane %v845_v54, 4 }
 0x12f   : > { %v681_v41 = vrot.slane %v680_v30, 4  ;;  %v2866_v1 = vsel %vm2846_vm10, %v2833_v7, %v5542_v34  ;;  %v2825_v35 = vsel %vm2813_vm9, %v2792_v52, %v5556_v58  ;;  %v1276_v56 = vshrl.u32 %v3823_v53, 16  ;;  %v5797_v26 = vpop.permute.xlu0 %2470 }
 0x130   : > { %v676_v11 = vsel %vm4418_vm5, %v671_v27, %v675_v60  ;;  %2646 = vrot.lane.b32.xlu0 %v4031_v25, %s4316_s26  ;;  %v849_v39 = vsel %vm4390_vm4, %v847_v24, %v848_v59  ;;  %v3968_v23 = vcombine.low %v5763_v28, %v3823_v53  ;;  %v1265_v30 = vrot.slane %v1263_v46, 4  ;;  %v5794_v60 = vpop.permute.xlu1 %2558 }
 0x131   : > { %v686_v18 = vsel %vm4418_vm5, %v681_v41, %v685_v16  ;;  %v3952_v7 = vcombine.low %v846_v36, %v849_v39  ;;  %v1268_v54 = vrot.slane %v1266_v43, 5  ;;  %v1272_v58 = vshll.u32 %v3823_v53, 16  ;;  %v5807_v36 = vld [vmem:[%s4363_s19 + $0xcc] sm:$0xf] }
 0x132   : > { %v3936_v34 = vcombine.low %v676_v11, %v686_v18  ;;  %v1278_v52 = vrot.slane %v1276_v56, 4  ;;  %v1282_v48 = vshll.u32 %v3824_v42, 16  ;;  %v3840_v27 = vrot.slane %v5763_v28, 9 }
 0x133   : > { %v1441_v25 = vrot.slane %v3823_v53, 5  ;;  %v1269_v16 = vor.u32 %v1268_v54, %v1265_v30  ;;  %v1274_v59 = vrot.slane %v1272_v58, 5  ;;  %v1444_v46 = vrot.slane %v3824_v42, 5  ;;  %v5830_v58 = vld [vmem:[%s4363_s19 + $0xd4] sm:$0x1] }
 0x134   : > { %2168 = vrot.lane.b32.xlu1 %v3936_v34, %s4315_s25  ;;  %v6321_v41 = vrot.slane %v4847_v9, 5  ;;  %v6322_v24 = vrot.slane %v4836_v38, 9  ;;  %2248 = vrot.lane.b32.xlu0 %v3952_v7, %s4312_s22  ;;  %v2899_v28 = vsel %vm2879_vm11, %v2866_v1, %v5572_v63  ;;  %v1284_v39 = vrot.slane %v1282_v48, 5  ;;  %v5819_v34 = vld [vmem:[%s4363_s19 + $0xd0] sm:$0xf] }
 0x135   : > { %v1442_v53 = vsel %vm4390_vm4, %v3840_v27, %v1441_v25  ;;  %v1443_v11 = vrot.slane %v1441_v25, 4  ;;  %v1270_v18 = vrot.slane %v1269_v16, 4  ;;  %v1279_v38 = vor.u32 %v1278_v52, %v1274_v59  ;;  %v5832_v52 = vpop.permute.xlu1 %2638 }
 0x136   : > { %v1996_v43 = vsel %vm4390_vm4, %v6322_v24, %v6321_v41  ;;  %v6323_v56 = vmov %v6321_v41  ;;  %v2941_v30 = vsel %vm2912_vm12, %v2899_v28, %v5598_v51  ;;  %v6324_v63 = vrot.slane %v4872_v4, 5  ;;  %v5840_v24 = vpop.permute.xlu0 %2550 }
 0x137   : > { %v1997_v42 = vrot.slane %v6323_v56, 4  ;;  %v1445_v7 = vsel %vm4390_vm4, %v1443_v11, %v1444_v46  ;;  %v1859_v54 = vshrl.u32 %v5807_v36, 16  ;;  %v1862_v9 = vshll.u32 %v5807_v36, 16 }
 0x138   : > { %2328 = vrot.lane.b32.xlu1 %v3968_v23, %s4310_s20  ;;  %v1275_v51 = vsel %vm4418_vm5, %v1270_v18, %v1274_v59  ;;  %v1280_v48 = vrot.slane %v1279_v38, 4  ;;  %v4000_v4 = vcombine.low %v1442_v53, %v1445_v7  ;;  %v2858_v25 = vsel %vm2846_vm10, %v2825_v35, %v5580_v44  ;;  %v4276_v53 = vld [vmem:[%s4363_s19 + $0x78] sm:$0xf] }
 0x139   : > { %v1999_v1 = vsel %vm4390_vm4, %v1997_v42, %v6324_v63  ;;  %v1872_v16 = vshrl.u32 %v5819_v34, 16  ;;  %v1861_v46 = vrot.slane %v1859_v54, 4  ;;  %v1864_v41 = vrot.slane %v1862_v9, 5 }
 0x13a   : > { %v4042_v27 = vcombine.low %v1996_v43, %v1999_v1  ;;  %v1285_v28 = vsel %vm4418_vm5, %v1280_v48, %v1284_v39  ;;  %v1868_v23 = vshll.u32 %v5819_v34, 16  ;;  %v1878_v59 = vshll.u32 %v5830_v58, 16  ;;  %v4277_v43 = vld [vmem:[%s4363_s19 + $0x7c] sm:$0xf]  ;;  %v4279_v48 = vld [vmem:[%s4363_s19 + $0x4c] sm:$0xf] }
 0x13b   : > { %v3915_v11 = vcombine.low %v4276_v53, %v4277_v43  ;;  %v3984_v44 = vcombine.low %v1275_v51, %v1285_v28  ;;  %v1865_v35 = vor.u32 %v1864_v41, %v1861_v46  ;;  %v1874_v56 = vrot.slane %v1872_v16, 4  ;;  %v4278_v51 = vld [vmem:[%s4363_s19 + $0x48] sm:$0xf] }
 0x13c   : > { %4067 = vmatprep.mubr.msk.bf16.mxu1 %vm2698_vm6, %v4042_v27  ;;  %v6325_v42 = vrot.slane %v4895_v15, 5  ;;  %v6326_v18 = vrot.slane %v4883_v20, 9  ;;  %2488 = vrot.lane.b32.xlu1 %v4000_v4, %s4313_s23  ;;  %v2891_v39 = vsel %vm2879_vm11, %v2858_v25, %v5610_v62  ;;  %v1870_v7 = vrot.slane %v1868_v23, 5  ;;  %s3760_s23 = sshll.u32 %s6364_s12, 1 }
 0x13d   : > { %3186 = vmatmul.mubr.bf16.gmra.mrb[4].mxu1 %v2941_v30  ;;  %v2731_v63 = vsel %vm2698_vm6, %v3915_v11, %v5641_v37  ;;  %2408 = vrot.lane.b32.xlu0 %v3984_v44, %s4314_s24  ;;  %v4016_v20 = vcombine.low %v5807_v36, %v5819_v34  ;;  %v1866_v54 = vrot.slane %v1865_v35, 4  ;;  %v3911_v4 = vcombine.low %v4278_v51, %v4279_v48  ;;  %v6340_v51 = vld [vmem:[#allocation6_spill] sm:$0xff] }
 0x13e   : > { %v1968_v38 = vsel %vm4390_vm4, %v6326_v18, %v6325_v42  ;;  %v6327_v30 = vmov %v6325_v42  ;;  %v2769_v9 = vsel %vm2747_vm7, %v2731_v63, %v5675_v6  ;;  %v5869_v62 = vpop.permute.xlu1 %2160  ;;  %v1875_v27 = vor.u32 %v1874_v56, %v1870_v7  ;;  %v6333_v42 = vld [vmem:[#allocation2_spill] sm:$0xff] }
 0x13f   : > { %v1969_v1 = vrot.slane %v6327_v30, 4  ;;  %v1880_v25 = vrot.slane %v1878_v59, 5  ;;  %v6328_v37 = vrot.slane %v4934_v3, 5  ;;  %v6329_v16 = vrot.slane %v5085_v12, 5  ;;  %v2631_v3 = vpop.permute.xlu0 %2630  ;;  %v6336_v30 = vld [vmem:[#allocation3_spill] sm:$0xff] }
 0x140   : > { %v6330_v46 = vrot.slane %v5077_v21, 9  ;;  %v2016_v6 = vrot.slane %v5490_v45, 5  ;;  %v2929_v23 = vsel %vm2912_vm12, %v2891_v39, %v5657_v61  ;;  %v2802_v59 = vsel %vm2780_vm8, %v2769_v9, %v5705_v5 }
 0x141   : > { %v1971_v15 = vsel %vm4390_vm4, %v1969_v1, %v6328_v37  ;;  %v1871_v53 = vsel %vm4418_vm5, %v1866_v54, %v1870_v7  ;;  %v1876_v43 = vrot.slane %v1875_v27, 4  ;;  %v2835_v21 = vsel %vm2813_vm9, %v2802_v59, %v5737_v33  ;;  %2568 = vrot.lane.b32.xlu0 %v4016_v20, %s4311_s21  ;;  %v6338_v54 = vld [vmem:[#allocation4_spill] sm:$0xff]  ;;  %v6343_v37 = vld [vmem:[#allocation5_spill] sm:$0xff] }
 0x142   : > { %v2003_v41 = vsel %vm4390_vm4, %v6330_v46, %v6329_v16  ;;  %v4038_v28 = vcombine.low %v1968_v38, %v1971_v15  ;;  %v6331_v11 = vmov %v6329_v16  ;;  %v2019_v45 = vrot.slane %v5511_v14, 5  ;;  %v2241_v7 = vpop.permute.xlu1 %2240  ;;  %v6345_v16 = vld [vmem:[#allocation9_spill] sm:$0xff]  ;;  %v6347_v46 = vld [vmem:[#allocation8_spill] sm:$0xff] }
 0x143   : > { %v2004_v44 = vrot.slane %v6331_v11, 4  ;;  %v2719_v61 = vsel %vm2698_vm6, %v3911_v4, %v5683_v32  ;;  %v2868_v5 = vsel %vm2846_vm10, %v2835_v21, %v5765_v49  ;;  %v6332_v35 = vrot.slane %v5129_v13, 5 }
 0x144   : > { %4063 = vmatprep.mubr.msk.bf16.mxu0 %vm2698_vm6, %v4038_v28  ;;  %v1881_v33 = vsel %vm4418_vm5, %v1876_v43, %v1880_v25  ;;  %v2761_v12 = vsel %vm2747_vm7, %v2719_v61, %v5715_v10  ;;  %v2901_v14 = vsel %vm2879_vm11, %v2868_v5, %v5794_v60  ;;  %v6334_v18 = vrot.slane %v6333_v42, 5  ;;  %v6350_v43 = vld [vmem:[#allocation7_spill] sm:$0xff] }
 0x145   : > { %v1976_v56 = vrot.slane %v6332_v35, 4  ;;  %3154 = vmatmul.mubr.bf16.gmra.mrb[20].mxu0 %v2929_v23  ;;  %v4032_v38 = vcombine.low %v1871_v53, %v1881_v33  ;;  %v2794_v49 = vsel %vm2780_vm8, %v2761_v12, %v5751_v50  ;;  %v2944_v40 = vsel %vm2912_vm12, %v2901_v14, %v5832_v52 }
 0x146   : > { %v2006_v32 = vsel %vm4390_vm4, %v2004_v44, %v6334_v18  ;;  %v3902_v63 = vrot.slane %v5592_v47, 9  ;;  %v2827_v10 = vsel %vm2813_vm9, %v2794_v49, %v5772_v22  ;;  %v6335_v60 = vmov %v6332_v35  ;;  %v2153_v22 = vpop.permute.xlu0 %2152  ;;  %v6353_v35 = vld [vmem:[#allocation10_spill] sm:$0xff]  ;;  %v2321_v12 = vpop.permute.xlu1 %2320 }
 0x147   : > { %v4043_v39 = vcombine.low %v2003_v41, %v2006_v32  ;;  %v6337_v1 = vrot.slane %v6336_v30, 9  ;;  %v6339_v9 = vrot.slane %v6338_v54, 5  ;;  %v2023_v52 = vrot.slane %v5596_v29, 5  ;;  %2648 = vrot.lane.b32.xlu1 %v4032_v38, %s4316_s26  ;;  %s6155_s26 = scalar_lea.vmem %s6279_s3, %s3760_s23 }
 0x148   : > { %v2860_v47 = vsel %vm2846_vm10, %v2827_v10, %v5797_v26  ;;  %v6341_v48 = vrot.slane %v6340_v51, 5  ;;  %v6344_v29 = vrot.slane %v6343_v37, 9  ;;  %v6346_v26 = vrot.slane %v6345_v16, 5  ;;  %v6356_v10 = vld [vmem:[#allocation14_spill] sm:$0xff]  ;;  %v4281_v51 = vld [vmem:[%s4363_s19 + $0x88] sm:$0xf] }
 0x149   : > { %v1975_v20 = vsel %vm4390_vm4, %v6337_v1, %v6335_v60  ;;  %v1978_v50 = vsel %vm4390_vm4, %v1976_v56, %v6339_v9  ;;  %4068 = vmatprep.mubr.msk.bf16.mxu1 %vm2698_vm6, %v4043_v39  ;;  %v2893_v27 = vsel %vm2879_vm11, %v2860_v47, %v5840_v24  ;;  %v6348_v41 = vrot.slane %v6347_v46, 9  ;;  %v4283_v46 = vld [vmem:[%s4363_s19 + $0x58] sm:$0xf] }
 0x14a   : > { %v4039_v13 = vcombine.low %v1975_v20, %v1978_v50  ;;  %v2011_v4 = vrot.slane %v6341_v48, 4  ;;  %3194 = vmatmul.mubr.bf16.gmra.mrb[8].mxu1 %v2944_v40  ;;  %v6342_v25 = vmov %v6341_v48  ;;  %v6349_v23 = vmov %v6346_v26  ;;  %v2233_v14 = vpop.permute.xlu0 %2232  ;;  %v6355_v40 = vld [vmem:[#allocation13_spill] sm:$0xff] }
 0x14b   : > { %v2010_v15 = vsel %vm4390_vm4, %v6344_v29, %v6342_v25  ;;  %v1982_v28 = vsel %vm4390_vm4, %v6348_v41, %v6346_v26  ;;  %v1983_v59 = vrot.slane %v6349_v23, 4  ;;  %v2026_v24 = vrot.slane %v5619_v57, 5  ;;  %v4282_v26 = vld [vmem:[%s4363_s19 + $0x54] sm:$0xf] }
 0x14c   : > { %4064 = vmatprep.mubr.msk.bf16.mxu0 %vm2698_vm6, %v4039_v13  ;;  %v2932_v53 = vsel %vm2912_vm12, %v2893_v27, %v2631_v3  ;;  %v6351_v21 = vrot.slane %v6350_v43, 5  ;;  %v6352_v44 = vrot.slane %v5483_v8, 9  ;;  %v6354_v56 = vrot.slane %v6353_v35, 5  ;;  %v4280_v13 = vld [vmem:[%s4363_s19 + $0x84] sm:$0xf] }
 0x14d   : > { %v2018_v33 = vrot.slane %v2016_v6, 4  ;;  %v5968_v42 = vsel %vm4390_vm4, %v3902_v63, %v2023_v52  ;;  %v2025_v18 = vrot.slane %v2023_v52, 4  ;;  %v3919_v8 = vcombine.low %v5629_v19, %v5639_v55  ;;  %3162 = vmatmul.mubr.bf16.gmra.mrb[24].mxu0 %v2932_v53 }
 0x14e   : > { %v2013_v11 = vsel %vm4390_vm4, %v2011_v4, %v6351_v21  ;;  %v2017_v61 = vsel %vm4390_vm4, %v6352_v44, %v2016_v6  ;;  %v1985_v57 = vsel %vm4390_vm4, %v1983_v59, %v6354_v56  ;;  %v3920_v6 = vcombine.low %v5731_v2, %v5744_v31  ;;  %v2313_v47 = vpop.permute.xlu0 %2312  ;;  %v4284_v56 = vld [vmem:[%s4363_s19 + $0x90] sm:$0xf] }
 0x14f   : > { %v4044_v5 = vcombine.low %v2010_v15, %v2013_v11  ;;  %v4040_v3 = vcombine.low %v1982_v28, %v1985_v57  ;;  %v2020_v32 = vsel %vm4390_vm4, %v2018_v33, %v2019_v45  ;;  %v3903_v38 = vrot.slane %v5703_v0, 9  ;;  %v2401_v52 = vpop.permute.xlu1 %2400  ;;  %v4285_v57 = vld [vmem:[%s4363_s19 + $0x94] sm:$0xf]  ;;  %s4108_s19 = sshll.u32 %s6364_s12, 7 }
 0x150   : > { %v4045_v49 = vcombine.low %v2017_v61, %v2020_v32  ;;  %v5981_v39 = vsel %vm4390_vm4, %v2025_v18, %v2026_v24  ;;  %v2030_v63 = vrot.slane %v6355_v40, 5  ;;  %v2033_v60 = vrot.slane %v6356_v10, 5  ;;  %s6060_s22 = scalar_lea.vmem %s6278_s2, %s4108_s19 }
 0x151   : > { %4069 = vmatprep.mubr.msk.bf16.mxu1 %vm2698_vm6, %v4044_v5  ;;  %4065 = vmatprep.mubr.msk.bf16.mxu0 %vm2698_vm6, %v4040_v3  ;;  %v4046_v45 = vcombine.low %v5968_v42, %v5981_v39  ;;  %v3904_v30 = vrot.slane %v5807_v36, 9  ;;  %v2037_v0 = vrot.slane %v5819_v34, 5  ;;  %v2040_v1 = vrot.slane %v5830_v58, 5 }
 0x152   : > { %v5992_v20 = vsel %vm4390_vm4, %v3903_v38, %v2030_v63  ;;  %v2032_v54 = vrot.slane %v2030_v63, 4  ;;  %v3916_v48 = vcombine.low %v4280_v13, %v4281_v51  ;;  %v3912_v17 = vcombine.low %v4282_v26, %v4283_v46 }
 0x153   : > { %v5996_v9 = vsel %vm4390_vm4, %v3904_v30, %v2037_v0  ;;  %v2039_v50 = vrot.slane %v2037_v0, 4  ;;  %v2481_v27 = vpop.permute.xlu1 %2480  ;;  %v3917_v33 = vcombine.low %v4284_v56, %v4285_v57 }
 0x154   : > { %v6000_v36 = vsel %vm4390_vm4, %v2032_v54, %v2033_v60  ;;  %v2734_v25 = vsel %vm2698_vm6, %v3916_v48, %v5869_v62  ;;  %v2722_v24 = vsel %vm2698_vm6, %v3912_v17, %v2153_v22  ;;  %v6357_v54 = vld [vmem:[#allocation12_spill] sm:$0xff] }
 0x155   : > { %v4047_v34 = vcombine.low %v5992_v20, %v6000_v36  ;;  %v6006_v58 = vsel %vm4390_vm4, %v2039_v50, %v2040_v1  ;;  %v2393_v37 = vpop.permute.xlu0 %2392  ;;  %v2771_v29 = vsel %vm2747_vm7, %v2734_v25, %v2241_v7  ;;  %v2763_v7 = vsel %vm2747_vm7, %v2722_v24, %v2233_v14  ;;  %v6358_v50 = vld [vmem:[#allocation11_spill] sm:$0xff] }
 0x156   : > { %v4048_v4 = vcombine.low %v5996_v9, %v6006_v58  ;;  %v2804_v41 = vsel %vm2780_vm8, %v2771_v29, %v2321_v12  ;;  %v2796_v21 = vsel %vm2780_vm8, %v2763_v7, %v2313_v47 }
 0x157   : > { %v2561_v15 = vpop.permute.xlu1 %2560  ;;  %v2837_v28 = vsel %vm2813_vm9, %v2804_v41, %v2401_v52  ;;  %v2829_v11 = vsel %vm2813_vm9, %v2796_v21, %v2393_v37  ;;  %v3918_v52 = vcombine.low %v6358_v50, %v6357_v54 }
 0x158   : > { %v2870_v23 = vsel %vm2846_vm10, %v2837_v28, %v2481_v27 }
 0x159   : > { %v2473_v16 = vpop.permute.xlu0 %2472  ;;  %v2903_v62 = vsel %vm2879_vm11, %v2870_v23, %v2561_v15 }
 0x15a   : > { %v2862_v44 = vsel %vm2846_vm10, %v2829_v11, %v2473_v16 }
 0x15d   : > { %v2553_v59 = vpop.permute.xlu0 %2552 }
 0x15e   : > { %v2895_v61 = vsel %vm2879_vm11, %v2862_v44, %v2553_v59 }
 0x15f   : > { %v2641_v53 = vpop.permute.xlu1 %2640 }
 0x160   : > { %v2947_v43 = vsel %vm2912_vm12, %v2903_v62, %v2641_v53 }
 0x161   : > { %3202 = vmatmul.mubr.bf16.gmra.mrb[12].mxu1 %v2947_v43 }
 0x162   : > { %4070 = vmatprep.mubr.msk.bf16.mxu1 %vm2698_vm6, %v4045_v49 }
 0x164   : > { %v2633_v22 = vpop.permute.xlu0 %2632 }
 0x165   : > { %v2935_v5 = vsel %vm2912_vm12, %v2895_v61, %v2633_v22 }
 0x166   : > { %3170 = vmatmul.mubr.bf16.gmra.mrb[28].mxu0 %v2935_v5 }
 0x168   : > { %v2243_v12 = vpop.permute.xlu1 %2242 }
 0x169   : > { %v2163_v35 = vpop.permute.xlu0 %2162 }
 0x16a   : > { %v2737_v3 = vsel %vm2698_vm6, %v3917_v33, %v2163_v35 }
 0x16b   : > { %v2773_v18 = vsel %vm2747_vm7, %v2737_v3, %v2243_v12 }
 0x16d   : > { %v2323_v14 = vpop.permute.xlu0 %2322 }
 0x16e   : > { %v2806_v32 = vsel %vm2780_vm8, %v2773_v18, %v2323_v14 }
 0x171   : > { %v2483_v49 = vpop.permute.xlu0 %2482 }
 0x172   : > { %v2403_v38 = vpop.permute.xlu1 %2402 }
 0x173   : > { %v2839_v40 = vsel %vm2813_vm9, %v2806_v32, %v2403_v38 }
 0x174   : > { %v2872_v63 = vsel %vm2846_vm10, %v2839_v40, %v2483_v49 }
 0x176   : > { %v2563_v10 = vpop.permute.xlu1 %2562 }
 0x177   : > { %v2905_v60 = vsel %vm2879_vm11, %v2872_v63, %v2563_v10 }
 0x179   : > { %v2643_v30 = vpop.permute.xlu0 %2642 }
 0x17a   : > { %v2950_v0 = vsel %vm2912_vm12, %v2905_v60, %v2643_v30 }
 0x17b   : > { %3210 = vmatmul.mubr.bf16.gmra.mrb[16].mxu1 %v2950_v0 }
 0x17c   : > { %v2165_v1 = vpop.permute.xlu1 %2164  ;;  %4071 = vmatprep.mubr.msk.bf16.mxu1 %vm2698_vm6, %v4046_v45 }
 0x17d   : > { %v2245_v47 = vpop.permute.xlu0 %2244  ;;  %v2740_v51 = vsel %vm2698_vm6, %v3918_v52, %v2165_v1 }
 0x17e   : > { %v2775_v48 = vsel %vm2747_vm7, %v2740_v51, %v2245_v47 }
 0x180   : > { %v2325_v13 = vpop.permute.xlu1 %2324 }
 0x181   : > { %v2808_v25 = vsel %vm2780_vm8, %v2775_v48, %v2325_v13 }
 0x184   : > { %v2485_v29 = vpop.permute.xlu1 %2484 }
 0x185   : > { %v2405_v27 = vpop.permute.xlu0 %2404 }
 0x186   : > { %v2841_v37 = vsel %vm2813_vm9, %v2808_v25, %v2405_v27 }
 0x187   : > { %v2874_v42 = vsel %vm2846_vm10, %v2841_v37, %v2485_v29 }
 0x189   : > { %v2565_v15 = vpop.permute.xlu0 %2564 }
 0x18a   : > { %v2907_v39 = vsel %vm2879_vm11, %v2874_v42, %v2565_v15 }
 0x18e   : > { %v2645_v45 = vpop.permute.xlu1 %2644 }
 0x18f   : > { %v2953_v16 = vsel %vm2912_vm12, %v2907_v39, %v2645_v45 }
 0x190   : > { %3218 = vmatmul.mubr.bf16.gmra.mrb[20].mxu1 %v2953_v16 }
 0x191   : > { %4072 = vmatprep.mubr.msk.bf16.mxu1 %vm2698_vm6, %v4047_v34 }
 0x193   : > { %v2247_v23 = vpop.permute.xlu1 %2246 }
 0x194   : > { %v2167_v26 = vpop.permute.xlu0 %2166 }
 0x195   : > { %v2743_v53 = vsel %vm2698_vm6, %v3919_v8, %v2167_v26 }
 0x196   : > { %v3115_v46 = vpop.f32.mrb[0].mxu0  ;;  %v2777_v61 = vsel %vm2747_vm7, %v2743_v53, %v2247_v23 }
 0x197   : > { %v4109_v17 = vpack.c.bf16 %v3115_v46, %v3115_v46  ;;  %v3472_v41 = vmul.f32 %v3115_v46, %v3115_v46  ;;  %v3117_v28 = vpop.f32.mrb[1].mxu0  ;;  %v3403_v20 = vsel %vm2698_vm6, %v3115_v46, 0.0 }
 0x198   : > { %v3118_v59 = vpop.f32.mrb[2].mxu0  ;;  %v2327_v7 = vpop.permute.xlu0 %2326 }
 0x199   : > { %3371 = vst.msk [vmem:[%s6060_s22] sm:$0xf] %vm3370_vm13, %v4109_v17  ;;  %v4110_v36 = vpack.c.bf16 %v3118_v59, %v3118_v59  ;;  %v3404_v34 = vsel %vm2698_vm6, %v3118_v59, 0.0  ;;  %v3473_v24 = vmul.f32 %v3118_v59, %v3118_v59  ;;  %v3120_v62 = vpop.f32.mrb[3].mxu0  ;;  %v3504_v21 = vsel %vm2698_vm6, %v3472_v41, 0.0 }
 0x19a   : > { %v3405_v43 = vadd.f32 %v3404_v34, %v3403_v20  ;;  %v2810_v22 = vsel %vm2780_vm8, %v2777_v61, %v2327_v7 }
 0x19b   : > { %3372 = vst.msk [vmem:[%s6060_s22 + $0x4] sm:$0xf] %vm3370_vm13, %v4110_v36  ;;  %v3505_v11 = vsel %vm2698_vm6, %v3473_v24, 0.0  ;;  %v2407_v5 = vpop.permute.xlu1 %2406 }
 0x19c   : > { %v3506_v44 = vadd.f32 %v3505_v11, %v3504_v21  ;;  %v2487_v35 = vpop.permute.xlu0 %2486  ;;  %v2843_v56 = vsel %vm2813_vm9, %v2810_v22, %v2407_v5 }
 0x19d   : > { %v2876_v19 = vsel %vm2846_vm10, %v2843_v56, %v2487_v35 }
 0x19f   : > { %v2567_v55 = vpop.permute.xlu1 %2566 }
 0x1a0   : > { %v2909_v8 = vsel %vm2879_vm11, %v2876_v19, %v2567_v55 }
 0x1a2   : > { %v2647_v57 = vpop.permute.xlu0 %2646 }
 0x1a3   : > { %v2956_v33 = vsel %vm2912_vm12, %v2909_v8, %v2647_v57 }
 0x1a4   : > { %3226 = vmatmul.mubr.bf16.gmra.mrb[24].mxu1 %v2956_v33 }
 0x1a5   : > { %4073 = vmatprep.mubr.msk.bf16.mxu1 %vm2698_vm6, %v4048_v4 }
 0x1a6   : > { %v3123_v12 = vpop.f32.mrb[4].mxu0  ;;  %v2169_v14 = vpop.permute.xlu1 %2168 }
 0x1a7   : > { %v4111_v3 = vpack.c.bf16 %v3123_v12, %v3123_v12  ;;  %v3406_v18 = vsel %vm2698_vm6, %v3123_v12, 0.0  ;;  %v3474_v32 = vmul.f32 %v3123_v12, %v3123_v12  ;;  %v3125_v38 = vpop.f32.mrb[5].mxu0  ;;  %v2249_v0 = vpop.permute.xlu0 %2248  ;;  %v2746_v50 = vsel %vm2698_vm6, %v3920_v6, %v2169_v14 }
 0x1a8   : > { %v3407_v49 = vadd.f32 %v3406_v18, %v3405_v43  ;;  %v3126_v40 = vpop.f32.mrb[6].mxu0  ;;  %v2779_v47 = vsel %vm2747_vm7, %v2746_v50, %v2249_v0 }
 0x1a9   : > { %3373 = vst.msk [vmem:[%s6060_s22 + $0x8] sm:$0xf] %vm3370_vm13, %v4111_v3  ;;  %v3507_v63 = vsel %vm2698_vm6, %v3474_v32, 0.0  ;;  %v4112_v10 = vpack.c.bf16 %v3126_v40, %v3126_v40  ;;  %v3408_v60 = vsel %vm2698_vm6, %v3126_v40, 0.0  ;;  %v3128_v30 = vpop.f32.mrb[7].mxu0  ;;  %v3475_v4 = vmul.f32 %v3126_v40, %v3126_v40 }
 0x1aa   : > { %v3508_v9 = vadd.f32 %v3507_v63, %v3506_v44  ;;  %v3409_v58 = vadd.f32 %v3408_v60, %v3407_v49  ;;  %v2329_v1 = vpop.permute.xlu1 %2328 }
 0x1ab   : > { %3374 = vst.msk [vmem:[%s6060_s22 + $0xc] sm:$0xf] %vm3370_vm13, %v4112_v10  ;;  %v3509_v54 = vsel %vm2698_vm6, %v3475_v4, 0.0  ;;  %v2812_v51 = vsel %vm2780_vm8, %v2779_v47, %v2329_v1 }
 0x1ac   : > { %v3510_v52 = vadd.f32 %v3509_v54, %v3508_v9 }
 0x1ae   : > { %v2489_v27 = vpop.permute.xlu1 %2488 }
 0x1af   : > { %v2409_v13 = vpop.permute.xlu0 %2408 }
 0x1b0   : > { %v2845_v48 = vsel %vm2813_vm9, %v2812_v51, %v2409_v13 }
 0x1b1   : > { %v2878_v37 = vsel %vm2846_vm10, %v2845_v48, %v2489_v27 }
 0x1b3   : > { %v2569_v25 = vpop.permute.xlu0 %2568 }
 0x1b4   : > { %v2911_v29 = vsel %vm2879_vm11, %v2878_v37, %v2569_v25 }
 0x1b9   : > { %v3131_v15 = vpop.f32.mrb[8].mxu0  ;;  %v2649_v42 = vpop.permute.xlu1 %2648 }
 0x1ba   : > { %v4113_v2 = vpack.c.bf16 %v3131_v15, %v3131_v15  ;;  %v3410_v31 = vsel %vm2698_vm6, %v3131_v15, 0.0  ;;  %v3476_v6 = vmul.f32 %v3131_v15, %v3131_v15  ;;  %v3133_v39 = vpop.f32.mrb[9].mxu0  ;;  %v2959_v45 = vsel %vm2912_vm12, %v2911_v29, %v2649_v42 }
 0x1bb   : > { %v3411_v16 = vadd.f32 %v3410_v31, %v3409_v58  ;;  %v3134_v26 = vpop.f32.mrb[10].mxu0  ;;  %3234 = vmatmul.mubr.bf16.gmra.mrb[28].mxu1 %v2959_v45 }
 0x1bc   : > { %3375 = vst.msk [vmem:[%s6060_s22 + $0x10] sm:$0xf] %vm3370_vm13, %v4113_v2  ;;  %v3511_v46 = vsel %vm2698_vm6, %v3476_v6, 0.0  ;;  %v4114_v17 = vpack.c.bf16 %v3134_v26, %v3134_v26  ;;  %v3412_v41 = vsel %vm2698_vm6, %v3134_v26, 0.0  ;;  %v3477_v28 = vmul.f32 %v3134_v26, %v3134_v26  ;;  %v3136_v23 = vpop.f32.mrb[11].mxu0 }
 0x1bd   : > { %v3512_v59 = vadd.f32 %v3511_v46, %v3510_v52  ;;  %v3413_v20 = vadd.f32 %v3412_v41, %v3411_v16 }
 0x1be   : > { %3376 = vst.msk [vmem:[%s6060_s22 + $0x14] sm:$0xf] %vm3370_vm13, %v4114_v17  ;;  %v3513_v36 = vsel %vm2698_vm6, %v3477_v28, 0.0 }
 0x1bf   : > { %v3514_v34 = vadd.f32 %v3513_v36, %v3512_v59  ;;  %v4318_v36 = vmov 0.0  }
 0x1c0   : > { %3580 = vst.msk [vmem:[%s6155_s26] sm:$0x3] %vm3579_vm14, %v4318_v36 }
 0x1c9   : > { %v3139_v24 = vpop.f32.mrb[12].mxu0 }
 0x1ca   : > { %v4115_v62 = vpack.c.bf16 %v3139_v24, %v3139_v24  ;;  %v3414_v53 = vsel %vm2698_vm6, %v3139_v24, 0.0  ;;  %v3478_v7 = vmul.f32 %v3139_v24, %v3139_v24  ;;  %v3141_v43 = vpop.f32.mrb[13].mxu0 }
 0x1cb   : > { %v3415_v21 = vadd.f32 %v3414_v53, %v3413_v20  ;;  %v3142_v11 = vpop.f32.mrb[14].mxu0 }
 0x1cc   : > { %3377 = vst.msk [vmem:[%s6060_s22 + $0x18] sm:$0xf] %vm3370_vm13, %v4115_v62  ;;  %v3515_v44 = vsel %vm2698_vm6, %v3478_v7, 0.0  ;;  %v4116_v61 = vpack.c.bf16 %v3142_v11, %v3142_v11  ;;  %v3416_v22 = vsel %vm2698_vm6, %v3142_v11, 0.0  ;;  %v3479_v5 = vmul.f32 %v3142_v11, %v3142_v11  ;;  %v3144_v35 = vpop.f32.mrb[15].mxu0 }
 0x1cd   : > { %v3516_v56 = vadd.f32 %v3515_v44, %v3514_v34  ;;  %v3417_v19 = vadd.f32 %v3416_v22, %v3415_v21 }
 0x1ce   : > { %3378 = vst.msk [vmem:[%s6060_s22 + $0x1c] sm:$0xf] %vm3370_vm13, %v4116_v61  ;;  %v3517_v55 = vsel %vm2698_vm6, %v3479_v5, 0.0 }
 0x1cf   : > { %v3518_v8 = vadd.f32 %v3517_v55, %v3516_v56 }
 0x1e6   : > { %v6118_v57 = vpop.f32.mrb[0].mxu1 }
 0x1e7   : > { %v4125_v33 = vpack.c.bf16 %v6118_v57, %v6118_v57  ;;  %v3181_v12 = vpop.f32.mrb[1].mxu1 }
 0x1e8   : > { %v6122_v14 = vpop.f32.mrb[2].mxu1 }
 0x1e9   : > { %3387 = vst.msk [vmem:[%s6060_s22 + $0x40] sm:$0xf] %vm3370_vm13, %v4125_v33  ;;  %v4126_v3 = vpack.c.bf16 %v6122_v14, %v6122_v14  ;;  %v3184_v18 = vpop.f32.mrb[3].mxu1 }
 0x1eb   : > { %3388 = vst.msk [vmem:[%s6060_s22 + $0x44] sm:$0xf] %vm3370_vm13, %v4126_v3 }
 0x1ee   : > { %v3147_v32 = vpop.f32.mrb[16].mxu0 }
 0x1ef   : > { %v4117_v38 = vpack.c.bf16 %v3147_v32, %v3147_v32  ;;  %v3418_v49 = vsel %vm2698_vm6, %v3147_v32, 0.0  ;;  %v3480_v40 = vmul.f32 %v3147_v32, %v3147_v32  ;;  %v3149_v63 = vpop.f32.mrb[17].mxu0 }
 0x1f0   : > { %v3419_v10 = vadd.f32 %v3418_v49, %v3417_v19  ;;  %v3150_v60 = vpop.f32.mrb[18].mxu0 }
 0x1f1   : > { %3379 = vst.msk [vmem:[%s6060_s22 + $0x20] sm:$0xf] %vm3370_vm13, %v4117_v38  ;;  %v3519_v30 = vsel %vm2698_vm6, %v3480_v40, 0.0  ;;  %v4118_v0 = vpack.c.bf16 %v3150_v60, %v3150_v60  ;;  %v3420_v9 = vsel %vm2698_vm6, %v3150_v60, 0.0  ;;  %v3481_v58 = vmul.f32 %v3150_v60, %v3150_v60  ;;  %v3152_v4 = vpop.f32.mrb[19].mxu0 }
 0x1f2   : > { %v3520_v1 = vadd.f32 %v3519_v30, %v3518_v8  ;;  %v3421_v54 = vadd.f32 %v3420_v9, %v3419_v10 }
 0x1f3   : > { %3380 = vst.msk [vmem:[%s6060_s22 + $0x24] sm:$0xf] %vm3370_vm13, %v4118_v0  ;;  %v3521_v50 = vsel %vm2698_vm6, %v3481_v58, 0.0  ;;  %v3488_v58 = vmul.f32 %v6118_v57, %v6118_v57 }
 0x1f4   : > { %v3522_v52 = vadd.f32 %v3521_v50, %v3520_v1 }
 0x210   : > { %v6138_v47 = vpop.f32.mrb[4].mxu1 }
 0x211   : > { %v4127_v13 = vpack.c.bf16 %v6138_v47, %v6138_v47  ;;  %v3189_v51 = vpop.f32.mrb[5].mxu1 }
 0x212   : > { %v6142_v48 = vpop.f32.mrb[6].mxu1 }
 0x213   : > { %3389 = vst.msk [vmem:[%s6060_s22 + $0x48] sm:$0xf] %vm3370_vm13, %v4127_v13  ;;  %v4128_v27 = vpack.c.bf16 %v6142_v48, %v6142_v48  ;;  %v3192_v25 = vpop.f32.mrb[7].mxu1 }
 0x215   : > { %3390 = vst.msk [vmem:[%s6060_s22 + $0x4c] sm:$0xf] %vm3370_vm13, %v4128_v27 }
 0x218   : > { %v3155_v37 = vpop.f32.mrb[20].mxu0 }
 0x219   : > { %v4119_v29 = vpack.c.bf16 %v3155_v37, %v3155_v37  ;;  %v3422_v15 = vsel %vm2698_vm6, %v3155_v37, 0.0  ;;  %v3482_v42 = vmul.f32 %v3155_v37, %v3155_v37  ;;  %v3157_v2 = vpop.f32.mrb[21].mxu0  ;;  %v3434_v37 = vsel %vm2698_vm6, %v6118_v57, 0.0 }
 0x21a   : > { %v3423_v31 = vadd.f32 %v3422_v15, %v3421_v54  ;;  %v3158_v6 = vpop.f32.mrb[22].mxu0 }
 0x21b   : > { %3381 = vst.msk [vmem:[%s6060_s22 + $0x28] sm:$0xf] %vm3370_vm13, %v4119_v29  ;;  %v3523_v39 = vsel %vm2698_vm6, %v3482_v42, 0.0  ;;  %v4120_v45 = vpack.c.bf16 %v3158_v6, %v3158_v6  ;;  %v3424_v16 = vsel %vm2698_vm6, %v3158_v6, 0.0  ;;  %v3483_v26 = vmul.f32 %v3158_v6, %v3158_v6  ;;  %v3160_v46 = vpop.f32.mrb[23].mxu0 }
 0x21c   : > { %v3524_v17 = vadd.f32 %v3523_v39, %v3522_v52  ;;  %v3425_v41 = vadd.f32 %v3424_v16, %v3423_v31  ;;  %v3489_v29 = vmul.f32 %v6122_v14, %v6122_v14  ;;  %v3535_v31 = vsel %vm2698_vm6, %v3488_v58, 0.0 }
 0x21d   : > { %v6161_v28 = vpop.f32.mrb[8].mxu1  ;;  %3382 = vst.msk [vmem:[%s6060_s22 + $0x2c] sm:$0xf] %vm3370_vm13, %v4120_v45  ;;  %v3525_v23 = vsel %vm2698_vm6, %v3483_v26, 0.0  ;;  %v3436_v6 = vsel %vm2698_vm6, %v6122_v14, 0.0  ;;  %v3490_v39 = vmul.f32 %v6138_v47, %v6138_v47  ;;  %v3438_v26 = vsel %vm2698_vm6, %v6138_v47, 0.0 }
 0x21e   : > { %v4129_v59 = vpack.c.bf16 %v6161_v28, %v6161_v28  ;;  %v3197_v20 = vpop.f32.mrb[9].mxu1  ;;  %v3526_v34 = vadd.f32 %v3525_v23, %v3524_v17  ;;  %v3537_v57 = vsel %vm2698_vm6, %v3489_v29, 0.0  ;;  %v3491_v46 = vmul.f32 %v6142_v48, %v6142_v48 }
 0x21f   : > { %v6170_v24 = vpop.f32.mrb[10].mxu1  ;;  %v3539_v23 = vsel %vm2698_vm6, %v3490_v39, 0.0  ;;  %v3440_v14 = vsel %vm2698_vm6, %v6142_v48, 0.0  ;;  %v3442_v47 = vsel %vm2698_vm6, %v6161_v28, 0.0 }
 0x220   : > { %3391 = vst.msk [vmem:[%s6060_s22 + $0x50] sm:$0xf] %vm3370_vm13, %v4129_v59  ;;  %v4130_v62 = vpack.c.bf16 %v6170_v24, %v6170_v24  ;;  %v3200_v53 = vpop.f32.mrb[11].mxu1  ;;  %v3163_v7 = vpop.f32.mrb[24].mxu0  ;;  %v3492_v59 = vmul.f32 %v6161_v28, %v6161_v28  ;;  %v3444_v48 = vsel %vm2698_vm6, %v6170_v24, 0.0 }
 0x221   : > { %v4121_v43 = vpack.c.bf16 %v3163_v7, %v3163_v7  ;;  %v3426_v21 = vsel %vm2698_vm6, %v3163_v7, 0.0  ;;  %v3484_v11 = vmul.f32 %v3163_v7, %v3163_v7  ;;  %v3165_v44 = vpop.f32.mrb[25].mxu0 }
 0x222   : > { %3392 = vst.msk [vmem:[%s6060_s22 + $0x54] sm:$0xf] %vm3370_vm13, %v4130_v62  ;;  %v3427_v61 = vadd.f32 %v3426_v21, %v3425_v41  ;;  %v3166_v22 = vpop.f32.mrb[26].mxu0  ;;  %v3493_v62 = vmul.f32 %v6170_v24, %v6170_v24 }
 0x223   : > { %3383 = vst.msk [vmem:[%s6060_s22 + $0x30] sm:$0xf] %vm3370_vm13, %v4121_v43  ;;  %v3527_v5 = vsel %vm2698_vm6, %v3484_v11, 0.0  ;;  %v4122_v35 = vpack.c.bf16 %v3166_v22, %v3166_v22  ;;  %v3428_v56 = vsel %vm2698_vm6, %v3166_v22, 0.0  ;;  %v3485_v19 = vmul.f32 %v3166_v22, %v3166_v22  ;;  %v3168_v55 = vpop.f32.mrb[27].mxu0 }
 0x224   : > { %v3528_v8 = vadd.f32 %v3527_v5, %v3526_v34  ;;  %v3429_v33 = vadd.f32 %v3428_v56, %v3427_v61  ;;  %v3541_v34 = vsel %vm2698_vm6, %v3491_v46, 0.0  ;;  %v3543_v43 = vsel %vm2698_vm6, %v3492_v59, 0.0 }
 0x225   : > { %3384 = vst.msk [vmem:[%s6060_s22 + $0x34] sm:$0xf] %vm3370_vm13, %v4122_v35  ;;  %v3529_v12 = vsel %vm2698_vm6, %v3485_v19, 0.0  ;;  %v3545_v61 = vsel %vm2698_vm6, %v3493_v62, 0.0 }
 0x226   : > { %v3530_v3 = vadd.f32 %v3529_v12, %v3528_v8 }
 0x234   : > { %v3203_v18 = vpop.f32.mrb[12].mxu1 }
 0x235   : > { %v4131_v32 = vpack.c.bf16 %v3203_v18, %v3203_v18  ;;  %v3205_v38 = vpop.f32.mrb[13].mxu1  ;;  %v3494_v21 = vmul.f32 %v3203_v18, %v3203_v18  ;;  %v3446_v22 = vsel %vm2698_vm6, %v3203_v18, 0.0 }
 0x236   : > { %v3206_v49 = vpop.f32.mrb[14].mxu1 }
 0x237   : > { %3393 = vst.msk [vmem:[%s6060_s22 + $0x58] sm:$0xf] %vm3370_vm13, %v4131_v32  ;;  %v4132_v40 = vpack.c.bf16 %v3206_v49, %v3206_v49  ;;  %v3208_v63 = vpop.f32.mrb[15].mxu1  ;;  %v3495_v5 = vmul.f32 %v3206_v49, %v3206_v49  ;;  %v3547_v56 = vsel %vm2698_vm6, %v3494_v21, 0.0  ;;  %v3448_v19 = vsel %vm2698_vm6, %v3206_v49, 0.0 }
 0x239   : > { %3394 = vst.msk [vmem:[%s6060_s22 + $0x5c] sm:$0xf] %vm3370_vm13, %v4132_v40  ;;  %v3171_v10 = vpop.f32.mrb[28].mxu0 }
 0x23a   : > { %v4123_v60 = vpack.c.bf16 %v3171_v10, %v3171_v10  ;;  %v3430_v30 = vsel %vm2698_vm6, %v3171_v10, 0.0  ;;  %v3486_v0 = vmul.f32 %v3171_v10, %v3171_v10  ;;  %v3173_v9 = vpop.f32.mrb[29].mxu0 }
 0x23b   : > { %v3431_v4 = vadd.f32 %v3430_v30, %v3429_v33  ;;  %v3174_v1 = vpop.f32.mrb[30].mxu0  ;;  %v3549_v33 = vsel %vm2698_vm6, %v3495_v5, 0.0 }
 0x23c   : > { %3385 = vst.msk [vmem:[%s6060_s22 + $0x38] sm:$0xf] %vm3370_vm13, %v4123_v60  ;;  %v3531_v54 = vsel %vm2698_vm6, %v3486_v0, 0.0  ;;  %v4124_v50 = vpack.c.bf16 %v3174_v1, %v3174_v1  ;;  %v3432_v52 = vsel %vm2698_vm6, %v3174_v1, 0.0  ;;  %v3487_v13 = vmul.f32 %v3174_v1, %v3174_v1  ;;  %v3176_v51 = vpop.f32.mrb[31].mxu0 }
 0x23d   : > { %v3532_v27 = vadd.f32 %v3531_v54, %v3530_v3  ;;  %v3433_v25 = vadd.f32 %v3432_v52, %v3431_v4 }
 0x23e   : > { %3386 = vst.msk [vmem:[%s6060_s22 + $0x3c] sm:$0xf] %vm3370_vm13, %v4124_v50  ;;  %v3533_v15 = vsel %vm2698_vm6, %v3487_v13, 0.0 }
 0x23f   : > { %v3435_v42 = vadd.f32 %v3434_v37, %v3433_v25  ;;  %v3534_v2 = vadd.f32 %v3533_v15, %v3532_v27 }
 0x241   : > { %v3437_v45 = vadd.f32 %v3436_v6, %v3435_v42  ;;  %v3536_v16 = vadd.f32 %v3535_v31, %v3534_v2 }
 0x243   : > { %v3439_v17 = vadd.f32 %v3438_v26, %v3437_v45  ;;  %v3538_v41 = vadd.f32 %v3537_v57, %v3536_v16 }
 0x245   : > { %v3441_v20 = vadd.f32 %v3440_v14, %v3439_v17  ;;  %v3540_v36 = vadd.f32 %v3539_v23, %v3538_v41 }
 0x247   : > { %v3542_v53 = vadd.f32 %v3541_v34, %v3540_v36  ;;  %v3443_v7 = vadd.f32 %v3442_v47, %v3441_v20 }
 0x249   : > { %v3445_v11 = vadd.f32 %v3444_v48, %v3443_v7  ;;  %v3544_v44 = vadd.f32 %v3543_v43, %v3542_v53 }
 0x24b   : > { %v3447_v28 = vadd.f32 %v3446_v22, %v3445_v11  ;;  %v3546_v35 = vadd.f32 %v3545_v61, %v3544_v44 }
 0x24d   : > { %v3449_v55 = vadd.f32 %v3448_v19, %v3447_v28  ;;  %v3548_v8 = vadd.f32 %v3547_v56, %v3546_v35 }
 0x24e   : > { %v3211_v12 = vpop.f32.mrb[16].mxu1 }
 0x24f   : > { %v3550_v24 = vadd.f32 %v3549_v33, %v3548_v8  ;;  %v4133_v3 = vpack.c.bf16 %v3211_v12, %v3211_v12  ;;  %v3450_v32 = vsel %vm2698_vm6, %v3211_v12, 0.0  ;;  %v3496_v38 = vmul.f32 %v3211_v12, %v3211_v12  ;;  %v3213_v18 = vpop.f32.mrb[17].mxu1 }
 0x250   : > { %v3451_v40 = vadd.f32 %v3450_v32, %v3449_v55  ;;  %v3214_v63 = vpop.f32.mrb[18].mxu1 }
 0x251   : > { %3395 = vst.msk [vmem:[%s6060_s22 + $0x60] sm:$0xf] %vm3370_vm13, %v4133_v3  ;;  %v3551_v10 = vsel %vm2698_vm6, %v3496_v38, 0.0  ;;  %v4134_v60 = vpack.c.bf16 %v3214_v63, %v3214_v63  ;;  %v3452_v49 = vsel %vm2698_vm6, %v3214_v63, 0.0  ;;  %v3497_v30 = vmul.f32 %v3214_v63, %v3214_v63  ;;  %v3216_v0 = vpop.f32.mrb[19].mxu1 }
 0x252   : > { %v3552_v9 = vadd.f32 %v3551_v10, %v3550_v24  ;;  %v3453_v58 = vadd.f32 %v3452_v49, %v3451_v40 }
 0x253   : > { %3396 = vst.msk [vmem:[%s6060_s22 + $0x64] sm:$0xf] %vm3370_vm13, %v4134_v60  ;;  %v3553_v4 = vsel %vm2698_vm6, %v3497_v30, 0.0 }
 0x254   : > { %v3554_v1 = vadd.f32 %v3553_v4, %v3552_v9  ;;  %v3581_v9 = vld [vmem:[%s6155_s26] sm:$0x3] }
 0x263   : > { %v3219_v54 = vpop.f32.mrb[20].mxu1 }
 0x264   : > { %v4135_v50 = vpack.c.bf16 %v3219_v54, %v3219_v54  ;;  %v3454_v52 = vsel %vm2698_vm6, %v3219_v54, 0.0  ;;  %v3498_v13 = vmul.f32 %v3219_v54, %v3219_v54  ;;  %v3221_v51 = vpop.f32.mrb[21].mxu1 }
 0x265   : > { %v3455_v27 = vadd.f32 %v3454_v52, %v3453_v58  ;;  %v3222_v25 = vpop.f32.mrb[22].mxu1 }
 0x266   : > { %3397 = vst.msk [vmem:[%s6060_s22 + $0x68] sm:$0xf] %vm3370_vm13, %v4135_v50  ;;  %v3555_v37 = vsel %vm2698_vm6, %v3498_v13, 0.0  ;;  %v4136_v29 = vpack.c.bf16 %v3222_v25, %v3222_v25  ;;  %v3456_v15 = vsel %vm2698_vm6, %v3222_v25, 0.0  ;;  %v3499_v42 = vmul.f32 %v3222_v25, %v3222_v25  ;;  %v3224_v2 = vpop.f32.mrb[23].mxu1 }
 0x267   : > { %v3556_v31 = vadd.f32 %v3555_v37, %v3554_v1  ;;  %v3457_v6 = vadd.f32 %v3456_v15, %v3455_v27 }
 0x268   : > { %3398 = vst.msk [vmem:[%s6060_s22 + $0x6c] sm:$0xf] %vm3370_vm13, %v4136_v29  ;;  %v3557_v39 = vsel %vm2698_vm6, %v3499_v42, 0.0 }
 0x269   : > { %v3558_v45 = vadd.f32 %v3557_v39, %v3556_v31 }
 0x277   : > { %v3227_v16 = vpop.f32.mrb[24].mxu1 }
 0x278   : > { %v4137_v57 = vpack.c.bf16 %v3227_v16, %v3227_v16  ;;  %v3458_v26 = vsel %vm2698_vm6, %v3227_v16, 0.0  ;;  %v3500_v46 = vmul.f32 %v3227_v16, %v3227_v16  ;;  %v3229_v17 = vpop.f32.mrb[25].mxu1 }
 0x279   : > { %v3459_v41 = vadd.f32 %v3458_v26, %v3457_v6  ;;  %v3230_v23 = vpop.f32.mrb[26].mxu1 }
 0x27a   : > { %3399 = vst.msk [vmem:[%s6060_s22 + $0x70] sm:$0xf] %vm3370_vm13, %v4137_v57  ;;  %v3559_v14 = vsel %vm2698_vm6, %v3500_v46, 0.0  ;;  %v4138_v59 = vpack.c.bf16 %v3230_v23, %v3230_v23  ;;  %v3460_v20 = vsel %vm2698_vm6, %v3230_v23, 0.0  ;;  %v3501_v36 = vmul.f32 %v3230_v23, %v3230_v23  ;;  %v3232_v34 = vpop.f32.mrb[27].mxu1 }
 0x27b   : > { %v3560_v47 = vadd.f32 %v3559_v14, %v3558_v45  ;;  %v3461_v62 = vadd.f32 %v3460_v20, %v3459_v41 }
 0x27c   : > { %3400 = vst.msk [vmem:[%s6060_s22 + $0x74] sm:$0xf] %vm3370_vm13, %v4138_v59  ;;  %v3561_v53 = vsel %vm2698_vm6, %v3501_v36, 0.0 }
 0x27d   : > { %v3562_v7 = vadd.f32 %v3561_v53, %v3560_v47 }
 0x28e   : > { %v3235_v43 = vpop.f32.mrb[28].mxu1 }
 0x28f   : > { %v4139_v48 = vpack.c.bf16 %v3235_v43, %v3235_v43  ;;  %v3462_v21 = vsel %vm2698_vm6, %v3235_v43, 0.0  ;;  %v3502_v11 = vmul.f32 %v3235_v43, %v3235_v43  ;;  %v3237_v44 = vpop.f32.mrb[29].mxu1 }
 0x290   : > { %v3463_v61 = vadd.f32 %v3462_v21, %v3461_v62  ;;  %v3238_v22 = vpop.f32.mrb[30].mxu1 }
 0x291   : > { %3401 = vst.msk [vmem:[%s6060_s22 + $0x78] sm:$0xf] %vm3370_vm13, %v4139_v48  ;;  %v3563_v5 = vsel %vm2698_vm6, %v3502_v11, 0.0  ;;  %v4140_v28 = vpack.c.bf16 %v3238_v22, %v3238_v22  ;;  %v3464_v35 = vsel %vm2698_vm6, %v3238_v22, 0.0  ;;  %v3503_v56 = vmul.f32 %v3238_v22, %v3238_v22  ;;  %v3240_v19 = vpop.f32.mrb[31].mxu1 }
 0x292   : > { %v3564_v55 = vadd.f32 %v3563_v5, %v3562_v7  ;;  %v3465_v8 = vadd.f32 %v3464_v35, %v3463_v61 }
 0x293   : > { %3402 = vst.msk [vmem:[%s6060_s22 + $0x7c] sm:$0xf] %vm3370_vm13, %v4140_v28  ;;  %v3565_v33 = vsel %vm2698_vm6, %v3503_v56, 0.0 }
 0x294   : > { %v3466_v24 = vrot.slane %v3465_v8, 4  ;;  %v3566_v12 = vadd.f32 %v3565_v33, %v3564_v55 }
 0x296   : > { %v3467_v3 = vadd.f32 %v3466_v24, %v3465_v8  ;;  %v3567_v32 = vrot.slane %v3566_v12, 4 }
 0x298   : > { %v3468_v38 = vrot.slane %v3467_v3, 2  ;;  %v3568_v18 = vadd.f32 %v3567_v32, %v3566_v12 }
 0x29a   : > { %v3469_v40 = vadd.f32 %v3468_v38, %v3467_v3  ;;  %v3569_v63 = vrot.slane %v3568_v18, 2 }
 0x29c   : > { %v3470_v10 = vrot.slane %v3469_v40, 1  ;;  %v3570_v60 = vadd.f32 %v3569_v63, %v3568_v18 }
 0x29e   : > { %v3571_v49 = vrot.slane %v3570_v60, 1  ;;  %v3471_v30 = vadd.f32 %v3470_v10, %v3469_v40 }
 0x2a0   : > { %v3572_v0 = vadd.f32 %v3571_v49, %v3570_v60 }
 0x2a2   : > { %v3574_v58 = vsel %vm3573_vm15, %v3471_v30, %v3572_v0 }
 0x2a3   : > { %v3582_v4 = vadd.f32 %v3581_v9, %v3574_v58 }
 0x2a5   : > { %3584 = vst.msk [vmem:[%s6155_s26] sm:$0x3] %vm3579_vm14, %v3582_v4 }
 0x2a6 PF: > { %s14_s14 = sadd.s32 1, %s4308_s14   ;;  %s6359_s12 = smov %s4304_s13 }
 0x2a7   : > { %p11_p5 = scmp.ge.s32.totalorder %s14_s14, 4   ;;  %s6360_s13 = smov %s6362_s15 }
 0x2a9   :  { %13 = sbr.rel (!%p11_p5) target bundleno = 2 (0x2), region = 80 }

</bundles_post_ra>
